<compile_context>
chip_gen: v6e
topology: v6e:2x2x1
jax: 0.10.0
libtpu: 0.0.40
codegen_flags: <defaults>
</compile_context>

<pallas_src>
import jax
import jax.numpy as jnp
from jax.experimental import pallas as pl
from jax.experimental.pallas import tpu as pltpu

# DCGAN hyper-params (kept small for this synthetic run)
num_z = 16
num_gf = 8
num_channels = 3
BN_EPS = 1e-5

# (Cin, Cout, stride, padding) for the four ConvT+BN+ReLU blocks.
CFGS = [
    (num_z,      num_gf * 8, 1, 0),   # 1x1   -> 4x4
    (num_gf * 8, num_gf * 4, 2, 1),   # 4x4   -> 8x8
    (num_gf * 4, num_gf * 2, 2, 1),   # 8x8   -> 16x16
    (num_gf * 2, num_gf,     2, 1),   # 16x16 -> 32x32
]

_VMEM_LIMIT = 32 * 1024 * 1024  # explicit scoped-VMEM limit, portable v5e..v7x


# ----------------------------- Pallas kernels ------------------------------

def _convbn_relu_kernel(w_ref, p_ref, g_ref, b_ref, o_ref):
    # ConvTranspose2d as lane-dense matmul: (Cout, K) @ (K, M) -> (Cout, M).
    y = jnp.dot(w_ref[...], p_ref[...], preferred_element_type=jnp.float32)
    # BatchNorm2d training mode, per-channel stats over M = N*H*W (lane axis),
    # single pass: biased var = E[y^2] - E[y]^2, eps = 1e-5 (PyTorch default).
    mean = jnp.mean(y, axis=1, keepdims=True)
    meansq = jnp.mean(y * y, axis=1, keepdims=True)
    var = jnp.maximum(meansq - mean * mean, 0.0)
    # Fold normalize + affine into one FMA: y*scale + shift, then ReLU.
    scale = g_ref[...] * jax.lax.rsqrt(var + BN_EPS)
    shift = b_ref[...] - mean * scale
    o_ref[...] = jnp.maximum(y * scale + shift, 0.0)


def _conv_tanh_kernel(w_ref, p_ref, o_ref):
    y = jnp.dot(w_ref[...], p_ref[...], preferred_element_type=jnp.float32)
    o_ref[...] = jnp.tanh(y)


def _fused_matmul_bn_relu(wmat, patches, gamma, beta):
    """wmat: (Cout, K) bf16, patches: (K, M) bf16 -> (Cout, M) f32."""
    Cout, K = wmat.shape
    M = patches.shape[1]
    return pl.pallas_call(
        _convbn_relu_kernel,
        out_shape=jax.ShapeDtypeStruct((Cout, M), jnp.float32),
        grid=(1,),
        in_specs=[
            pl.BlockSpec((Cout, K), lambda i: (0, 0)),
            pl.BlockSpec((K, M), lambda i: (0, 0)),
            pl.BlockSpec((Cout, 1), lambda i: (0, 0)),
            pl.BlockSpec((Cout, 1), lambda i: (0, 0)),
        ],
        out_specs=pl.BlockSpec((Cout, M), lambda i: (0, 0)),
        compiler_params=pltpu.CompilerParams(
            dimension_semantics=("arbitrary",),
            vmem_limit_bytes=_VMEM_LIMIT),
    )(wmat, patches, gamma.reshape(Cout, 1), beta.reshape(Cout, 1))


def _fused_matmul_tanh(wmat, patches, tm=2048):
    """wmat: (Cout, K) bf16, patches: (K, M) bf16 -> tanh result (Cout, M) f32.

    Tiled over M (lane-dense tiles, "parallel") so both v7x TensorCores are
    used and patch DMAs pipeline with compute.
    """
    Cout, K = wmat.shape
    M = patches.shape[1]
    if M % tm != 0:
        tm = M
    nm = M // tm
    return pl.pallas_call(
        _conv_tanh_kernel,
        out_shape=jax.ShapeDtypeStruct((Cout, M), jnp.float32),
        grid=(nm,),
        in_specs=[
            pl.BlockSpec((Cout, K), lambda j: (0, 0)),
            pl.BlockSpec((K, tm), lambda j: (0, j)),
        ],
        out_specs=pl.BlockSpec((Cout, tm), lambda j: (0, j)),
        compiler_params=pltpu.CompilerParams(
            dimension_semantics=("parallel",),
            vmem_limit_bytes=_VMEM_LIMIT),
    )(wmat, patches)


# ------------------------- ConvTranspose2d -> matmul ------------------------

def _conv_transpose_patches_cnhw(x, weight, stride, padding, k):
    """x: (Cin, N, H, W) channel-major, weight: (Cin, Cout, k, k) (PyTorch).

    Returns wmat (Cout, K) bf16 and patches (K, M) bf16 with
    K = Cin*k*k ordered (ci, kh, kw) and M = N*Hout*Wout ordered (n, oh, ow),
    i.e. already in the lane-dense layout the kernels consume.
    """
    Cin, N, H, W = x.shape
    Cout = weight.shape[1]
    Hout = (H - 1) * stride - 2 * padding + k
    Wout = (W - 1) * stride - 2 * padding + k
    # zero-insert between input elements (fractional stride) + pad, in bf16.
    Hu = (H - 1) * stride + 1
    Wu = (W - 1) * stride + 1
    pad = k - 1 - padding
    xb = x.astype(jnp.bfloat16)
    xz = (jnp.zeros((Cin, N, Hu, Wu), jnp.bfloat16)
          .at[:, :, ::stride, ::stride].set(xb))
    xp = jnp.pad(xz, ((0, 0), (0, 0), (pad, pad), (pad, pad)))
    # im2col built directly as (K, M) (ordinary correlation w/ flipped kernel).
    cols = [xp[:, :, kh:kh + Hout, kw:kw + Wout]
            for kh in range(k) for kw in range(k)]
    p = jnp.stack(cols, axis=1)                         # (Cin, k*k, N, Hout, Wout)
    patches = p.reshape(Cin * k * k, N * Hout * Wout)   # (K, M)
    # flipped kernel laid out to match the (ci, kh, kw) row order of patches.
    wflip = weight[:, :, ::-1, ::-1]                    # (Cin, Cout, k, k)
    wmat = (wflip.transpose(1, 0, 2, 3)
            .reshape(Cout, Cin * k * k).astype(jnp.bfloat16))
    return wmat, patches, (N, Hout, Wout, Cout)


def gen_conv_block(x, weight, gamma, beta, stride, padding, k=4):
    """ConvTranspose2d(bias=False) + BatchNorm2d(train) + ReLU.  (C,N,H,W) in/out."""
    wmat, patches, (N, Hout, Wout, Cout) = _conv_transpose_patches_cnhw(
        x, weight, stride, padding, k)
    y = _fused_matmul_bn_relu(wmat, patches, gamma, beta)   # (Cout, M)
    return y.reshape(Cout, N, Hout, Wout)


def final_conv_tanh(x, weight, stride, padding, k=4):
    """ConvTranspose2d(bias=False) + Tanh.  (C,N,H,W) in/out."""
    wmat, patches, (N, Hout, Wout, Cout) = _conv_transpose_patches_cnhw(
        x, weight, stride, padding, k)
    y = _fused_matmul_tanh(wmat, patches)
    return y.reshape(Cout, N, Hout, Wout)


# -------------------------------- Generator --------------------------------

def init_generator_params(key):
    params = {"blocks": [], "final_w": None}
    keys = jax.random.split(key, len(CFGS) + 1)
    for kk, (cin, cout, _, _) in zip(keys[:-1], CFGS):
        w = jax.random.normal(kk, (cin, cout, 4, 4), jnp.float32) * 0.05
        gamma = jnp.ones((cout,), jnp.float32)   # PyTorch BN default weight
        beta = jnp.zeros((cout,), jnp.float32)   # PyTorch BN default bias
        params["blocks"].append((w, gamma, beta))
    params["final_w"] = jax.random.normal(
        keys[-1], (num_gf, num_channels, 4, 4), jnp.float32) * 0.05
    return params


def generator_forward(params, x):
    # x: (N, num_z, 1, 1) NCHW as in PyTorch.  Convert to channel-major
    # (C, N, H, W) exactly once; all intermediate activations keep this
    # layout, so there is no per-layer NCHW <-> NHWC ping-pong.
    out = x.transpose(1, 0, 2, 3)
    for (w, gamma, beta), (_, _, stride, padding) in zip(params["blocks"], CFGS):
        out = gen_conv_block(out, w, gamma, beta, stride, padding, k=4)
    out = final_conv_tanh(out, params["final_w"], stride=2, padding=1, k=4)
    return out.transpose(1, 0, 2, 3)   # back to NCHW once at the very end


# ----------------------------------- main -----------------------------------

if __name__ == "__main__":
    key = jax.random.PRNGKey(0)
    pkey, xkey = jax.random.split(key)
    params = init_generator_params(pkey)
    # DCGAN latent input: (batch, num_z, 1, 1), NCHW as in PyTorch
    x = jax.random.normal(xkey, (2, num_z, 1, 1), jnp.float32)

    fwd = jax.jit(generator_forward)
    out = jax.block_until_ready(fwd(params, x))

    assert out.shape == (2, num_channels, 64, 64), out.shape
    assert bool(jnp.all(jnp.isfinite(out)))
    assert bool(jnp.all(jnp.abs(out) <= 1.0 + 1e-6))  # tanh range
    print("KERNEL_OK")
</pallas_src>

<mosaic_0001>
module attributes {stable_mosaic.version = 11 : i64} {
  func.func @_convbn_relu_kernel(%arg0: i32, %arg1: memref<64x256xbf16, #tpu.memory_space<vmem>>, %arg2: memref<256x32xbf16, #tpu.memory_space<vmem>>, %arg3: memref<64x1xf32, #tpu.memory_space<vmem>>, %arg4: memref<64x1xf32, #tpu.memory_space<vmem>>, %arg5: memref<64x32xf32, #tpu.memory_space<vmem>>) attributes {dimension_semantics = [#tpu.dimension_semantics<arbitrary>], iteration_bounds = array<i64: 1>, scalar_prefetch = 0 : i64, scratch_operands = 0 : i64, tpu.core_type = #tpu.core_type<tc>, window_params = [{pipeline_mode = #tpu.pipeline_mode<synchronous>, transform_indices = @transform_0, window_bounds = array<i64: 64, 256>}, {pipeline_mode = #tpu.pipeline_mode<synchronous>, transform_indices = @transform_1, window_bounds = array<i64: 256, 32>}, {pipeline_mode = #tpu.pipeline_mode<synchronous>, transform_indices = @transform_2, window_bounds = array<i64: 64, 1>}, {pipeline_mode = #tpu.pipeline_mode<synchronous>, transform_indices = @transform_3, window_bounds = array<i64: 64, 1>}, {pipeline_mode = #tpu.pipeline_mode<synchronous>, transform_indices = @transform_4, window_bounds = array<i64: 64, 32>}]} {
    %c0 = arith.constant 0 : index
    %c0_0 = arith.constant 0 : index
    %0 = vector.load %arg1[%c0, %c0_0] : memref<64x256xbf16, #tpu.memory_space<vmem>>, vector<64x256xbf16>
    %c0_1 = arith.constant 0 : index
    %c0_2 = arith.constant 0 : index
    %1 = vector.load %arg2[%c0_1, %c0_2] : memref<256x32xbf16, #tpu.memory_space<vmem>>, vector<256x32xbf16>
    %cst = arith.constant dense<0.000000e+00> : vector<64x32xf32>
    %2 = tpu.matmul %0, %1, %cst {dimension_numbers = #tpu.dot_dimension_numbers<[1], [0], [0], [1], [0, 0, 1, 1], [], []>} : vector<64x256xbf16>, vector<256x32xbf16>, vector<64x32xf32> -> vector<64x32xf32>
    %cst_3 = arith.constant dense<0.000000e+00> : vector<64xf32>
    %3 = vector.multi_reduction <add>, %2, %cst_3 [1] : vector<64x32xf32> to vector<64xf32>
    %4 = vector.shape_cast %3 : vector<64xf32> to vector<64x1xf32>
    %cst_4 = arith.constant 3.200000e+01 : f32
    %5 = vector.broadcast %cst_4 : f32 to vector<64x1xf32>
    %6 = arith.divf %4, %5 : vector<64x1xf32>
    %7 = arith.mulf %2, %2 : vector<64x32xf32>
    %cst_5 = arith.constant dense<0.000000e+00> : vector<64xf32>
    %8 = vector.multi_reduction <add>, %7, %cst_5 [1] : vector<64x32xf32> to vector<64xf32>
    %9 = vector.shape_cast %8 : vector<64xf32> to vector<64x1xf32>
    %cst_6 = arith.constant 3.200000e+01 : f32
    %10 = vector.broadcast %cst_6 : f32 to vector<64x1xf32>
    %11 = arith.divf %9, %10 : vector<64x1xf32>
    %12 = arith.mulf %6, %6 : vector<64x1xf32>
    %13 = arith.subf %11, %12 : vector<64x1xf32>
    %cst_7 = arith.constant 0.000000e+00 : f32
    %14 = vector.broadcast %cst_7 : f32 to vector<64x1xf32>
    %15 = arith.maximumf %13, %14 : vector<64x1xf32>
    %c0_8 = arith.constant 0 : index
    %c0_9 = arith.constant 0 : index
    %16 = vector.load %arg3[%c0_8, %c0_9] : memref<64x1xf32, #tpu.memory_space<vmem>>, vector<64x1xf32>
    %cst_10 = arith.constant 9.99999974E-6 : f32
    %17 = vector.broadcast %cst_10 : f32 to vector<64x1xf32>
    %18 = arith.addf %15, %17 : vector<64x1xf32>
    %19 = math.rsqrt %18 : vector<64x1xf32>
    %20 = arith.mulf %16, %19 : vector<64x1xf32>
    %c0_11 = arith.constant 0 : index
    %c0_12 = arith.constant 0 : index
    %21 = vector.load %arg4[%c0_11, %c0_12] : memref<64x1xf32, #tpu.memory_space<vmem>>, vector<64x1xf32>
    %22 = arith.mulf %6, %20 : vector<64x1xf32>
    %23 = arith.subf %21, %22 : vector<64x1xf32>
    %24 = vector.broadcast %20 : vector<64x1xf32> to vector<64x32xf32>
    %25 = arith.mulf %2, %24 : vector<64x32xf32>
    %26 = vector.broadcast %23 : vector<64x1xf32> to vector<64x32xf32>
    %27 = arith.addf %25, %26 : vector<64x32xf32>
    %cst_13 = arith.constant 0.000000e+00 : f32
    %28 = vector.broadcast %cst_13 : f32 to vector<64x32xf32>
    %29 = arith.maximumf %27, %28 : vector<64x32xf32>
    %c0_14 = arith.constant 0 : index
    %c0_15 = arith.constant 0 : index
    %30 = vector.load %arg5[%c0_14, %c0_15] : memref<64x32xf32, #tpu.memory_space<vmem>>, vector<64x32xf32>
    tpu.vector_store %arg5[%c0_14, %c0_15], %29 {strides = array<i32>} : memref<64x32xf32, #tpu.memory_space<vmem>>, vector<64x32xf32>,
    return
  }
  func.func @transform_0(%arg0: i32) -> (i32, i32) {
    %c0_i32 = arith.constant 0 : i32
    %c0_i32_0 = arith.constant 0 : i32
    %c0_i32_1 = arith.constant 0 : i32
    return %c0_i32, %c0_i32_0 : i32, i32
  }
  func.func @transform_1(%arg0: i32) -> (i32, i32) {
    %c0_i32 = arith.constant 0 : i32
    %c0_i32_0 = arith.constant 0 : i32
    %c0_i32_1 = arith.constant 0 : i32
    return %c0_i32, %c0_i32_0 : i32, i32
  }
  func.func @transform_2(%arg0: i32) -> (i32, i32) {
    %c0_i32 = arith.constant 0 : i32
    %c0_i32_0 = arith.constant 0 : i32
    %c0_i32_1 = arith.constant 0 : i32
    return %c0_i32, %c0_i32_0 : i32, i32
  }
  func.func @transform_3(%arg0: i32) -> (i32, i32) {
    %c0_i32 = arith.constant 0 : i32
    %c0_i32_0 = arith.constant 0 : i32
    %c0_i32_1 = arith.constant 0 : i32
    return %c0_i32, %c0_i32_0 : i32, i32
  }
  func.func @transform_4(%arg0: i32) -> (i32, i32) {
    %c0_i32 = arith.constant 0 : i32
    %c0_i32_0 = arith.constant 0 : i32
    %c0_i32_1 = arith.constant 0 : i32
    return %c0_i32, %c0_i32_0 : i32, i32
  }
}

module attributes {stable_mosaic.version = 11 : i64} {
  func.func @_convbn_relu_kernel(%arg0: i32, %arg1: memref<32x1024xbf16, #tpu.memory_space<vmem>>, %arg2: memref<1024x128xbf16, #tpu.memory_space<vmem>>, %arg3: memref<32x1xf32, #tpu.memory_space<vmem>>, %arg4: memref<32x1xf32, #tpu.memory_space<vmem>>, %arg5: memref<32x128xf32, #tpu.memory_space<vmem>>) attributes {dimension_semantics = [#tpu.dimension_semantics<arbitrary>], iteration_bounds = array<i64: 1>, scalar_prefetch = 0 : i64, scratch_operands = 0 : i64, tpu.core_type = #tpu.core_type<tc>, window_params = [{pipeline_mode = #tpu.pipeline_mode<synchronous>, transform_indices = @transform_0, window_bounds = array<i64: 32, 1024>}, {pipeline_mode = #tpu.pipeline_mode<synchronous>, transform_indices = @transform_1, window_bounds = array<i64: 1024, 128>}, {pipeline_mode = #tpu.pipeline_mode<synchronous>, transform_indices = @transform_2, window_bounds = array<i64: 32, 1>}, {pipeline_mode = #tpu.pipeline_mode<synchronous>, transform_indices = @transform_3, window_bounds = array<i64: 32, 1>}, {pipeline_mode = #tpu.pipeline_mode<synchronous>, transform_indices = @transform_4, window_bounds = array<i64: 32, 128>}]} {
    %c0 = arith.constant 0 : index
    %c0_0 = arith.constant 0 : index
    %0 = vector.load %arg1[%c0, %c0_0] : memref<32x1024xbf16, #tpu.memory_space<vmem>>, vector<32x1024xbf16>
    %c0_1 = arith.constant 0 : index
    %c0_2 = arith.constant 0 : index
    %1 = vector.load %arg2[%c0_1, %c0_2] : memref<1024x128xbf16, #tpu.memory_space<vmem>>, vector<1024x128xbf16>
    %cst = arith.constant dense<0.000000e+00> : vector<32x128xf32>
    %2 = tpu.matmul %0, %1, %cst {dimension_numbers = #tpu.dot_dimension_numbers<[1], [0], [0], [1], [0, 0, 1, 1], [], []>} : vector<32x1024xbf16>, vector<1024x128xbf16>, vector<32x128xf32> -> vector<32x128xf32>
    %cst_3 = arith.constant dense<0.000000e+00> : vector<32xf32>
    %3 = vector.multi_reduction <add>, %2, %cst_3 [1] : vector<32x128xf32> to vector<32xf32>
    %4 = vector.shape_cast %3 : vector<32xf32> to vector<32x1xf32>
    %cst_4 = arith.constant 1.280000e+02 : f32
    %5 = vector.broadcast %cst_4 : f32 to vector<32x1xf32>
    %6 = arith.divf %4, %5 : vector<32x1xf32>
    %7 = arith.mulf %2, %2 : vector<32x128xf32>
    %cst_5 = arith.constant dense<0.000000e+00> : vector<32xf32>
    %8 = vector.multi_reduction <add>, %7, %cst_5 [1] : vector<32x128xf32> to vector<32xf32>
    %9 = vector.shape_cast %8 : vector<32xf32> to vector<32x1xf32>
    %cst_6 = arith.constant 1.280000e+02 : f32
    %10 = vector.broadcast %cst_6 : f32 to vector<32x1xf32>
    %11 = arith.divf %9, %10 : vector<32x1xf32>
    %12 = arith.mulf %6, %6 : vector<32x1xf32>
    %13 = arith.subf %11, %12 : vector<32x1xf32>
    %cst_7 = arith.constant 0.000000e+00 : f32
    %14 = vector.broadcast %cst_7 : f32 to vector<32x1xf32>
    %15 = arith.maximumf %13, %14 : vector<32x1xf32>
    %c0_8 = arith.constant 0 : index
    %c0_9 = arith.constant 0 : index
    %16 = vector.load %arg3[%c0_8, %c0_9] : memref<32x1xf32, #tpu.memory_space<vmem>>, vector<32x1xf32>
    %cst_10 = arith.constant 9.99999974E-6 : f32
    %17 = vector.broadcast %cst_10 : f32 to vector<32x1xf32>
    %18 = arith.addf %15, %17 : vector<32x1xf32>
    %19 = math.rsqrt %18 : vector<32x1xf32>
    %20 = arith.mulf %16, %19 : vector<32x1xf32>
    %c0_11 = arith.constant 0 : index
    %c0_12 = arith.constant 0 : index
    %21 = vector.load %arg4[%c0_11, %c0_12] : memref<32x1xf32, #tpu.memory_space<vmem>>, vector<32x1xf32>
    %22 = arith.mulf %6, %20 : vector<32x1xf32>
    %23 = arith.subf %21, %22 : vector<32x1xf32>
    %24 = vector.broadcast %20 : vector<32x1xf32> to vector<32x128xf32>
    %25 = arith.mulf %2, %24 : vector<32x128xf32>
    %26 = vector.broadcast %23 : vector<32x1xf32> to vector<32x128xf32>
    %27 = arith.addf %25, %26 : vector<32x128xf32>
    %cst_13 = arith.constant 0.000000e+00 : f32
    %28 = vector.broadcast %cst_13 : f32 to vector<32x128xf32>
    %29 = arith.maximumf %27, %28 : vector<32x128xf32>
    %c0_14 = arith.constant 0 : index
    %c0_15 = arith.constant 0 : index
    %30 = vector.load %arg5[%c0_14, %c0_15] : memref<32x128xf32, #tpu.memory_space<vmem>>, vector<32x128xf32>
    tpu.vector_store %arg5[%c0_14, %c0_15], %29 {strides = array<i32>} : memref<32x128xf32, #tpu.memory_space<vmem>>, vector<32x128xf32>,
    return
  }
  func.func @transform_0(%arg0: i32) -> (i32, i32) {
    %c0_i32 = arith.constant 0 : i32
    %c0_i32_0 = arith.constant 0 : i32
    %c0_i32_1 = arith.constant 0 : i32
    return %c0_i32, %c0_i32_0 : i32, i32
  }
  func.func @transform_1(%arg0: i32) -> (i32, i32) {
    %c0_i32 = arith.constant 0 : i32
    %c0_i32_0 = arith.constant 0 : i32
    %c0_i32_1 = arith.constant 0 : i32
    return %c0_i32, %c0_i32_0 : i32, i32
  }
  func.func @transform_2(%arg0: i32) -> (i32, i32) {
    %c0_i32 = arith.constant 0 : i32
    %c0_i32_0 = arith.constant 0 : i32
    %c0_i32_1 = arith.constant 0 : i32
    return %c0_i32, %c0_i32_0 : i32, i32
  }
  func.func @transform_3(%arg0: i32) -> (i32, i32) {
    %c0_i32 = arith.constant 0 : i32
    %c0_i32_0 = arith.constant 0 : i32
    %c0_i32_1 = arith.constant 0 : i32
    return %c0_i32, %c0_i32_0 : i32, i32
  }
  func.func @transform_4(%arg0: i32) -> (i32, i32) {
    %c0_i32 = arith.constant 0 : i32
    %c0_i32_0 = arith.constant 0 : i32
    %c0_i32_1 = arith.constant 0 : i32
    return %c0_i32, %c0_i32_0 : i32, i32
  }
}

module attributes {stable_mosaic.version = 11 : i64} {
  func.func @_convbn_relu_kernel(%arg0: i32, %arg1: memref<16x512xbf16, #tpu.memory_space<vmem>>, %arg2: memref<512x512xbf16, #tpu.memory_space<vmem>>, %arg3: memref<16x1xf32, #tpu.memory_space<vmem>>, %arg4: memref<16x1xf32, #tpu.memory_space<vmem>>, %arg5: memref<16x512xf32, #tpu.memory_space<vmem>>) attributes {dimension_semantics = [#tpu.dimension_semantics<arbitrary>], iteration_bounds = array<i64: 1>, scalar_prefetch = 0 : i64, scratch_operands = 0 : i64, tpu.core_type = #tpu.core_type<tc>, window_params = [{pipeline_mode = #tpu.pipeline_mode<synchronous>, transform_indices = @transform_0, window_bounds = array<i64: 16, 512>}, {pipeline_mode = #tpu.pipeline_mode<synchronous>, transform_indices = @transform_1, window_bounds = array<i64: 512, 512>}, {pipeline_mode = #tpu.pipeline_mode<synchronous>, transform_indices = @transform_2, window_bounds = array<i64: 16, 1>}, {pipeline_mode = #tpu.pipeline_mode<synchronous>, transform_indices = @transform_3, window_bounds = array<i64: 16, 1>}, {pipeline_mode = #tpu.pipeline_mode<synchronous>, transform_indices = @transform_4, window_bounds = array<i64: 16, 512>}]} {
    %c0 = arith.constant 0 : index
    %c0_0 = arith.constant 0 : index
    %0 = vector.load %arg1[%c0, %c0_0] : memref<16x512xbf16, #tpu.memory_space<vmem>>, vector<16x512xbf16>
    %c0_1 = arith.constant 0 : index
    %c0_2 = arith.constant 0 : index
    %1 = vector.load %arg2[%c0_1, %c0_2] : memref<512x512xbf16, #tpu.memory_space<vmem>>, vector<512x512xbf16>
    %cst = arith.constant dense<0.000000e+00> : vector<16x512xf32>
    %2 = tpu.matmul %0, %1, %cst {dimension_numbers = #tpu.dot_dimension_numbers<[1], [0], [0], [1], [0, 0, 1, 1], [], []>} : vector<16x512xbf16>, vector<512x512xbf16>, vector<16x512xf32> -> vector<16x512xf32>
    %cst_3 = arith.constant dense<0.000000e+00> : vector<16xf32>
    %3 = vector.multi_reduction <add>, %2, %cst_3 [1] : vector<16x512xf32> to vector<16xf32>
    %4 = vector.shape_cast %3 : vector<16xf32> to vector<16x1xf32>
    %cst_4 = arith.constant 5.120000e+02 : f32
    %5 = vector.broadcast %cst_4 : f32 to vector<16x1xf32>
    %6 = arith.divf %4, %5 : vector<16x1xf32>
    %7 = arith.mulf %2, %2 : vector<16x512xf32>
    %cst_5 = arith.constant dense<0.000000e+00> : vector<16xf32>
    %8 = vector.multi_reduction <add>, %7, %cst_5 [1] : vector<16x512xf32> to vector<16xf32>
    %9 = vector.shape_cast %8 : vector<16xf32> to vector<16x1xf32>
    %cst_6 = arith.constant 5.120000e+02 : f32
    %10 = vector.broadcast %cst_6 : f32 to vector<16x1xf32>
    %11 = arith.divf %9, %10 : vector<16x1xf32>
    %12 = arith.mulf %6, %6 : vector<16x1xf32>
    %13 = arith.subf %11, %12 : vector<16x1xf32>
    %cst_7 = arith.constant 0.000000e+00 : f32
    %14 = vector.broadcast %cst_7 : f32 to vector<16x1xf32>
    %15 = arith.maximumf %13, %14 : vector<16x1xf32>
    %c0_8 = arith.constant 0 : index
    %c0_9 = arith.constant 0 : index
    %16 = vector.load %arg3[%c0_8, %c0_9] : memref<16x1xf32, #tpu.memory_space<vmem>>, vector<16x1xf32>
    %cst_10 = arith.constant 9.99999974E-6 : f32
    %17 = vector.broadcast %cst_10 : f32 to vector<16x1xf32>
    %18 = arith.addf %15, %17 : vector<16x1xf32>
    %19 = math.rsqrt %18 : vector<16x1xf32>
    %20 = arith.mulf %16, %19 : vector<16x1xf32>
    %c0_11 = arith.constant 0 : index
    %c0_12 = arith.constant 0 : index
    %21 = vector.load %arg4[%c0_11, %c0_12] : memref<16x1xf32, #tpu.memory_space<vmem>>, vector<16x1xf32>
    %22 = arith.mulf %6, %20 : vector<16x1xf32>
    %23 = arith.subf %21, %22 : vector<16x1xf32>
    %24 = vector.broadcast %20 : vector<16x1xf32> to vector<16x512xf32>
    %25 = arith.mulf %2, %24 : vector<16x512xf32>
    %26 = vector.broadcast %23 : vector<16x1xf32> to vector<16x512xf32>
    %27 = arith.addf %25, %26 : vector<16x512xf32>
    %cst_13 = arith.constant 0.000000e+00 : f32
    %28 = vector.broadcast %cst_13 : f32 to vector<16x512xf32>
    %29 = arith.maximumf %27, %28 : vector<16x512xf32>
    %c0_14 = arith.constant 0 : index
    %c0_15 = arith.constant 0 : index
    %30 = vector.load %arg5[%c0_14, %c0_15] : memref<16x512xf32, #tpu.memory_space<vmem>>, vector<16x512xf32>
    tpu.vector_store %arg5[%c0_14, %c0_15], %29 {strides = array<i32>} : memref<16x512xf32, #tpu.memory_space<vmem>>, vector<16x512xf32>,
    return
  }
  func.func @transform_0(%arg0: i32) -> (i32, i32) {
    %c0_i32 = arith.constant 0 : i32
    %c0_i32_0 = arith.constant 0 : i32
    %c0_i32_1 = arith.constant 0 : i32
    return %c0_i32, %c0_i32_0 : i32, i32
  }
  func.func @transform_1(%arg0: i32) -> (i32, i32) {
    %c0_i32 = arith.constant 0 : i32
    %c0_i32_0 = arith.constant 0 : i32
    %c0_i32_1 = arith.constant 0 : i32
    return %c0_i32, %c0_i32_0 : i32, i32
  }
  func.func @transform_2(%arg0: i32) -> (i32, i32) {
    %c0_i32 = arith.constant 0 : i32
    %c0_i32_0 = arith.constant 0 : i32
    %c0_i32_1 = arith.constant 0 : i32
    return %c0_i32, %c0_i32_0 : i32, i32
  }
  func.func @transform_3(%arg0: i32) -> (i32, i32) {
    %c0_i32 = arith.constant 0 : i32
    %c0_i32_0 = arith.constant 0 : i32
    %c0_i32_1 = arith.constant 0 : i32
    return %c0_i32, %c0_i32_0 : i32, i32
  }
  func.func @transform_4(%arg0: i32) -> (i32, i32) {
    %c0_i32 = arith.constant 0 : i32
    %c0_i32_0 = arith.constant 0 : i32
    %c0_i32_1 = arith.constant 0 : i32
    return %c0_i32, %c0_i32_0 : i32, i32
  }
}

module attributes {stable_mosaic.version = 11 : i64} {
  func.func @_convbn_relu_kernel(%arg0: i32, %arg1: memref<8x256xbf16, #tpu.memory_space<vmem>>, %arg2: memref<256x2048xbf16, #tpu.memory_space<vmem>>, %arg3: memref<8x1xf32, #tpu.memory_space<vmem>>, %arg4: memref<8x1xf32, #tpu.memory_space<vmem>>, %arg5: memref<8x2048xf32, #tpu.memory_space<vmem>>) attributes {dimension_semantics = [#tpu.dimension_semantics<arbitrary>], iteration_bounds = array<i64: 1>, scalar_prefetch = 0 : i64, scratch_operands = 0 : i64, tpu.core_type = #tpu.core_type<tc>, window_params = [{pipeline_mode = #tpu.pipeline_mode<synchronous>, transform_indices = @transform_0, window_bounds = array<i64: 8, 256>}, {pipeline_mode = #tpu.pipeline_mode<synchronous>, transform_indices = @transform_1, window_bounds = array<i64: 256, 2048>}, {pipeline_mode = #tpu.pipeline_mode<synchronous>, transform_indices = @transform_2, window_bounds = array<i64: 8, 1>}, {pipeline_mode = #tpu.pipeline_mode<synchronous>, transform_indices = @transform_3, window_bounds = array<i64: 8, 1>}, {pipeline_mode = #tpu.pipeline_mode<synchronous>, transform_indices = @transform_4, window_bounds = array<i64: 8, 2048>}]} {
    %c0 = arith.constant 0 : index
    %c0_0 = arith.constant 0 : index
    %0 = vector.load %arg1[%c0, %c0_0] : memref<8x256xbf16, #tpu.memory_space<vmem>>, vector<8x256xbf16>
    %c0_1 = arith.constant 0 : index
    %c0_2 = arith.constant 0 : index
    %1 = vector.load %arg2[%c0_1, %c0_2] : memref<256x2048xbf16, #tpu.memory_space<vmem>>, vector<256x2048xbf16>
    %cst = arith.constant dense<0.000000e+00> : vector<8x2048xf32>
    %2 = tpu.matmul %0, %1, %cst {dimension_numbers = #tpu.dot_dimension_numbers<[1], [0], [0], [1], [0, 0, 1, 1], [], []>} : vector<8x256xbf16>, vector<256x2048xbf16>, vector<8x2048xf32> -> vector<8x2048xf32>
    %cst_3 = arith.constant dense<0.000000e+00> : vector<8xf32>
    %3 = vector.multi_reduction <add>, %2, %cst_3 [1] : vector<8x2048xf32> to vector<8xf32>
    %4 = vector.shape_cast %3 : vector<8xf32> to vector<8x1xf32>
    %cst_4 = arith.constant 2.048000e+03 : f32
    %5 = vector.broadcast %cst_4 : f32 to vector<8x1xf32>
    %6 = arith.divf %4, %5 : vector<8x1xf32>
    %7 = arith.mulf %2, %2 : vector<8x2048xf32>
    %cst_5 = arith.constant dense<0.000000e+00> : vector<8xf32>
    %8 = vector.multi_reduction <add>, %7, %cst_5 [1] : vector<8x2048xf32> to vector<8xf32>
    %9 = vector.shape_cast %8 : vector<8xf32> to vector<8x1xf32>
    %cst_6 = arith.constant 2.048000e+03 : f32
    %10 = vector.broadcast %cst_6 : f32 to vector<8x1xf32>
    %11 = arith.divf %9, %10 : vector<8x1xf32>
    %12 = arith.mulf %6, %6 : vector<8x1xf32>
    %13 = arith.subf %11, %12 : vector<8x1xf32>
    %cst_7 = arith.constant 0.000000e+00 : f32
    %14 = vector.broadcast %cst_7 : f32 to vector<8x1xf32>
    %15 = arith.maximumf %13, %14 : vector<8x1xf32>
    %c0_8 = arith.constant 0 : index
    %c0_9 = arith.constant 0 : index
    %16 = vector.load %arg3[%c0_8, %c0_9] : memref<8x1xf32, #tpu.memory_space<vmem>>, vector<8x1xf32>
    %cst_10 = arith.constant 9.99999974E-6 : f32
    %17 = vector.broadcast %cst_10 : f32 to vector<8x1xf32>
    %18 = arith.addf %15, %17 : vector<8x1xf32>
    %19 = math.rsqrt %18 : vector<8x1xf32>
    %20 = arith.mulf %16, %19 : vector<8x1xf32>
    %c0_11 = arith.constant 0 : index
    %c0_12 = arith.constant 0 : index
    %21 = vector.load %arg4[%c0_11, %c0_12] : memref<8x1xf32, #tpu.memory_space<vmem>>, vector<8x1xf32>
    %22 = arith.mulf %6, %20 : vector<8x1xf32>
    %23 = arith.subf %21, %22 : vector<8x1xf32>
    %24 = vector.broadcast %20 : vector<8x1xf32> to vector<8x2048xf32>
    %25 = arith.mulf %2, %24 : vector<8x2048xf32>
    %26 = vector.broadcast %23 : vector<8x1xf32> to vector<8x2048xf32>
    %27 = arith.addf %25, %26 : vector<8x2048xf32>
    %cst_13 = arith.constant 0.000000e+00 : f32
    %28 = vector.broadcast %cst_13 : f32 to vector<8x2048xf32>
    %29 = arith.maximumf %27, %28 : vector<8x2048xf32>
    %c0_14 = arith.constant 0 : index
    %c0_15 = arith.constant 0 : index
    %30 = vector.load %arg5[%c0_14, %c0_15] : memref<8x2048xf32, #tpu.memory_space<vmem>>, vector<8x2048xf32>
    tpu.vector_store %arg5[%c0_14, %c0_15], %29 {strides = array<i32>} : memref<8x2048xf32, #tpu.memory_space<vmem>>, vector<8x2048xf32>,
    return
  }
  func.func @transform_0(%arg0: i32) -> (i32, i32) {
    %c0_i32 = arith.constant 0 : i32
    %c0_i32_0 = arith.constant 0 : i32
    %c0_i32_1 = arith.constant 0 : i32
    return %c0_i32, %c0_i32_0 : i32, i32
  }
  func.func @transform_1(%arg0: i32) -> (i32, i32) {
    %c0_i32 = arith.constant 0 : i32
    %c0_i32_0 = arith.constant 0 : i32
    %c0_i32_1 = arith.constant 0 : i32
    return %c0_i32, %c0_i32_0 : i32, i32
  }
  func.func @transform_2(%arg0: i32) -> (i32, i32) {
    %c0_i32 = arith.constant 0 : i32
    %c0_i32_0 = arith.constant 0 : i32
    %c0_i32_1 = arith.constant 0 : i32
    return %c0_i32, %c0_i32_0 : i32, i32
  }
  func.func @transform_3(%arg0: i32) -> (i32, i32) {
    %c0_i32 = arith.constant 0 : i32
    %c0_i32_0 = arith.constant 0 : i32
    %c0_i32_1 = arith.constant 0 : i32
    return %c0_i32, %c0_i32_0 : i32, i32
  }
  func.func @transform_4(%arg0: i32) -> (i32, i32) {
    %c0_i32 = arith.constant 0 : i32
    %c0_i32_0 = arith.constant 0 : i32
    %c0_i32_1 = arith.constant 0 : i32
    return %c0_i32, %c0_i32_0 : i32, i32
  }
}

module attributes {stable_mosaic.version = 11 : i64} {
  func.func @_conv_tanh_kernel(%arg0: i32, %arg1: memref<3x128xbf16, #tpu.memory_space<vmem>>, %arg2: memref<128x2048xbf16, #tpu.memory_space<vmem>>, %arg3: memref<3x2048xf32, #tpu.memory_space<vmem>>) attributes {dimension_semantics = [#tpu.dimension_semantics<parallel>], iteration_bounds = array<i64: 4>, scalar_prefetch = 0 : i64, scratch_operands = 0 : i64, tpu.core_type = #tpu.core_type<tc>, window_params = [{pipeline_mode = #tpu.pipeline_mode<synchronous>, transform_indices = @transform_0, window_bounds = array<i64: 3, 128>}, {transform_indices = @transform_1, window_bounds = array<i64: 128, 2048>}, {transform_indices = @transform_2, window_bounds = array<i64: 3, 2048>}]} {
    %c0 = arith.constant 0 : index
    %c0_0 = arith.constant 0 : index
    %0 = vector.load %arg1[%c0, %c0_0] : memref<3x128xbf16, #tpu.memory_space<vmem>>, vector<3x128xbf16>
    %c0_1 = arith.constant 0 : index
    %c0_2 = arith.constant 0 : index
    %1 = vector.load %arg2[%c0_1, %c0_2] : memref<128x2048xbf16, #tpu.memory_space<vmem>>, vector<128x2048xbf16>
    %cst = arith.constant dense<0.000000e+00> : vector<3x2048xf32>
    %2 = tpu.matmul %0, %1, %cst {dimension_numbers = #tpu.dot_dimension_numbers<[1], [0], [0], [1], [0, 0, 1, 1], [], []>} : vector<3x128xbf16>, vector<128x2048xbf16>, vector<3x2048xf32> -> vector<3x2048xf32>
    %3 = math.tanh %2 : vector<3x2048xf32>
    %c0_3 = arith.constant 0 : index
    %c0_4 = arith.constant 0 : index
    %4 = vector.load %arg3[%c0_3, %c0_4] : memref<3x2048xf32, #tpu.memory_space<vmem>>, vector<3x2048xf32>
    tpu.vector_store %arg3[%c0_3, %c0_4], %3 {strides = array<i32>} : memref<3x2048xf32, #tpu.memory_space<vmem>>, vector<3x2048xf32>,
    return
  }
  func.func @transform_0(%arg0: i32) -> (i32, i32) {
    %c0_i32 = arith.constant 0 : i32
    %c0_i32_0 = arith.constant 0 : i32
    %c0_i32_1 = arith.constant 0 : i32
    return %c0_i32, %c0_i32_0 : i32, i32
  }
  func.func @transform_1(%arg0: i32) -> (i32, i32) {
    %c0_i32 = arith.constant 0 : i32
    %c0_i32_0 = arith.constant 0 : i32
    return %c0_i32, %arg0 : i32, i32
  }
  func.func @transform_2(%arg0: i32) -> (i32, i32) {
    %c0_i32 = arith.constant 0 : i32
    %c0_i32_0 = arith.constant 0 : i32
    return %c0_i32, %arg0 : i32, i32
  }
}

</mosaic_0001>

<bundles_post_ra>
// kernel: generator_forward.5
= control target key start
LH: loop header
LB: loop body
LE: loop exit
PB: predicated region body
PF: predicated region fallthrough
CT: control target
= control target key end

     0   :  { %vm259_vm0 = vcmask 261120   ;;  %s933_s1 = inlined_call_operand.vmem [shape: bf16[256,32], index: 1, kind: input, shape index: {}]   ;;  %s934_s0 = inlined_call_operand.vmem [shape: bf16[64,256], index: 0, kind: input, shape index: {}]   ;;  %s935_s2 = inlined_call_operand.vmem [shape: f32[64,1], index: 2, kind: input, shape index: {}]   ;;  %s936_s3 = inlined_call_operand.vmem [shape: f32[64,1], index: 3, kind: input, shape index: {}]   ;;  %s937_s4 = inlined_call_operand.vmem [shape: f32[64,32], index: 4, kind: output, shape index: {}]  }
   0x1   :  { %v612_v0 = vld [vmem:[%s933_s1 + $0x78] sm:$0xff]   ;;  %v614_v2 = vld [vmem:[%s933_s1 + $0x70] sm:$0xff]   ;;  %v616_v4 = vld [vmem:[%s933_s1 + $0x68] sm:$0xff]  }
   0x2   :  { %v613_v1 = vld [vmem:[%s933_s1 + $0x38] sm:$0xff]   ;;  %553 = vmatprep.subr.bf16.mxu0 %v612_v0  ;;  %593 = vmatprep.subr.bf16.mxu1 %v612_v0  ;;  %v615_v3 = vld [vmem:[%s933_s1 + $0x30] sm:$0xff]   ;;  %v617_v5 = vld [vmem:[%s933_s1 + $0x28] sm:$0xff]  }
   0x3   :  { %554 = vmatpush3.bf16.msra.mxu0 %v613_v1  ;;  %601 = vmatpush3.bf16.msra.mxu1 %v613_v1  ;;  %v618_v6 = vld [vmem:[%s933_s1 + $0x60] sm:$0xff]   ;;  %v620_v8 = vld [vmem:[%s933_s1 + $0x58] sm:$0xff]   ;;  %v622_v10 = vld [vmem:[%s933_s1 + $0x50] sm:$0xff]  }
   0x4   :  { %555 = vmatprep.subr.bf16.mxu0 %v614_v2  ;;  %594 = vmatprep.subr.bf16.mxu1 %v614_v2  ;;  %v619_v7 = vld [vmem:[%s933_s1 + $0x20] sm:$0xff]   ;;  %v621_v9 = vld [vmem:[%s933_s1 + $0x18] sm:$0xff]   ;;  %v623_v13 = vld [vmem:[%s933_s1 + $0x10] sm:$0xff]  }
   0x5   :  { %v630_v11 = vld [vmem:[%s934_s0 + $0x4] ss:$8 sps:$4 sm:$0xff]   ;;  %v628_v18 = vld [vmem:[%s934_s0] ss:$8 sps:$4 sm:$0xff]   ;;  %v634_v20 = vld [vmem:[%s934_s0 + $0x14] ss:$8 sps:$4 sm:$0xff]  }
   0x6   :  { %v633_v12 = vld [vmem:[%s934_s0 + $0x24] ss:$8 sps:$4 sm:$0xff]   ;;  %226 = vmatprep.mubr.bf16.mxu0 %v630_v11  ;;  %v631_v19 = vld [vmem:[%s934_s0 + $0x20] ss:$8 sps:$4 sm:$0xff]   ;;  %v637_v21 = vld [vmem:[%s934_s0 + $0x34] ss:$8 sps:$4 sm:$0xff]  }
   0x7   :  { %556 = vmatpush3.bf16.msra.mxu0 %v615_v3  ;;  %602 = vmatpush3.bf16.msra.mxu1 %v615_v3  ;;  %v624_v14 = vld [vmem:[%s933_s1 + $0x48] sm:$0xff]   ;;  %v626_v16 = vld [vmem:[%s933_s1 + $0x40] sm:$0xff]   ;;  %v636_v22 = vld [vmem:[%s934_s0 + $0x10] ss:$8 sps:$4 sm:$0xff]  }
   0x8   :  { %557 = vmatprep.subr.bf16.mxu0 %v616_v4  ;;  %595 = vmatprep.subr.bf16.mxu1 %v616_v4  ;;  %v625_v15 = vld [vmem:[%s933_s1 + $0x8] sm:$0xff]   ;;  %v627_v17 = vld [vmem:[%s933_s1] sm:$0xff]   ;;  %v639_v23 = vld [vmem:[%s934_s0 + $0x30] ss:$8 sps:$4 sm:$0xff]  }
   0x9   :  { %242 = vmatprep.mubr.bf16.mxu1 %v633_v12 }
   0xb   :  { %558 = vmatpush3.bf16.msra.mxu0 %v617_v5  ;;  %603 = vmatpush3.bf16.msra.mxu1 %v617_v5 }
   0xc   :  { %559 = vmatprep.subr.bf16.mxu0 %v618_v6  ;;  %596 = vmatprep.subr.bf16.mxu1 %v618_v6 }
   0xf   :  { %560 = vmatpush3.bf16.msra.mxu0 %v619_v7  ;;  %604 = vmatpush3.bf16.msra.mxu1 %v619_v7 }
  0x10   :  { %561 = vmatprep.subr.bf16.mxu0 %v620_v8  ;;  %597 = vmatprep.subr.bf16.mxu1 %v620_v8  ;;  %v656_v8 = vmov 0  }
  0x11   :  { %610 = vset.pattern.permute.xlu0 %v656_v8  ;;  %611 = vset.pattern.permute.xlu1 %v656_v8 }
  0x13   :  { %562 = vmatpush3.bf16.msra.mxu0 %v621_v9  ;;  %605 = vmatpush3.bf16.msra.mxu1 %v621_v9 }
  0x14   :  { %563 = vmatprep.subr.bf16.mxu0 %v622_v10  ;;  %598 = vmatprep.subr.bf16.mxu1 %v622_v10 }
  0x17   :  { %564 = vmatpush3.bf16.msra.mxu0 %v623_v13  ;;  %606 = vmatpush3.bf16.msra.mxu1 %v623_v13 }
  0x18   :  { %565 = vmatprep.subr.bf16.mxu0 %v624_v14  ;;  %599 = vmatprep.subr.bf16.mxu1 %v624_v14 }
  0x1b   :  { %566 = vmatpush3.bf16.msra.mxu0 %v625_v15  ;;  %607 = vmatpush3.bf16.msra.mxu1 %v625_v15 }
  0x1c   :  { %567 = vmatprep.subr.bf16.mxu0 %v626_v16  ;;  %600 = vmatprep.subr.bf16.mxu1 %v626_v16 }
  0x1f   :  { %568 = vmatpush3.bf16.msra.mxu0 %v627_v17  ;;  %608 = vmatpush3.bf16.msra.mxu1 %v627_v17 }
  0x22   :  { %227 = vmatmul.mubr.bf16.vlgmr.msra.gmra.mxu0 %v628_v18  ;;  %243 = vmatmul.mubr.bf16.vlgmr.msra.gmra.mxu1 %v631_v19 }
  0x23   :  { %234 = vmatprep.mubr.bf16.mxu0 %v634_v20  ;;  %250 = vmatprep.mubr.bf16.mxu1 %v637_v21 }
  0x2a   :  { %235 = vmatmul.mubr.bf16.gmra.mxu0 %v636_v22  ;;  %251 = vmatmul.mubr.bf16.gmra.mxu1 %v639_v23 }
  0xe2   :  { %v569_v24 = vpop.f32.mrf.mxu0  ;;  %v581_v25 = vpop.f32.mrf.mxu1 }
  0xe4   :  { %v570_v26 = vpop.f32.mrf.mxu0  ;;  %v582_v27 = vpop.f32.mrf.mxu1 }
  0xe5   :  { %v754_v28 = vadd.f32 %v570_v26, %v569_v24  ;;  %v756_v31 = vadd.f32 %v582_v27, %v581_v25 }
  0xe6   :  { %v572_v29 = vpop.f32.mrf.mxu0  ;;  %v584_v30 = vpop.f32.mrf.mxu1 }
  0xe7   :  { %v260_v32 = vsel %vm259_vm0, %v754_v28, 0.0  ;;  %v272_v40 = vsel %vm259_vm0, %v756_v31, 0.0  ;;  %v293_v42 = vmul.f32 %v754_v28, %v754_v28  ;;  %v297_v49 = vmul.f32 %v756_v31, %v756_v31 }
  0xe8   :  { %v573_v33 = vpop.f32.mrf.mxu0  ;;  %v585_v34 = vpop.f32.mrf.mxu1  ;;  %261 = vadd.xlane.f32.xlu0 %v260_v32 }
  0xe9   :  { %v760_v35 = vadd.f32 %v573_v33, %v572_v29  ;;  %v762_v36 = vadd.f32 %v585_v34, %v584_v30  ;;  %v301_v47 = vsel %vm259_vm0, %v293_v42, 0.0  ;;  %v313_v54 = vsel %vm259_vm0, %v297_v49, 0.0 }
  0xea   :  { %v575_v37 = vpop.f32.mrf.mxu0  ;;  %v587_v38 = vpop.f32.mrf.mxu1 }
  0xeb   :  { %v275_v39 = vsel %vm259_vm0, %v762_v36, 0.0  ;;  %v294_v41 = vmul.f32 %v760_v35, %v760_v35  ;;  %v298_v48 = vmul.f32 %v762_v36, %v762_v36  ;;  %v263_v59 = vsel %vm259_vm0, %v760_v35, 0.0 }
  0xec   :  { %276 = vadd.xlane.f32.xlu1 %v275_v39  ;;  %273 = vadd.xlane.f32.xlu0 %v272_v40  ;;  %v576_v43 = vpop.f32.mrf.mxu0  ;;  %v588_v45 = vpop.f32.mrf.mxu1 }
  0xed   :  { %v304_v46 = vsel %vm259_vm0, %v294_v41, 0.0  ;;  %v778_v50 = vadd.f32 %v576_v43, %v575_v37  ;;  %v316_v53 = vsel %vm259_vm0, %v298_v48, 0.0  ;;  %v784_v56 = vadd.f32 %v588_v45, %v587_v38 }
  0xee   :  { %v578_v44 = vpop.f32.mrf.mxu0  ;;  %v590_v52 = vpop.f32.mrf.mxu1 }
  0xef   :  { %v266_v57 = vsel %vm259_vm0, %v778_v50, 0.0  ;;  %v278_v62 = vsel %vm259_vm0, %v784_v56, 0.0  ;;  %v295_v63 = vmul.f32 %v778_v50, %v778_v50  ;;  %v299_v3 = vmul.f32 %v784_v56, %v784_v56 }
  0xf0   :  { %305 = vadd.xlane.f32.xlu1 %v304_v46  ;;  %302 = vadd.xlane.f32.xlu0 %v301_v47  ;;  %v579_v51 = vpop.f32.mrf.mxu0  ;;  %v591_v58 = vpop.f32.mrf.mxu1 }
  0xf1   :  { %v782_v55 = vadd.f32 %v579_v51, %v578_v44  ;;  %v790_v60 = vadd.f32 %v591_v58, %v590_v52  ;;  %v307_v1 = vsel %vm259_vm0, %v295_v63, 0.0  ;;  %v319_v5 = vsel %vm259_vm0, %v299_v3, 0.0 }
  0xf3   :  { %v269_v61 = vsel %vm259_vm0, %v782_v55, 0.0  ;;  %v281_v0 = vsel %vm259_vm0, %v790_v60, 0.0  ;;  %v296_v2 = vmul.f32 %v782_v55, %v782_v55  ;;  %v300_v6 = vmul.f32 %v790_v60, %v790_v60 }
  0xf4   :  { %317 = vadd.xlane.f32.xlu1 %v316_v53  ;;  %314 = vadd.xlane.f32.xlu0 %v313_v54 }
  0xf5   :  { %v310_v4 = vsel %vm259_vm0, %v296_v2, 0.0  ;;  %v322_v7 = vsel %vm259_vm0, %v300_v6, 0.0 }
  0xf8   :  { %267 = vadd.xlane.f32.xlu1 %v266_v57  ;;  %264 = vadd.xlane.f32.xlu0 %v263_v59 }
  0xfc   :  { %270 = vadd.xlane.f32.xlu1 %v269_v61  ;;  %279 = vadd.xlane.f32.xlu0 %v278_v62  ;;  %v357_v62 = vld [vmem:[%s935_s2] sm:$0xff] }
 0x100   :  { %282 = vadd.xlane.f32.xlu1 %v281_v0  ;;  %308 = vadd.xlane.f32.xlu0 %v307_v1 }
 0x104   :  { %311 = vadd.xlane.f32.xlu1 %v310_v4  ;;  %320 = vadd.xlane.f32.xlu0 %v319_v5 }
 0x108   :  { %323 = vadd.xlane.f32.xlu1 %v322_v7 }
 0x171   :  { %v262_v9 = vpop.xlane.xlu0 %261 }
 0x172   :  { %v810_v12 = vmul.f32 0.03125, %v262_v9 }
 0x174   :  { %v333_v16 = vmul.f32 %v810_v12, %v810_v12 }
 0x175   :  { %v277_v10 = vpop.xlane.xlu1 %276  ;;  %v274_v11 = vpop.xlane.xlu0 %273 }
 0x176   :  { %v812_v13 = vmul.f32 0.03125, %v277_v10  ;;  %v816_v17 = vmul.f32 0.03125, %v274_v11  ;;  %v361_v11 = vld [vmem:[%s935_s2 + $0x20] sm:$0xff] }
 0x178   :  { %v338_v20 = vmul.f32 %v812_v13, %v812_v13  ;;  %v337_v23 = vmul.f32 %v816_v17, %v816_v17 }
 0x179   :  { %v306_v14 = vpop.xlane.xlu1 %305  ;;  %v303_v15 = vpop.xlane.xlu0 %302 }
 0x17a   :  { %v325_v18 = vmul.f32 0.03125, %v303_v15  ;;  %v326_v40 = vmul.f32 0.03125, %v306_v14 }
 0x17c   :  { %v341_v19 = vsub.f32 %v325_v18, %v333_v16 }
 0x17d   :  { %v318_v21 = vpop.xlane.xlu1 %317  ;;  %v315_v22 = vpop.xlane.xlu0 %314 }
 0x17e   :  { %v349_v24 = vmax.f32 %v341_v19, 0.0  ;;  %v330_v25 = vmul.f32 0.03125, %v318_v21  ;;  %v329_v26 = vmul.f32 0.03125, %v315_v22 }
 0x180   :  { %v365_v27 = vadd.f32 1e-05, %v349_v24  ;;  %v346_v29 = vsub.f32 %v330_v25, %v338_v20  ;;  %v345_v30 = vsub.f32 %v329_v26, %v337_v23  ;;  %v358_v25 = vld [vmem:[%s935_s2 + $0x8] sm:$0xff] }
 0x181   :  { %v268_v32 = vpop.xlane.xlu1 %267  ;;  %v265_v33 = vpop.xlane.xlu0 %264 }
 0x182   :  { %640 = vrsqrt.f32 %v365_v27  ;;  %v353_v34 = vmax.f32 %v345_v30, 0.0  ;;  %v354_v37 = vmax.f32 %v346_v29, 0.0  ;;  %v286_v38 = vmul.f32 0.03125, %v265_v33  ;;  %v362_v27 = vld [vmem:[%s935_s2 + $0x28] sm:$0xff] }
 0x183   :  { %v822_v44 = vmul.f32 0.03125, %v268_v32 }
 0x184   :  { %v369_v39 = vadd.f32 1e-05, %v353_v34  ;;  %v334_v41 = vmul.f32 %v286_v38, %v286_v38  ;;  %v370_v45 = vadd.f32 1e-05, %v354_v37  ;;  %v390_v34 = vld [vmem:[%s936_s3 + $0x8] sm:$0xff] }
 0x185   :  { %v271_v42 = vpop.xlane.xlu1 %270  ;;  %v280_v43 = vpop.xlane.xlu0 %279  ;;  %v335_v52 = vmul.f32 %v822_v44, %v822_v44 }
 0x186   :  { %642 = vrsqrt.f32 %v369_v39  ;;  %v342_v46 = vsub.f32 %v326_v40, %v334_v41  ;;  %v824_v47 = vmul.f32 0.03125, %v271_v42  ;;  %v828_v54 = vmul.f32 0.03125, %v280_v43  ;;  %v389_v42 = vld [vmem:[%s936_s3] sm:$0xff]  ;;  %v394_v43 = vld [vmem:[%s936_s3 + $0x28] sm:$0xff] }
 0x187   :  { %644 = vrsqrt.f32 %v370_v45 }
 0x188   :  { %v350_v48 = vmax.f32 %v342_v46, 0.0  ;;  %v336_v58 = vmul.f32 %v824_v47, %v824_v47  ;;  %v339_v2 = vmul.f32 %v828_v54, %v828_v54 }
 0x189   :  { %v283_v49 = vpop.xlane.xlu1 %282  ;;  %v309_v51 = vpop.xlane.xlu0 %308 }
 0x18a   :  { %v366_v53 = vadd.f32 1e-05, %v350_v48  ;;  %v327_v57 = vmul.f32 0.03125, %v309_v51  ;;  %v835_v63 = vmul.f32 0.03125, %v283_v49  ;;  %v392_v51 = vld [vmem:[%s936_s3 + $0x18] sm:$0xff] }
 0x18c   :  { %646 = vrsqrt.f32 %v366_v53  ;;  %v343_v3 = vsub.f32 %v327_v57, %v335_v52  ;;  %v340_v8 = vmul.f32 %v835_v63, %v835_v63  ;;  %v364_v52 = vld [vmem:[%s935_s2 + $0x38] sm:$0xff] }
 0x18d   :  { %v312_v59 = vpop.xlane.xlu1 %311  ;;  %v321_v61 = vpop.xlane.xlu0 %320 }
 0x18e   :  { %v328_v0 = vmul.f32 0.03125, %v312_v59  ;;  %v331_v4 = vmul.f32 0.03125, %v321_v61  ;;  %v351_v14 = vmax.f32 %v343_v3, 0.0  ;;  %v359_v61 = vld [vmem:[%s935_s2 + $0x10] sm:$0xff] }
 0x18f   :  { %v641_v1 = vpop.eup %640 }
 0x190   :  { %v344_v5 = vsub.f32 %v328_v0, %v336_v58  ;;  %v381_v6 = vmul.f32 %v641_v1, %v357_v62  ;;  %v347_v15 = vsub.f32 %v331_v4, %v339_v2  ;;  %v367_v22 = vadd.f32 1e-05, %v351_v14  ;;  %v396_v0 = vld [vmem:[%s936_s3 + $0x38] sm:$0xff]  ;;  %v363_v4 = vld [vmem:[%s935_s2 + $0x30] sm:$0xff] }
 0x191   :  { %v324_v7 = vpop.xlane.xlu1 %323 }
 0x192   :  { %v352_v9 = vmax.f32 %v344_v5, 0.0  ;;  %v332_v10 = vmul.f32 0.03125, %v324_v7  ;;  %415 = vperm.xlu0 %610, %v381_v6   ;;  %v355_v23 = vmax.f32 %v347_v15, 0.0  ;;  %v397_v40 = vmul.f32 %v381_v6, %v810_v12  ;;  %v391_v7 = vld [vmem:[%s936_s3 + $0x10] sm:$0xff] }
 0x193   :  { %v643_v16 = vpop.eup %642 }
 0x194   :  { %v368_v18 = vadd.f32 1e-05, %v352_v9  ;;  %v348_v19 = vsub.f32 %v332_v10, %v340_v8  ;;  %v385_v20 = vmul.f32 %v643_v16, %v361_v11  ;;  %v645_v24 = vpop.eup %644  ;;  %v371_v32 = vadd.f32 1e-05, %v355_v23  ;;  %v395_v9 = vld [vmem:[%s936_s3 + $0x30] sm:$0xff] }
 0x195   :  { %v386_v33 = vmul.f32 %v645_v24, %v362_v27  ;;  %v405_v46 = vsub.f32 %v389_v42, %v397_v40 }
 0x196   :  { %648 = vrsqrt.f32 %v368_v18  ;;  %v356_v21 = vmax.f32 %v348_v19, 0.0  ;;  %435 = vperm.xlu1 %611, %v385_v20   ;;  %v401_v12 = vmul.f32 %v385_v20, %v816_v17 }
 0x197   :  { %v402_v41 = vmul.f32 %v386_v33, %v812_v13  ;;  %v393_v13 = vld [vmem:[%s936_s3 + $0x20] sm:$0xff] }
 0x198   :  { %v372_v26 = vadd.f32 1e-05, %v356_v21  ;;  %v409_v58 = vsub.f32 %v393_v13, %v401_v12 }
 0x199   :  { %v647_v29 = vpop.eup %646  ;;  %v410_v48 = vsub.f32 %v394_v43, %v402_v41 }
 0x19a   :  { %650 = vrsqrt.f32 %v372_v26  ;;  %v382_v30 = vmul.f32 %v647_v29, %v358_v25 }
 0x19b   :  { %652 = vrsqrt.f32 %v367_v22 }
 0x19c   :  { %v398_v37 = vmul.f32 %v382_v30, %v286_v38  ;;  %420 = vperm.xlu1 %611, %v382_v30   ;;  %654 = vrsqrt.f32 %v371_v32  ;;  %v360_v38 = vld [vmem:[%s935_s2 + $0x18] sm:$0xff] }
 0x19e   :  { %v406_v39 = vsub.f32 %v390_v34, %v398_v37 }
 0x1a0   :  { %440 = vperm.xlu1 %611, %v386_v33   ;;  %468 = vperm.xlu0 %610, %v406_v39  }
 0x1a3   :  { %v649_v45 = vpop.eup %648 }
 0x1a4   :  { %v384_v49 = vmul.f32 %v649_v45, %v360_v38  ;;  %463 = vperm.xlu1 %611, %v405_v46   ;;  %488 = vperm.xlu0 %610, %v410_v48  }
 0x1a6   :  { %v400_v53 = vmul.f32 %v384_v49, %v824_v47 }
 0x1a7   :  { %v651_v57 = vpop.eup %650 }
 0x1a8   :  { %v653_v17 = vpop.eup %652  ;;  %v408_v59 = vsub.f32 %v392_v51, %v400_v53  ;;  %v388_v62 = vmul.f32 %v651_v57, %v364_v52  ;;  %483 = vperm.xlu1 %611, %v409_v58  }
 0x1a9   :  { %v383_v2 = vmul.f32 %v653_v17, %v359_v61  ;;  %v655_v3 = vpop.eup %654 }
 0x1aa   :  { %478 = vperm.xlu0 %610, %v408_v59   ;;  %v404_v1 = vmul.f32 %v388_v62, %v835_v63  ;;  %v387_v5 = vmul.f32 %v655_v3, %v363_v4 }
 0x1ab   :  { %v399_v6 = vmul.f32 %v383_v2, %v822_v44 }
 0x1ac   :  { %v412_v47 = vsub.f32 %v396_v0, %v404_v1  ;;  %425 = vperm.xlu1 %611, %v383_v2   ;;  %v403_v8 = vmul.f32 %v387_v5, %v828_v54 }
 0x1ad   :  { %v407_v63 = vsub.f32 %v391_v7, %v399_v6 }
 0x1ae   :  { %498 = vperm.xlu0 %610, %v412_v47   ;;  %v411_v10 = vsub.f32 %v395_v9, %v403_v8 }
 0x1b0   :  { %445 = vperm.xlu1 %611, %v387_v5  }
 0x1b4   :  { %430 = vperm.xlu1 %611, %v384_v49  }
 0x1b8   :  { %450 = vperm.xlu1 %611, %v388_v62  }
 0x1bc   :  { %473 = vperm.xlu1 %611, %v407_v63  }
 0x1c0   :  { %493 = vperm.xlu1 %611, %v411_v10  }
 0x20d   :  { %v416_v14 = vpop.permute.xlu0 %415 }
 0x20e   :  { %v453_v20 = vmul.f32 %v754_v28, %v416_v14 }
 0x211   :  { %v436_v11 = vpop.permute.xlu1 %435 }
 0x212   :  { %v457_v26 = vmul.f32 %v756_v31, %v436_v11 }
 0x217   :  { %v421_v15 = vpop.permute.xlu1 %420 }
 0x218   :  { %v454_v44 = vmul.f32 %v760_v35, %v421_v15 }
 0x21b   :  { %v441_v16 = vpop.permute.xlu1 %440  ;;  %v469_v18 = vpop.permute.xlu0 %468 }
 0x21c   :  { %v502_v19 = vadd.f32 %v469_v18, %v454_v44  ;;  %v458_v21 = vmul.f32 %v762_v36, %v441_v16 }
 0x21e   :  { %v510_v54 = vmax.f32 %v502_v19, 0.0 }
 0x21f   :  { %v464_v22 = vpop.permute.xlu1 %463  ;;  %v489_v23 = vpop.permute.xlu0 %488 }
 0x220   :  { %518 = vst.msk [vmem:[%s937_s4 + $0x8] sm:$0xff] %vm259_vm0, %v510_v54  ;;  %v501_v24 = vadd.f32 %v464_v22, %v453_v20  ;;  %v506_v25 = vadd.f32 %v489_v23, %v458_v21 }
 0x222   :  { %v509_v35 = vmax.f32 %v501_v24, 0.0  ;;  %v514_v27 = vmax.f32 %v506_v25, 0.0 }
 0x223   :  { %v484_v29 = vpop.permute.xlu1 %483 }
 0x224   :  { %517 = vst.msk [vmem:[%s937_s4] sm:$0xff] %vm259_vm0, %v509_v35  ;;  %522 = vst.msk [vmem:[%s937_s4 + $0x28] sm:$0xff] %vm259_vm0, %v514_v27  ;;  %v505_v28 = vadd.f32 %v484_v29, %v457_v26 }
 0x225   :  { %v479_v32 = vpop.permute.xlu0 %478 }
 0x226   :  { %v513_v36 = vmax.f32 %v505_v28, 0.0 }
 0x227   :  { %v426_v30 = vpop.permute.xlu1 %425 }
 0x228   :  { %521 = vst.msk [vmem:[%s937_s4 + $0x20] sm:$0xff] %vm259_vm0, %v513_v36  ;;  %v455_v43 = vmul.f32 %v778_v50, %v426_v30 }
 0x229   :  { %v499_v42 = vpop.permute.xlu0 %498 }
 0x22b   :  { %v446_v31 = vpop.permute.xlu1 %445 }
 0x22c   :  { %v459_v12 = vmul.f32 %v784_v56, %v446_v31 }
 0x22f   :  { %v431_v33 = vpop.permute.xlu1 %430 }
 0x230   :  { %v456_v34 = vmul.f32 %v782_v55, %v431_v33 }
 0x232   :  { %v504_v37 = vadd.f32 %v479_v32, %v456_v34 }
 0x233   :  { %v451_v39 = vpop.permute.xlu1 %450 }
 0x234   :  { %v512_v40 = vmax.f32 %v504_v37, 0.0  ;;  %v460_v41 = vmul.f32 %v790_v60, %v451_v39 }
 0x236   :  { %520 = vst.msk [vmem:[%s937_s4 + $0x18] sm:$0xff] %vm259_vm0, %v512_v40  ;;  %v508_v38 = vadd.f32 %v499_v42, %v460_v41 }
 0x237   :  { %v474_v45 = vpop.permute.xlu1 %473 }
 0x238   :  { %v516_v46 = vmax.f32 %v508_v38, 0.0  ;;  %v503_v48 = vadd.f32 %v474_v45, %v455_v43 }
 0x23a   :  { %524 = vst.msk [vmem:[%s937_s4 + $0x38] sm:$0xff] %vm259_vm0, %v516_v46  ;;  %v511_v55 = vmax.f32 %v503_v48, 0.0 }
 0x23b   :  { %v494_v60 = vpop.permute.xlu1 %493 }
 0x23c   :  { %519 = vst.msk [vmem:[%s937_s4 + $0x10] sm:$0xff] %vm259_vm0, %v511_v55  ;;  %v507_v50 = vadd.f32 %v494_v60, %v459_v12 }
 0x23e   :  { %v515_v13 = vmax.f32 %v507_v50, 0.0 }
 0x240   :  { %523 = vst.msk [vmem:[%s937_s4 + $0x30] sm:$0xff] %vm259_vm0, %v515_v13 }

// kernel: generator_forward.6
= control target key start
LH: loop header
LB: loop body
LE: loop exit
PB: predicated region body
PF: predicated region fallthrough
CT: control target
= control target key end

     0   :  { %s1544_s1 = inlined_call_operand.vmem [shape: bf16[1024,128], index: 1, kind: input, shape index: {}]   ;;  %s1545_s0 = inlined_call_operand.vmem [shape: bf16[32,1024], index: 0, kind: input, shape index: {}]   ;;  %s1546_s2 = inlined_call_operand.vmem [shape: f32[32,1], index: 2, kind: input, shape index: {}]   ;;  %s1547_s3 = inlined_call_operand.vmem [shape: f32[32,1], index: 3, kind: input, shape index: {}]   ;;  %s1548_s4 = inlined_call_operand.vmem [shape: f32[32,128], index: 4, kind: output, shape index: {}]  }
   0x1   :  { %v1146_v0 = vld [vmem:[%s1544_s1 + $0x78] sm:$0xff]   ;;  %v1150_v4 = vld [vmem:[%s1544_s1 + $0x70] sm:$0xff]   ;;  %v1154_v8 = vld [vmem:[%s1544_s1 + $0x68] sm:$0xff]  }
   0x2   :  { %v1147_v1 = vld [vmem:[%s1544_s1 + $0xf8] sm:$0xff]   ;;  %1031 = vmatprep.subr.bf16.mxu0 %v1146_v0  ;;  %v1151_v5 = vld [vmem:[%s1544_s1 + $0xf0] sm:$0xff]   ;;  %v1155_v9 = vld [vmem:[%s1544_s1 + $0xe8] sm:$0xff]  }
   0x3   :  { %v1148_v2 = vld [vmem:[%s1544_s1 + $0x38] sm:$0xff]   ;;  %1059 = vmatprep.subr.bf16.mxu1 %v1147_v1  ;;  %v1152_v6 = vld [vmem:[%s1544_s1 + $0x30] sm:$0xff]   ;;  %v1156_v10 = vld [vmem:[%s1544_s1 + $0x28] sm:$0xff]  }
   0x4   :  { %v1149_v3 = vld [vmem:[%s1544_s1 + $0xb8] sm:$0xff]   ;;  %1032 = vmatpush3.bf16.msra.mxu0 %v1148_v2  ;;  %v1153_v7 = vld [vmem:[%s1544_s1 + $0xb0] sm:$0xff]   ;;  %v1157_v11 = vld [vmem:[%s1544_s1 + $0xa8] sm:$0xff]  }
   0x5   :  { %1060 = vmatpush3.bf16.msra.mxu1 %v1149_v3  ;;  %1033 = vmatprep.subr.bf16.mxu0 %v1150_v4  ;;  %v1158_v12 = vld [vmem:[%s1544_s1 + $0x60] sm:$0xff]   ;;  %v1162_v16 = vld [vmem:[%s1544_s1 + $0x58] sm:$0xff]   ;;  %v1166_v20 = vld [vmem:[%s1544_s1 + $0x50] sm:$0xff]  }
   0x6   :  { %1061 = vmatprep.subr.bf16.mxu1 %v1151_v5  ;;  %v1159_v13 = vld [vmem:[%s1544_s1 + $0xe0] sm:$0xff]   ;;  %v1163_v17 = vld [vmem:[%s1544_s1 + $0xd8] sm:$0xff]   ;;  %v1167_v21 = vld [vmem:[%s1544_s1 + $0xd0] sm:$0xff]  }
   0x7   :  { %v1160_v14 = vld [vmem:[%s1544_s1 + $0x20] sm:$0xff]   ;;  %v1164_v18 = vld [vmem:[%s1544_s1 + $0x18] sm:$0xff]   ;;  %v1168_v22 = vld [vmem:[%s1544_s1 + $0x10] sm:$0xff]  }
   0x8   :  { %1034 = vmatpush3.bf16.msra.mxu0 %v1152_v6  ;;  %v1161_v15 = vld [vmem:[%s1544_s1 + $0xa0] sm:$0xff]   ;;  %v1165_v19 = vld [vmem:[%s1544_s1 + $0x98] sm:$0xff]   ;;  %v1169_v23 = vld [vmem:[%s1544_s1 + $0x90] sm:$0xff]  }
   0x9   :  { %1062 = vmatpush3.bf16.msra.mxu1 %v1153_v7  ;;  %1035 = vmatprep.subr.bf16.mxu0 %v1154_v8  ;;  %v1170_v24 = vld [vmem:[%s1544_s1 + $0x48] sm:$0xff]   ;;  %v1174_v28 = vld [vmem:[%s1544_s1 + $0x40] sm:$0xff]   ;;  %v1178_v40 = vld [vmem:[%s1544_s1 + $0x178] sm:$0xff]  }
   0xa   :  { %1063 = vmatprep.subr.bf16.mxu1 %v1155_v9  ;;  %v1171_v25 = vld [vmem:[%s1544_s1 + $0xc8] sm:$0xff]   ;;  %v1175_v29 = vld [vmem:[%s1544_s1 + $0xc0] sm:$0xff]   ;;  %v1179_v41 = vld [vmem:[%s1544_s1 + $0x1f8] sm:$0xff]  }
   0xb   :  { %v1172_v26 = vld [vmem:[%s1544_s1 + $0x8] sm:$0xff]   ;;  %v1176_v30 = vld [vmem:[%s1544_s1] sm:$0xff]   ;;  %v1180_v42 = vld [vmem:[%s1544_s1 + $0x138] sm:$0xff]  }
   0xc   :  { %1036 = vmatpush3.bf16.msra.mxu0 %v1156_v10  ;;  %v1173_v27 = vld [vmem:[%s1544_s1 + $0x88] sm:$0xff]   ;;  %v1177_v31 = vld [vmem:[%s1544_s1 + $0x80] sm:$0xff]   ;;  %v1181_v43 = vld [vmem:[%s1544_s1 + $0x1b8] sm:$0xff]  }
   0xd   :  { %1064 = vmatpush3.bf16.msra.mxu1 %v1157_v11  ;;  %1037 = vmatprep.subr.bf16.mxu0 %v1158_v12  ;;  %v18_v32 = vld [vmem:[%s1545_s0] sm:$0xff]  ;;  %v19_v34 = vld [vmem:[%s1545_s0 + $0x8] sm:$0xff]  ;;  %v1182_v44 = vld [vmem:[%s1544_s1 + $0x170] sm:$0xff]  }
   0xe   :  { %1065 = vmatprep.subr.bf16.mxu1 %v1159_v13  ;;  %v22_v33 = vld [vmem:[%s1545_s0 + $0x20] sm:$0xff]  ;;  %v23_v37 = vld [vmem:[%s1545_s0 + $0x28] sm:$0xff]  ;;  %v1183_v45 = vld [vmem:[%s1544_s1 + $0x1f0] sm:$0xff]  }
   0xf   :  { %v951_v35 = vcombine.low %v18_v32, %v22_v33  ;;  %v952_v36 = vcombine.high %v18_v32, %v22_v33  ;;  %v953_v38 = vcombine.low %v19_v34, %v23_v37  ;;  %v954_v39 = vcombine.high %v19_v34, %v23_v37  ;;  %v1184_v46 = vld [vmem:[%s1544_s1 + $0x130] sm:$0xff]   ;;  %v1186_v48 = vld [vmem:[%s1544_s1 + $0x168] sm:$0xff]   ;;  %v1190_v52 = vld [vmem:[%s1544_s1 + $0x160] sm:$0xff]  }
  0x10   :  { %1038 = vmatpush3.bf16.msra.mxu0 %v1160_v14  ;;  %v1185_v47 = vld [vmem:[%s1544_s1 + $0x1b0] sm:$0xff]   ;;  %v1187_v49 = vld [vmem:[%s1544_s1 + $0x1e8] sm:$0xff]   ;;  %v1191_v53 = vld [vmem:[%s1544_s1 + $0x1e0] sm:$0xff]  }
  0x11   :  { %1066 = vmatpush3.bf16.msra.mxu1 %v1161_v15  ;;  %1039 = vmatprep.subr.bf16.mxu0 %v1162_v16  ;;  %v1188_v50 = vld [vmem:[%s1544_s1 + $0x128] sm:$0xff]   ;;  %v1192_v54 = vld [vmem:[%s1544_s1 + $0x120] sm:$0xff]   ;;  %v1194_v56 = vld [vmem:[%s1544_s1 + $0x158] sm:$0xff]  }
  0x12   :  { %1067 = vmatprep.subr.bf16.mxu1 %v1163_v17  ;;  %658 = vmatprep.mubr.bf16.mxu0 %v952_v36  ;;  %v1189_v51 = vld [vmem:[%s1544_s1 + $0x1a8] sm:$0xff]   ;;  %v1193_v55 = vld [vmem:[%s1544_s1 + $0x1a0] sm:$0xff]   ;;  %v1195_v57 = vld [vmem:[%s1544_s1 + $0x1d8] sm:$0xff]  }
  0x13   :  { %707 = vmatprep.mubr.bf16.mxu1 %v954_v39  ;;  %v26_v58 = vld [vmem:[%s1545_s0 + $0x40] sm:$0xff]  ;;  %v27_v61 = vld [vmem:[%s1545_s0 + $0x48] sm:$0xff]  ;;  %v1196_v1 = vld [vmem:[%s1544_s1 + $0x118] sm:$0xff]  }
  0x14   :  { %1040 = vmatpush3.bf16.msra.mxu0 %v1164_v18  ;;  %v30_v59 = vld [vmem:[%s1545_s0 + $0x60] sm:$0xff]  ;;  %v31_v62 = vld [vmem:[%s1545_s0 + $0x68] sm:$0xff]  ;;  %v1197_v3 = vld [vmem:[%s1544_s1 + $0x198] sm:$0xff]  }
  0x15   :  { %1068 = vmatpush3.bf16.msra.mxu1 %v1165_v19  ;;  %1041 = vmatprep.subr.bf16.mxu0 %v1166_v20  ;;  %v960_v60 = vcombine.high %v26_v58, %v30_v59  ;;  %v959_v63 = vcombine.low %v26_v58, %v30_v59  ;;  %v962_v0 = vcombine.high %v27_v61, %v31_v62  ;;  %v1198_v4 = vld [vmem:[%s1544_s1 + $0x150] sm:$0xff]   ;;  %v1202_v8 = vld [vmem:[%s1544_s1 + $0x148] sm:$0xff]   ;;  %v1206_v12 = vld [vmem:[%s1544_s1 + $0x140] sm:$0xff]  }
  0x16   :  { %1069 = vmatprep.subr.bf16.mxu1 %v1167_v21  ;;  %v961_v2 = vcombine.low %v27_v61, %v31_v62  ;;  %v1199_v5 = vld [vmem:[%s1544_s1 + $0x1d0] sm:$0xff]   ;;  %v1203_v9 = vld [vmem:[%s1544_s1 + $0x1c8] sm:$0xff]   ;;  %v1207_v13 = vld [vmem:[%s1544_s1 + $0x1c0] sm:$0xff]  }
  0x17   :  { %v1200_v6 = vld [vmem:[%s1544_s1 + $0x110] sm:$0xff]   ;;  %v1204_v10 = vld [vmem:[%s1544_s1 + $0x108] sm:$0xff]   ;;  %v1208_v14 = vld [vmem:[%s1544_s1 + $0x100] sm:$0xff]  }
  0x18   :  { %1042 = vmatpush3.bf16.msra.mxu0 %v1168_v22  ;;  %v1201_v7 = vld [vmem:[%s1544_s1 + $0x190] sm:$0xff]   ;;  %v1205_v11 = vld [vmem:[%s1544_s1 + $0x188] sm:$0xff]   ;;  %v1209_v15 = vld [vmem:[%s1544_s1 + $0x180] sm:$0xff]  }
  0x19   :  { %1070 = vmatpush3.bf16.msra.mxu1 %v1169_v23  ;;  %1043 = vmatprep.subr.bf16.mxu0 %v1170_v24  ;;  %v20_v16 = vld [vmem:[%s1545_s0 + $0x10] sm:$0xff]  ;;  %v21_v18 = vld [vmem:[%s1545_s0 + $0x18] sm:$0xff] }
  0x1a   :  { %1071 = vmatprep.subr.bf16.mxu1 %v1171_v25  ;;  %v24_v17 = vld [vmem:[%s1545_s0 + $0x30] sm:$0xff]  ;;  %v25_v19 = vld [vmem:[%s1545_s0 + $0x38] sm:$0xff] }
  0x1b   :  { %v955_v20 = vcombine.low %v20_v16, %v24_v17  ;;  %v956_v21 = vcombine.high %v20_v16, %v24_v17  ;;  %v957_v22 = vcombine.low %v21_v18, %v25_v19  ;;  %v958_v23 = vcombine.high %v21_v18, %v25_v19  ;;  %v28_v24 = vld [vmem:[%s1545_s0 + $0x50] sm:$0xff] }
  0x1c   :  { %1044 = vmatpush3.bf16.msra.mxu0 %v1172_v26  ;;  %v32_v25 = vld [vmem:[%s1545_s0 + $0x70] sm:$0xff]  ;;  %v29_v26 = vld [vmem:[%s1545_s0 + $0x58] sm:$0xff] }
  0x1d   :  { %1072 = vmatpush3.bf16.msra.mxu1 %v1173_v27  ;;  %1045 = vmatprep.subr.bf16.mxu0 %v1174_v28  ;;  %v964_v27 = vcombine.high %v28_v24, %v32_v25  ;;  %v33_v28 = vld [vmem:[%s1545_s0 + $0x78] sm:$0xff] }
  0x1e   :  { %1073 = vmatprep.subr.bf16.mxu1 %v1175_v29  ;;  %v966_v29 = vcombine.high %v29_v26, %v33_v28 }
  0x20   :  { %1046 = vmatpush3.bf16.msra.mxu0 %v1176_v30  ;;  %v963_v30 = vcombine.low %v28_v24, %v32_v25 }
  0x21   :  { %1074 = vmatpush3.bf16.msra.mxu1 %v1177_v31  ;;  %1087 = vmatprep.subr.bf16.mxu0 %v1178_v40  ;;  %v965_v31 = vcombine.low %v29_v26, %v33_v28 }
  0x22   :  { %1115 = vmatprep.subr.bf16.mxu1 %v1179_v41 }
  0x23   :  { %659 = vmatmul.mubr.bf16.vlgmr.msra.gmra.mxu0 %v951_v35 }
  0x24   :  { %708 = vmatmul.mubr.bf16.vlgmr.msra.gmra.mxu1 %v953_v38  ;;  %1088 = vmatpush3.bf16.msra.mxu0 %v1180_v42 }
  0x25   :  { %1116 = vmatpush3.bf16.msra.mxu1 %v1181_v43  ;;  %1089 = vmatprep.subr.bf16.mxu0 %v1182_v44 }
  0x26   :  { %1117 = vmatprep.subr.bf16.mxu1 %v1183_v45  ;;  %666 = vmatprep.mubr.bf16.mxu0 %v960_v60 }
  0x27   :  { %715 = vmatprep.mubr.bf16.mxu1 %v962_v0 }
  0x28   :  { %1090 = vmatpush3.bf16.msra.mxu0 %v1184_v46 }
  0x29   :  { %1118 = vmatpush3.bf16.msra.mxu1 %v1185_v47  ;;  %1091 = vmatprep.subr.bf16.mxu0 %v1186_v48 }
  0x2a   :  { %1119 = vmatprep.subr.bf16.mxu1 %v1187_v49 }
  0x2b   :  { %667 = vmatmul.mubr.bf16.gmra.mxu0 %v959_v63 }
  0x2c   :  { %1092 = vmatpush3.bf16.msra.mxu0 %v1188_v50  ;;  %716 = vmatmul.mubr.bf16.gmra.mxu1 %v961_v2 }
  0x2d   :  { %1120 = vmatpush3.bf16.msra.mxu1 %v1189_v51  ;;  %1093 = vmatprep.subr.bf16.mxu0 %v1190_v52 }
  0x2e   :  { %1121 = vmatprep.subr.bf16.mxu1 %v1191_v53  ;;  %756 = vmatprep.mubr.bf16.mxu0 %v956_v21 }
  0x2f   :  { %805 = vmatprep.mubr.bf16.mxu1 %v958_v23 }
  0x30   :  { %1094 = vmatpush3.bf16.msra.mxu0 %v1192_v54 }
  0x31   :  { %1122 = vmatpush3.bf16.msra.mxu1 %v1193_v55  ;;  %1095 = vmatprep.subr.bf16.mxu0 %v1194_v56 }
  0x32   :  { %1123 = vmatprep.subr.bf16.mxu1 %v1195_v57 }
  0x34   :  { %1096 = vmatpush3.bf16.msra.mxu0 %v1196_v1 }
  0x35   :  { %1124 = vmatpush3.bf16.msra.mxu1 %v1197_v3  ;;  %1097 = vmatprep.subr.bf16.mxu0 %v1198_v4 }
  0x36   :  { %1125 = vmatprep.subr.bf16.mxu1 %v1199_v5 }
  0x38   :  { %1098 = vmatpush3.bf16.msra.mxu0 %v1200_v6 }
  0x39   :  { %1126 = vmatpush3.bf16.msra.mxu1 %v1201_v7  ;;  %1099 = vmatprep.subr.bf16.mxu0 %v1202_v8 }
  0x3a   :  { %1127 = vmatprep.subr.bf16.mxu1 %v1203_v9 }
  0x3c   :  { %1100 = vmatpush3.bf16.msra.mxu0 %v1204_v10 }
  0x3d   :  { %1128 = vmatpush3.bf16.msra.mxu1 %v1205_v11  ;;  %1101 = vmatprep.subr.bf16.mxu0 %v1206_v12 }
  0x3e   :  { %1129 = vmatprep.subr.bf16.mxu1 %v1207_v13 }
  0x40   :  { %1102 = vmatpush3.bf16.msra.mxu0 %v1208_v14 }
  0x41   :  { %1130 = vmatpush3.bf16.msra.mxu1 %v1209_v15 }
  0x43   :  { %757 = vmatmul.mubr.bf16.vlgmr.msra.gmra.mxu0 %v955_v20 }
  0x44   :  { %806 = vmatmul.mubr.bf16.vlgmr.msra.gmra.mxu1 %v957_v22  ;;  %764 = vmatprep.mubr.bf16.mxu0 %v964_v27 }
  0x45   :  { %813 = vmatprep.mubr.bf16.mxu1 %v966_v29 }
  0x4b   :  { %765 = vmatmul.mubr.bf16.gmra.mxu0 %v963_v30 }
  0x4c   :  { %814 = vmatmul.mubr.bf16.gmra.mxu1 %v965_v31 }
  0xe3   :  { %v1047_v32 = vpop.f32.mrf.mxu0 }
  0xe4   :  { %v1075_v33 = vpop.f32.mrf.mxu1 }
  0xe5   :  { %v1048_v34 = vpop.f32.mrf.mxu0 }
  0xe6   :  { %v1076_v35 = vpop.f32.mrf.mxu1  ;;  %v1049_v48 = vadd.f32 %v1048_v34, %v1047_v32  ;;  %v1218_v32 = vmov 0  }
  0xe7   :  { %v1050_v36 = vpop.f32.mrf.mxu0  ;;  %v1077_v49 = vadd.f32 %v1076_v35, %v1075_v33  ;;  %1144 = vset.pattern.permute.xlu0 %v1218_v32  ;;  %1145 = vset.pattern.permute.xlu1 %v1218_v32 }
  0xe8   :  { %v1078_v37 = vpop.f32.mrf.mxu1 }
  0xe9   :  { %v1051_v38 = vpop.f32.mrf.mxu0  ;;  %v710_v54 = vadd.f32 %v1077_v49, %v1049_v48 }
  0xea   :  { %v1079_v39 = vpop.f32.mrf.mxu1  ;;  %v1052_v55 = vadd.f32 %v1051_v38, %v1050_v36 }
  0xeb   :  { %v1053_v40 = vpop.f32.mrf.mxu0  ;;  %v1080_v56 = vadd.f32 %v1079_v39, %v1078_v37 }
  0xec   :  { %v1081_v41 = vpop.f32.mrf.mxu1 }
  0xed   :  { %v1054_v42 = vpop.f32.mrf.mxu0  ;;  %v713_v2 = vadd.f32 %v1080_v56, %v1052_v55 }
  0xee   :  { %v1082_v43 = vpop.f32.mrf.mxu1  ;;  %v1055_v62 = vadd.f32 %v1054_v42, %v1053_v40 }
  0xef   :  { %v1056_v44 = vpop.f32.mrf.mxu0  ;;  %v1083_v63 = vadd.f32 %v1082_v43, %v1081_v41 }
  0xf0   :  { %v1084_v45 = vpop.f32.mrf.mxu1 }
  0xf1   :  { %v1057_v46 = vpop.f32.mrf.mxu0  ;;  %v718_v9 = vadd.f32 %v1083_v63, %v1055_v62  ;;  %v863_v63 = vld [vmem:[%s1546_s2] sm:$0xff] }
  0xf2   :  { %v1085_v47 = vpop.f32.mrf.mxu1  ;;  %v1058_v10 = vadd.f32 %v1057_v46, %v1056_v44 }
  0xf3   :  { %v1086_v11 = vadd.f32 %v1085_v47, %v1084_v45 }
  0xf5   :  { %v721_v24 = vadd.f32 %v1086_v11, %v1058_v10 }
 0x103   :  { %v1103_v50 = vpop.f32.mrf.mxu0 }
 0x104   :  { %v1131_v51 = vpop.f32.mrf.mxu1 }
 0x105   :  { %v1104_v52 = vpop.f32.mrf.mxu0 }
 0x106   :  { %v1132_v53 = vpop.f32.mrf.mxu1  ;;  %v1105_v57 = vadd.f32 %v1104_v52, %v1103_v50 }
 0x107   :  { %v1106_v58 = vpop.f32.mrf.mxu0  ;;  %v1133_v61 = vadd.f32 %v1132_v53, %v1131_v51 }
 0x108   :  { %v1134_v59 = vpop.f32.mrf.mxu1  ;;  %v759_v60 = vadd.f32 %v1105_v57, %v710_v54 }
 0x109   :  { %v1107_v0 = vpop.f32.mrf.mxu0 }
 0x10a   :  { %v1135_v1 = vpop.f32.mrf.mxu1  ;;  %v1484_v3 = vadd.f32 %v1133_v61, %v759_v60  ;;  %v1108_v4 = vadd.f32 %v1107_v0, %v1106_v58 }
 0x10b   :  { %v1109_v5 = vpop.f32.mrf.mxu0  ;;  %v1136_v8 = vadd.f32 %v1135_v1, %v1134_v59 }
 0x10c   :  { %v1137_v6 = vpop.f32.mrf.mxu1  ;;  %v762_v7 = vadd.f32 %v1108_v4, %v713_v2  ;;  %822 = vadd.xlane.f32.xlu0 %v1484_v3  ;;  %v835_v17 = vmul.f32 %v1484_v3, %v1484_v3 }
 0x10d   :  { %v1110_v12 = vpop.f32.mrf.mxu0 }
 0x10e   :  { %v1138_v13 = vpop.f32.mrf.mxu1  ;;  %v1487_v14 = vadd.f32 %v1136_v8, %v762_v7  ;;  %v1111_v15 = vadd.f32 %v1110_v12, %v1109_v5  ;;  %v864_v5 = vld [vmem:[%s1546_s2 + $0x8] sm:$0xff]  ;;  %v865_v12 = vld [vmem:[%s1546_s2 + $0x10] sm:$0xff] }
 0x10f   :  { %v1139_v16 = vadd.f32 %v1138_v13, %v1137_v6  ;;  %v1112_v18 = vpop.f32.mrf.mxu0 }
 0x110   :  { %v1140_v19 = vpop.f32.mrf.mxu1  ;;  %v767_v20 = vadd.f32 %v1111_v15, %v718_v9  ;;  %839 = vadd.xlane.f32.xlu0 %v835_v17  ;;  %v836_v21 = vmul.f32 %v1487_v14, %v1487_v14  ;;  %v879_v9 = vld [vmem:[%s1547_s3] sm:$0xff] }
 0x111   :  { %v1113_v22 = vpop.f32.mrf.mxu0 }
 0x112   :  { %v1141_v23 = vpop.f32.mrf.mxu1  ;;  %v1493_v25 = vadd.f32 %v1139_v16, %v767_v20  ;;  %v1114_v26 = vadd.f32 %v1113_v22, %v1112_v18  ;;  %841 = vadd.xlane.f32.xlu1 %v836_v21  ;;  %v880_v16 = vld [vmem:[%s1547_s3 + $0x8] sm:$0xff]  ;;  %v881_v22 = vld [vmem:[%s1547_s3 + $0x10] sm:$0xff] }
 0x113   :  { %v1142_v28 = vadd.f32 %v1141_v23, %v1140_v19  ;;  %v866_v19 = vld [vmem:[%s1546_s2 + $0x18] sm:$0xff] }
 0x114   :  { %v770_v27 = vadd.f32 %v1114_v26, %v721_v24  ;;  %824 = vadd.xlane.f32.xlu0 %v1487_v14  ;;  %v837_v29 = vmul.f32 %v1493_v25, %v1493_v25  ;;  %v882_v26 = vld [vmem:[%s1547_s3 + $0x18] sm:$0xff] }
 0x116   :  { %826 = vadd.xlane.f32.xlu1 %v1493_v25  ;;  %v1499_v30 = vadd.f32 %v1142_v28, %v770_v27 }
 0x118   :  { %843 = vadd.xlane.f32.xlu0 %v837_v29  ;;  %v838_v31 = vmul.f32 %v1499_v30, %v1499_v30 }
 0x11a   :  { %828 = vadd.xlane.f32.xlu1 %v1499_v30 }
 0x11e   :  { %845 = vadd.xlane.f32.xlu1 %v838_v31 }
 0x195   :  { %v823_v33 = vpop.xlane.xlu0 %822 }
 0x196   :  { %v831_v34 = vmul.f32 0.0078125, %v823_v33 }
 0x198   :  { %v851_v36 = vmul.f32 %v831_v34, %v831_v34 }
 0x199   :  { %v840_v35 = vpop.xlane.xlu0 %839 }
 0x19a   :  { %v847_v37 = vmul.f32 0.0078125, %v840_v35 }
 0x19b   :  { %v842_v38 = vpop.xlane.xlu1 %841 }
 0x19c   :  { %v855_v39 = vsub.f32 %v847_v37, %v851_v36  ;;  %v848_v45 = vmul.f32 0.0078125, %v842_v38 }
 0x19d   :  { %v825_v40 = vpop.xlane.xlu0 %824 }
 0x19e   :  { %v859_v41 = vmax.f32 %v855_v39, 0.0  ;;  %v832_v42 = vmul.f32 0.0078125, %v825_v40 }
 0x19f   :  { %v827_v43 = vpop.xlane.xlu1 %826 }
 0x1a0   :  { %v867_v44 = vadd.f32 1e-05, %v859_v41  ;;  %v852_v46 = vmul.f32 %v832_v42, %v832_v42  ;;  %v833_v47 = vmul.f32 0.0078125, %v827_v43 }
 0x1a1   :  { %v844_v48 = vpop.xlane.xlu0 %843 }
 0x1a2   :  { %1210 = vrsqrt.f32 %v867_v44  ;;  %v856_v49 = vsub.f32 %v848_v45, %v852_v46  ;;  %v853_v50 = vmul.f32 %v833_v47, %v833_v47  ;;  %v849_v51 = vmul.f32 0.0078125, %v844_v48 }
 0x1a3   :  { %v829_v52 = vpop.xlane.xlu1 %828 }
 0x1a4   :  { %v860_v53 = vmax.f32 %v856_v49, 0.0  ;;  %v857_v54 = vsub.f32 %v849_v51, %v853_v50  ;;  %v834_v55 = vmul.f32 0.0078125, %v829_v52 }
 0x1a6   :  { %v868_v56 = vadd.f32 1e-05, %v860_v53  ;;  %v861_v57 = vmax.f32 %v857_v54, 0.0  ;;  %v854_v59 = vmul.f32 %v834_v55, %v834_v55 }
 0x1a7   :  { %v846_v58 = vpop.xlane.xlu1 %845 }
 0x1a8   :  { %1212 = vrsqrt.f32 %v868_v56  ;;  %v850_v60 = vmul.f32 0.0078125, %v846_v58  ;;  %v869_v61 = vadd.f32 1e-05, %v861_v57 }
 0x1aa   :  { %v858_v62 = vsub.f32 %v850_v60, %v854_v59  ;;  %1214 = vrsqrt.f32 %v869_v61 }
 0x1ac   :  { %v862_v0 = vmax.f32 %v858_v62, 0.0 }
 0x1ae   :  { %v870_v4 = vadd.f32 1e-05, %v862_v0 }
 0x1af   :  { %v1211_v1 = vpop.eup %1210 }
 0x1b0   :  { %v875_v2 = vmul.f32 %v1211_v1, %v863_v63  ;;  %1216 = vrsqrt.f32 %v870_v4 }
 0x1b2   :  { %893 = vperm.xlu0 %1144, %v875_v2   ;;  %v883_v8 = vmul.f32 %v875_v2, %v831_v34 }
 0x1b4   :  { %v887_v10 = vsub.f32 %v879_v9, %v883_v8 }
 0x1b5   :  { %v1213_v6 = vpop.eup %1212 }
 0x1b6   :  { %v876_v7 = vmul.f32 %v1213_v6, %v864_v5 }
 0x1b7   :  { %v1215_v11 = vpop.eup %1214 }
 0x1b8   :  { %898 = vperm.xlu1 %1145, %v876_v7   ;;  %v884_v13 = vmul.f32 %v876_v7, %v832_v42  ;;  %v877_v15 = vmul.f32 %v1215_v11, %v865_v12 }
 0x1ba   :  { %v888_v17 = vsub.f32 %v880_v16, %v884_v13  ;;  %v885_v21 = vmul.f32 %v877_v15, %v833_v47 }
 0x1bc   :  { %917 = vperm.xlu1 %1145, %v887_v10   ;;  %v889_v23 = vsub.f32 %v881_v22, %v885_v21 }
 0x1bd   :  { %v1217_v18 = vpop.eup %1216 }
 0x1be   :  { %v878_v20 = vmul.f32 %v1217_v18, %v866_v19 }
 0x1c0   :  { %903 = vperm.xlu1 %1145, %v877_v15   ;;  %v886_v24 = vmul.f32 %v878_v20, %v834_v55 }
 0x1c2   :  { %v890_v27 = vsub.f32 %v882_v26, %v886_v24 }
 0x1c4   :  { %922 = vperm.xlu1 %1145, %v888_v17  }
 0x1c8   :  { %908 = vperm.xlu1 %1145, %v878_v20  }
 0x1cc   :  { %927 = vperm.xlu1 %1145, %v889_v23  }
 0x1d0   :  { %932 = vperm.xlu1 %1145, %v890_v27  }
 0x22d   :  { %v894_v28 = vpop.permute.xlu0 %893 }
 0x22e   :  { %v911_v31 = vmul.f32 %v894_v28, %v1484_v3 }
 0x233   :  { %v899_v29 = vpop.permute.xlu1 %898 }
 0x234   :  { %v912_v36 = vmul.f32 %v899_v29, %v1487_v14 }
 0x237   :  { %v918_v32 = vpop.permute.xlu1 %917 }
 0x238   :  { %v935_v33 = vadd.f32 %v918_v32, %v911_v31 }
 0x23a   :  { %v939_v34 = vmax.f32 %v935_v33, 0.0 }
 0x23b   :  { %v904_v35 = vpop.permute.xlu1 %903 }
 0x23c   :  { %943 = vst [vmem:[%s1548_s4] sm:$0xff] %v939_v34  ;;  %v913_v3 = vmul.f32 %v904_v35, %v1493_v25 }
 0x23f   :  { %v923_v37 = vpop.permute.xlu1 %922 }
 0x240   :  { %v936_v38 = vadd.f32 %v923_v37, %v912_v36 }
 0x242   :  { %v940_v39 = vmax.f32 %v936_v38, 0.0 }
 0x243   :  { %v909_v40 = vpop.permute.xlu1 %908 }
 0x244   :  { %944 = vst [vmem:[%s1548_s4 + $0x8] sm:$0xff] %v940_v39  ;;  %v914_v43 = vmul.f32 %v909_v40, %v1499_v30 }
 0x247   :  { %v928_v41 = vpop.permute.xlu1 %927 }
 0x248   :  { %v937_v42 = vadd.f32 %v928_v41, %v913_v3 }
 0x24a   :  { %v941_v44 = vmax.f32 %v937_v42, 0.0 }
 0x24b   :  { %v933_v45 = vpop.permute.xlu1 %932 }
 0x24c   :  { %945 = vst [vmem:[%s1548_s4 + $0x10] sm:$0xff] %v941_v44  ;;  %v938_v14 = vadd.f32 %v933_v45, %v914_v43 }
 0x24e   :  { %v942_v46 = vmax.f32 %v938_v14, 0.0 }
 0x250   :  { %946 = vst [vmem:[%s1548_s4 + $0x18] sm:$0xff] %v942_v46 }

// kernel: generator_forward.7
= control target key start
LH: loop header
LB: loop body
LE: loop exit
PB: predicated region body
PF: predicated region fallthrough
CT: control target
= control target key end

     0   :  { %s1941_s1 = inlined_call_operand.vmem [shape: bf16[512,512], index: 1, kind: input, shape index: {}]   ;;  %s1942_s0 = inlined_call_operand.vmem [shape: bf16[16,512], index: 0, kind: input, shape index: {}]   ;;  %s1943_s2 = inlined_call_operand.vmem [shape: f32[16,1], index: 2, kind: input, shape index: {}]   ;;  %s1944_s3 = inlined_call_operand.vmem [shape: f32[16,1], index: 3, kind: input, shape index: {}]   ;;  %s1945_s4 = inlined_call_operand.vmem [shape: f32[16,512], index: 4, kind: output, shape index: {}]  }
   0x1   :  { %v1225_v0 = vld [vmem:[%s1941_s1 + $0xe4] ss:$16 sps:$4 sm:$0xff]   ;;  %v1229_v2 = vld [vmem:[%s1941_s1 + $0xe0] ss:$16 sps:$4 sm:$0xff]   ;;  %v1326_v51 = vld [vmem:[%s1942_s0 + $0xc] ss:$16 sps:$4 sm:$0xff]  }
   0x2   :  { %v1227_v1 = vld [vmem:[%s1941_s1 + $0x2e4] ss:$16 sps:$4 sm:$0xff]   ;;  %809 = vmatprep.subr.bf16.mxu0 %v1225_v0  ;;  %v1230_v3 = vld [vmem:[%s1941_s1 + $0x2e0] ss:$16 sps:$4 sm:$0xff]   ;;  %884 = vmatprep.mubr.bf16.mxu1 %v1326_v51 }
   0x3   :  { %852 = vmatprep.subr.bf16.mxu1 %v1227_v1  ;;  %v1231_v4 = vld [vmem:[%s1941_s1 + $0xc4] ss:$16 sps:$4 sm:$0xff]   ;;  %810 = vmatpush1.bf16.msra.mxu0 %v1229_v2  ;;  %v1235_v6 = vld [vmem:[%s1941_s1 + $0xc0] ss:$16 sps:$4 sm:$0xff]   ;;  %v1329_v2 = vld [vmem:[%s1941_s1 + $0xec] ss:$16 sps:$4 sm:$0xff]  }
   0x4   :  { %853 = vmatpush1.bf16.msra.mxu1 %v1230_v3  ;;  %v1233_v5 = vld [vmem:[%s1941_s1 + $0x2c4] ss:$16 sps:$4 sm:$0xff]   ;;  %811 = vmatprep.subr.bf16.mxu0 %v1231_v4  ;;  %v1236_v7 = vld [vmem:[%s1941_s1 + $0x2c0] ss:$16 sps:$4 sm:$0xff]   ;;  %v1332_v3 = vld [vmem:[%s1941_s1 + $0x2ec] ss:$16 sps:$4 sm:$0xff]  }
   0x5   :  { %854 = vmatprep.subr.bf16.mxu1 %v1233_v5  ;;  %v1237_v8 = vld [vmem:[%s1941_s1 + $0xa4] ss:$16 sps:$4 sm:$0xff]   ;;  %v1241_v10 = vld [vmem:[%s1941_s1 + $0xa0] ss:$16 sps:$4 sm:$0xff]   ;;  %v1665_v5 = vld [vmem:[%s1942_s0 + $0x8] ss:$16 sps:$4 sm:$0xff]  }
   0x6   :  { %v1239_v9 = vld [vmem:[%s1941_s1 + $0x2a4] ss:$16 sps:$4 sm:$0xff]   ;;  %v1242_v11 = vld [vmem:[%s1941_s1 + $0x2a0] ss:$16 sps:$4 sm:$0xff]  }
   0x7   :  { %812 = vmatpush1.bf16.msra.mxu0 %v1235_v6  ;;  %v1243_v12 = vld [vmem:[%s1941_s1 + $0x84] ss:$16 sps:$4 sm:$0xff]   ;;  %v1247_v14 = vld [vmem:[%s1941_s1 + $0x80] ss:$16 sps:$4 sm:$0xff]   ;;  %v1327_v6 = vld [vmem:[%s1941_s1 + $0xe8] ss:$16 sps:$4 sm:$0xff]  }
   0x8   :  { %855 = vmatpush1.bf16.msra.mxu1 %v1236_v7  ;;  %813 = vmatprep.subr.bf16.mxu0 %v1237_v8  ;;  %v1245_v13 = vld [vmem:[%s1941_s1 + $0x284] ss:$16 sps:$4 sm:$0xff]   ;;  %v1248_v15 = vld [vmem:[%s1941_s1 + $0x280] ss:$16 sps:$4 sm:$0xff]   ;;  %v1330_v7 = vld [vmem:[%s1941_s1 + $0x2e8] ss:$16 sps:$4 sm:$0xff]  }
   0x9   :  { %856 = vmatprep.subr.bf16.mxu1 %v1239_v9  ;;  %v1249_v16 = vld [vmem:[%s1941_s1 + $0x64] ss:$16 sps:$4 sm:$0xff]   ;;  %v1253_v18 = vld [vmem:[%s1941_s1 + $0x60] ss:$16 sps:$4 sm:$0xff]   ;;  %v1335_v8 = vld [vmem:[%s1941_s1 + $0xcc] ss:$16 sps:$4 sm:$0xff]  }
   0xa   :  { %v1251_v17 = vld [vmem:[%s1941_s1 + $0x264] ss:$16 sps:$4 sm:$0xff]   ;;  %v1254_v19 = vld [vmem:[%s1941_s1 + $0x260] ss:$16 sps:$4 sm:$0xff]   ;;  %v1338_v9 = vld [vmem:[%s1941_s1 + $0x2cc] ss:$16 sps:$4 sm:$0xff]  }
   0xb   :  { %814 = vmatpush1.bf16.msra.mxu0 %v1241_v10  ;;  %v1255_v20 = vld [vmem:[%s1941_s1 + $0x44] ss:$16 sps:$4 sm:$0xff]   ;;  %v1259_v22 = vld [vmem:[%s1941_s1 + $0x40] ss:$16 sps:$4 sm:$0xff]   ;;  %v1333_v10 = vld [vmem:[%s1941_s1 + $0xc8] ss:$16 sps:$4 sm:$0xff]  }
   0xc   :  { %857 = vmatpush1.bf16.msra.mxu1 %v1242_v11  ;;  %815 = vmatprep.subr.bf16.mxu0 %v1243_v12  ;;  %v1257_v21 = vld [vmem:[%s1941_s1 + $0x244] ss:$16 sps:$4 sm:$0xff]   ;;  %v1260_v23 = vld [vmem:[%s1941_s1 + $0x240] ss:$16 sps:$4 sm:$0xff]   ;;  %v1336_v11 = vld [vmem:[%s1941_s1 + $0x2c8] ss:$16 sps:$4 sm:$0xff]  }
   0xd   :  { %858 = vmatprep.subr.bf16.mxu1 %v1245_v13  ;;  %v1261_v24 = vld [vmem:[%s1941_s1 + $0x24] ss:$16 sps:$4 sm:$0xff]   ;;  %v1265_v26 = vld [vmem:[%s1941_s1 + $0x20] ss:$16 sps:$4 sm:$0xff]   ;;  %v1341_v12 = vld [vmem:[%s1941_s1 + $0xac] ss:$16 sps:$4 sm:$0xff]  }
   0xe   :  { %v1263_v25 = vld [vmem:[%s1941_s1 + $0x224] ss:$16 sps:$4 sm:$0xff]   ;;  %v1266_v27 = vld [vmem:[%s1941_s1 + $0x220] ss:$16 sps:$4 sm:$0xff]   ;;  %v1344_v13 = vld [vmem:[%s1941_s1 + $0x2ac] ss:$16 sps:$4 sm:$0xff]  }
   0xf   :  { %816 = vmatpush1.bf16.msra.mxu0 %v1247_v14  ;;  %v1267_v28 = vld [vmem:[%s1941_s1 + $0x4] ss:$16 sps:$4 sm:$0xff]   ;;  %v1271_v30 = vld [vmem:[%s1941_s1] ss:$16 sps:$4 sm:$0xff]   ;;  %v1339_v14 = vld [vmem:[%s1941_s1 + $0xa8] ss:$16 sps:$4 sm:$0xff]  }
  0x10   :  { %859 = vmatpush1.bf16.msra.mxu1 %v1248_v15  ;;  %817 = vmatprep.subr.bf16.mxu0 %v1249_v16  ;;  %v1269_v29 = vld [vmem:[%s1941_s1 + $0x204] ss:$16 sps:$4 sm:$0xff]   ;;  %v1272_v31 = vld [vmem:[%s1941_s1 + $0x200] ss:$16 sps:$4 sm:$0xff]   ;;  %v1342_v15 = vld [vmem:[%s1941_s1 + $0x2a8] ss:$16 sps:$4 sm:$0xff]  }
  0x11   :  { %860 = vmatprep.subr.bf16.mxu1 %v1251_v17  ;;  %v1273_v32 = vld [vmem:[%s1941_s1 + $0x1e4] ss:$16 sps:$4 sm:$0xff]   ;;  %v1277_v34 = vld [vmem:[%s1941_s1 + $0x1e0] ss:$16 sps:$4 sm:$0xff]   ;;  %v1347_v16 = vld [vmem:[%s1941_s1 + $0x8c] ss:$16 sps:$4 sm:$0xff]  }
  0x12   :  { %v1275_v33 = vld [vmem:[%s1941_s1 + $0x3e4] ss:$16 sps:$4 sm:$0xff]   ;;  %v1278_v35 = vld [vmem:[%s1941_s1 + $0x3e0] ss:$16 sps:$4 sm:$0xff]   ;;  %v1350_v17 = vld [vmem:[%s1941_s1 + $0x28c] ss:$16 sps:$4 sm:$0xff]  }
  0x13   :  { %818 = vmatpush1.bf16.msra.mxu0 %v1253_v18  ;;  %v1279_v36 = vld [vmem:[%s1941_s1 + $0x1c4] ss:$16 sps:$4 sm:$0xff]   ;;  %v1283_v38 = vld [vmem:[%s1941_s1 + $0x1c0] ss:$16 sps:$4 sm:$0xff]   ;;  %v1345_v18 = vld [vmem:[%s1941_s1 + $0x88] ss:$16 sps:$4 sm:$0xff]  }
  0x14   :  { %861 = vmatpush1.bf16.msra.mxu1 %v1254_v19  ;;  %819 = vmatprep.subr.bf16.mxu0 %v1255_v20  ;;  %v1281_v37 = vld [vmem:[%s1941_s1 + $0x3c4] ss:$16 sps:$4 sm:$0xff]   ;;  %v1284_v39 = vld [vmem:[%s1941_s1 + $0x3c0] ss:$16 sps:$4 sm:$0xff]   ;;  %v1348_v19 = vld [vmem:[%s1941_s1 + $0x288] ss:$16 sps:$4 sm:$0xff]  }
  0x15   :  { %862 = vmatprep.subr.bf16.mxu1 %v1257_v21  ;;  %v1285_v40 = vld [vmem:[%s1941_s1 + $0x1a4] ss:$16 sps:$4 sm:$0xff]   ;;  %v1289_v42 = vld [vmem:[%s1941_s1 + $0x1a0] ss:$16 sps:$4 sm:$0xff]   ;;  %v1353_v20 = vld [vmem:[%s1941_s1 + $0x6c] ss:$16 sps:$4 sm:$0xff]  }
  0x16   :  { %v1287_v41 = vld [vmem:[%s1941_s1 + $0x3a4] ss:$16 sps:$4 sm:$0xff]   ;;  %v1290_v43 = vld [vmem:[%s1941_s1 + $0x3a0] ss:$16 sps:$4 sm:$0xff]   ;;  %v1356_v21 = vld [vmem:[%s1941_s1 + $0x26c] ss:$16 sps:$4 sm:$0xff]  }
  0x17   :  { %820 = vmatpush1.bf16.msra.mxu0 %v1259_v22  ;;  %v1291_v44 = vld [vmem:[%s1941_s1 + $0x184] ss:$16 sps:$4 sm:$0xff]   ;;  %v1295_v46 = vld [vmem:[%s1941_s1 + $0x180] ss:$16 sps:$4 sm:$0xff]   ;;  %v1351_v22 = vld [vmem:[%s1941_s1 + $0x68] ss:$16 sps:$4 sm:$0xff]  }
  0x18   :  { %863 = vmatpush1.bf16.msra.mxu1 %v1260_v23  ;;  %821 = vmatprep.subr.bf16.mxu0 %v1261_v24  ;;  %v1293_v45 = vld [vmem:[%s1941_s1 + $0x384] ss:$16 sps:$4 sm:$0xff]   ;;  %v1296_v47 = vld [vmem:[%s1941_s1 + $0x380] ss:$16 sps:$4 sm:$0xff]   ;;  %v1354_v23 = vld [vmem:[%s1941_s1 + $0x268] ss:$16 sps:$4 sm:$0xff]  }
  0x19   :  { %864 = vmatprep.subr.bf16.mxu1 %v1263_v25  ;;  %v1297_v48 = vld [vmem:[%s1941_s1 + $0x164] ss:$16 sps:$4 sm:$0xff]   ;;  %v1301_v52 = vld [vmem:[%s1941_s1 + $0x160] ss:$16 sps:$4 sm:$0xff]   ;;  %v1359_v24 = vld [vmem:[%s1941_s1 + $0x4c] ss:$16 sps:$4 sm:$0xff]  }
  0x1a   :  { %v1323_v49 = vld [vmem:[%s1942_s0 + $0x4] ss:$16 sps:$4 sm:$0xff]   ;;  %v1302_v53 = vld [vmem:[%s1941_s1 + $0x360] ss:$16 sps:$4 sm:$0xff]   ;;  %v1362_v25 = vld [vmem:[%s1941_s1 + $0x24c] ss:$16 sps:$4 sm:$0xff]  }
  0x1b   :  { %822 = vmatpush1.bf16.msra.mxu0 %v1265_v26  ;;  %v1299_v50 = vld [vmem:[%s1941_s1 + $0x364] ss:$16 sps:$4 sm:$0xff]   ;;  %841 = vmatprep.mubr.bf16.mxu0 %v1323_v49  ;;  %v1307_v56 = vld [vmem:[%s1941_s1 + $0x140] ss:$16 sps:$4 sm:$0xff]   ;;  %v1357_v26 = vld [vmem:[%s1941_s1 + $0x48] ss:$16 sps:$4 sm:$0xff]  }
  0x1c   :  { %865 = vmatpush1.bf16.msra.mxu1 %v1266_v27  ;;  %823 = vmatprep.subr.bf16.mxu0 %v1267_v28  ;;  %v1303_v54 = vld [vmem:[%s1941_s1 + $0x144] ss:$16 sps:$4 sm:$0xff]   ;;  %v1308_v57 = vld [vmem:[%s1941_s1 + $0x340] ss:$16 sps:$4 sm:$0xff]   ;;  %v1360_v27 = vld [vmem:[%s1941_s1 + $0x248] ss:$16 sps:$4 sm:$0xff]  }
  0x1d   :  { %866 = vmatprep.subr.bf16.mxu1 %v1269_v29  ;;  %v1305_v55 = vld [vmem:[%s1941_s1 + $0x344] ss:$16 sps:$4 sm:$0xff]   ;;  %v1313_v60 = vld [vmem:[%s1941_s1 + $0x120] ss:$16 sps:$4 sm:$0xff]   ;;  %v1365_v28 = vld [vmem:[%s1941_s1 + $0x2c] ss:$16 sps:$4 sm:$0xff]  }
  0x1e   :  { %v1309_v58 = vld [vmem:[%s1941_s1 + $0x124] ss:$16 sps:$4 sm:$0xff]   ;;  %v1314_v61 = vld [vmem:[%s1941_s1 + $0x320] ss:$16 sps:$4 sm:$0xff]   ;;  %v1368_v29 = vld [vmem:[%s1941_s1 + $0x22c] ss:$16 sps:$4 sm:$0xff]  }
  0x1f   :  { %824 = vmatpush1.bf16.msra.mxu0 %v1271_v30  ;;  %v1311_v59 = vld [vmem:[%s1941_s1 + $0x324] ss:$16 sps:$4 sm:$0xff]   ;;  %v1319_v0 = vld [vmem:[%s1941_s1 + $0x100] ss:$16 sps:$4 sm:$0xff]   ;;  %v1363_v30 = vld [vmem:[%s1941_s1 + $0x28] ss:$16 sps:$4 sm:$0xff]  }
  0x20   :  { %867 = vmatpush1.bf16.msra.mxu1 %v1272_v31  ;;  %825 = vmatprep.subr.bf16.mxu0 %v1273_v32  ;;  %v1315_v62 = vld [vmem:[%s1941_s1 + $0x104] ss:$16 sps:$4 sm:$0xff]   ;;  %v1320_v1 = vld [vmem:[%s1941_s1 + $0x300] ss:$16 sps:$4 sm:$0xff]   ;;  %v1366_v31 = vld [vmem:[%s1941_s1 + $0x228] ss:$16 sps:$4 sm:$0xff]  }
  0x21   :  { %868 = vmatprep.subr.bf16.mxu1 %v1275_v33  ;;  %v1317_v63 = vld [vmem:[%s1941_s1 + $0x304] ss:$16 sps:$4 sm:$0xff]   ;;  %v1660_v4 = vld [vmem:[%s1942_s0] ss:$16 sps:$4 sm:$0xff]   ;;  %v1371_v32 = vld [vmem:[%s1941_s1 + $0xc] ss:$16 sps:$4 sm:$0xff]  }
  0x22   :  { %v1374_v33 = vld [vmem:[%s1941_s1 + $0x20c] ss:$16 sps:$4 sm:$0xff]  }
  0x23   :  { %826 = vmatpush2.bf16.msra.mxu0 %v1277_v34  ;;  %v1369_v34 = vld [vmem:[%s1941_s1 + $0x8] ss:$16 sps:$4 sm:$0xff]  }
  0x24   :  { %869 = vmatpush2.bf16.msra.mxu1 %v1278_v35  ;;  %827 = vmatprep.subr.bf16.mxu0 %v1279_v36  ;;  %v1372_v35 = vld [vmem:[%s1941_s1 + $0x208] ss:$16 sps:$4 sm:$0xff]   ;;  %v1377_v36 = vld [vmem:[%s1941_s1 + $0x1ec] ss:$16 sps:$4 sm:$0xff]  }
  0x25   :  { %870 = vmatprep.subr.bf16.mxu1 %v1281_v37  ;;  %v1380_v37 = vld [vmem:[%s1941_s1 + $0x3ec] ss:$16 sps:$4 sm:$0xff]  }
  0x27   :  { %828 = vmatpush2.bf16.msra.mxu0 %v1283_v38  ;;  %v1375_v38 = vld [vmem:[%s1941_s1 + $0x1e8] ss:$16 sps:$4 sm:$0xff]  }
  0x28   :  { %871 = vmatpush2.bf16.msra.mxu1 %v1284_v39  ;;  %829 = vmatprep.subr.bf16.mxu0 %v1285_v40  ;;  %v1378_v39 = vld [vmem:[%s1941_s1 + $0x3e8] ss:$16 sps:$4 sm:$0xff]   ;;  %v1383_v40 = vld [vmem:[%s1941_s1 + $0x1cc] ss:$16 sps:$4 sm:$0xff]  }
  0x29   :  { %872 = vmatprep.subr.bf16.mxu1 %v1287_v41  ;;  %v1386_v41 = vld [vmem:[%s1941_s1 + $0x3cc] ss:$16 sps:$4 sm:$0xff]  }
  0x2b   :  { %830 = vmatpush2.bf16.msra.mxu0 %v1289_v42  ;;  %v1381_v42 = vld [vmem:[%s1941_s1 + $0x1c8] ss:$16 sps:$4 sm:$0xff]  }
  0x2c   :  { %873 = vmatpush2.bf16.msra.mxu1 %v1290_v43  ;;  %831 = vmatprep.subr.bf16.mxu0 %v1291_v44  ;;  %v1384_v43 = vld [vmem:[%s1941_s1 + $0x3c8] ss:$16 sps:$4 sm:$0xff]   ;;  %v1389_v44 = vld [vmem:[%s1941_s1 + $0x1ac] ss:$16 sps:$4 sm:$0xff]  }
  0x2d   :  { %874 = vmatprep.subr.bf16.mxu1 %v1293_v45  ;;  %v1392_v45 = vld [vmem:[%s1941_s1 + $0x3ac] ss:$16 sps:$4 sm:$0xff]  }
  0x2f   :  { %832 = vmatpush2.bf16.msra.mxu0 %v1295_v46  ;;  %v1387_v46 = vld [vmem:[%s1941_s1 + $0x1a8] ss:$16 sps:$4 sm:$0xff]  }
  0x30   :  { %875 = vmatpush2.bf16.msra.mxu1 %v1296_v47  ;;  %833 = vmatprep.subr.bf16.mxu0 %v1297_v48  ;;  %v1390_v47 = vld [vmem:[%s1941_s1 + $0x3a8] ss:$16 sps:$4 sm:$0xff]   ;;  %v1395_v48 = vld [vmem:[%s1941_s1 + $0x18c] ss:$16 sps:$4 sm:$0xff]  }
  0x31   :  { %876 = vmatprep.subr.bf16.mxu1 %v1299_v50  ;;  %v1393_v50 = vld [vmem:[%s1941_s1 + $0x188] ss:$16 sps:$4 sm:$0xff]  }
  0x33   :  { %834 = vmatpush2.bf16.msra.mxu0 %v1301_v52  ;;  %v1401_v52 = vld [vmem:[%s1941_s1 + $0x16c] ss:$16 sps:$4 sm:$0xff]  }
  0x34   :  { %877 = vmatpush2.bf16.msra.mxu1 %v1302_v53  ;;  %835 = vmatprep.subr.bf16.mxu0 %v1303_v54  ;;  %v1404_v53 = vld [vmem:[%s1941_s1 + $0x36c] ss:$16 sps:$4 sm:$0xff]   ;;  %v1399_v54 = vld [vmem:[%s1941_s1 + $0x168] ss:$16 sps:$4 sm:$0xff]  }
  0x35   :  { %878 = vmatprep.subr.bf16.mxu1 %v1305_v55  ;;  %v1402_v55 = vld [vmem:[%s1941_s1 + $0x368] ss:$16 sps:$4 sm:$0xff]  }
  0x37   :  { %836 = vmatpush2.bf16.msra.mxu0 %v1307_v56  ;;  %v1407_v56 = vld [vmem:[%s1941_s1 + $0x14c] ss:$16 sps:$4 sm:$0xff]  }
  0x38   :  { %879 = vmatpush2.bf16.msra.mxu1 %v1308_v57  ;;  %837 = vmatprep.subr.bf16.mxu0 %v1309_v58  ;;  %v1410_v57 = vld [vmem:[%s1941_s1 + $0x34c] ss:$16 sps:$4 sm:$0xff]   ;;  %v1405_v58 = vld [vmem:[%s1941_s1 + $0x148] ss:$16 sps:$4 sm:$0xff]  }
  0x39   :  { %880 = vmatprep.subr.bf16.mxu1 %v1311_v59  ;;  %v1408_v59 = vld [vmem:[%s1941_s1 + $0x348] ss:$16 sps:$4 sm:$0xff]  }
  0x3b   :  { %838 = vmatpush2.bf16.msra.mxu0 %v1313_v60  ;;  %v1413_v60 = vld [vmem:[%s1941_s1 + $0x12c] ss:$16 sps:$4 sm:$0xff]  }
  0x3c   :  { %881 = vmatpush2.bf16.msra.mxu1 %v1314_v61  ;;  %839 = vmatprep.subr.bf16.mxu0 %v1315_v62  ;;  %v1416_v61 = vld [vmem:[%s1941_s1 + $0x32c] ss:$16 sps:$4 sm:$0xff]   ;;  %v1411_v62 = vld [vmem:[%s1941_s1 + $0x128] ss:$16 sps:$4 sm:$0xff]  }
  0x3d   :  { %882 = vmatprep.subr.bf16.mxu1 %v1317_v63  ;;  %v1414_v63 = vld [vmem:[%s1941_s1 + $0x328] ss:$16 sps:$4 sm:$0xff]  }
  0x3f   :  { %840 = vmatpush2.bf16.msra.mxu0 %v1319_v0  ;;  %v1419_v0 = vld [vmem:[%s1941_s1 + $0x10c] ss:$16 sps:$4 sm:$0xff]  }
  0x40   :  { %883 = vmatpush2.bf16.msra.mxu1 %v1320_v1  ;;  %895 = vmatprep.subr.bf16.mxu0 %v1329_v2  ;;  %v1422_v1 = vld [vmem:[%s1941_s1 + $0x30c] ss:$16 sps:$4 sm:$0xff]   ;;  %v1417_v2 = vld [vmem:[%s1941_s1 + $0x108] ss:$16 sps:$4 sm:$0xff]  }
  0x41   :  { %938 = vmatprep.subr.bf16.mxu1 %v1332_v3  ;;  %v1420_v3 = vld [vmem:[%s1941_s1 + $0x308] ss:$16 sps:$4 sm:$0xff]  }
  0x42   :  { %842 = vmatmul.mubr.bf16.vlgmr.msra.gmra.mxu0 %v1660_v4 }
  0x43   :  { %885 = vmatmul.mubr.bf16.vlgmr.msra.gmra.mxu1 %v1665_v5  ;;  %896 = vmatpush1.bf16.msra.mxu0 %v1327_v6 }
  0x44   :  { %939 = vmatpush1.bf16.msra.mxu1 %v1330_v7  ;;  %897 = vmatprep.subr.bf16.mxu0 %v1335_v8 }
  0x45   :  { %940 = vmatprep.subr.bf16.mxu1 %v1338_v9  ;;  %927 = vmatprep.mubr.bf16.mxu0 %v1323_v49  ;;  %v1398_v49 = vld [vmem:[%s1941_s1 + $0x38c] ss:$16 sps:$4 sm:$0xff]  }
  0x46   :  { %970 = vmatprep.mubr.bf16.mxu1 %v1326_v51  ;;  %v1396_v51 = vld [vmem:[%s1941_s1 + $0x388] ss:$16 sps:$4 sm:$0xff]  }
  0x47   :  { %898 = vmatpush1.bf16.msra.mxu0 %v1333_v10 }
  0x48   :  { %941 = vmatpush1.bf16.msra.mxu1 %v1336_v11  ;;  %899 = vmatprep.subr.bf16.mxu0 %v1341_v12 }
  0x49   :  { %942 = vmatprep.subr.bf16.mxu1 %v1344_v13 }
  0x4b   :  { %900 = vmatpush1.bf16.msra.mxu0 %v1339_v14 }
  0x4c   :  { %943 = vmatpush1.bf16.msra.mxu1 %v1342_v15  ;;  %901 = vmatprep.subr.bf16.mxu0 %v1347_v16 }
  0x4d   :  { %944 = vmatprep.subr.bf16.mxu1 %v1350_v17 }
  0x4f   :  { %902 = vmatpush1.bf16.msra.mxu0 %v1345_v18 }
  0x50   :  { %945 = vmatpush1.bf16.msra.mxu1 %v1348_v19  ;;  %903 = vmatprep.subr.bf16.mxu0 %v1353_v20 }
  0x51   :  { %946 = vmatprep.subr.bf16.mxu1 %v1356_v21 }
  0x53   :  { %904 = vmatpush1.bf16.msra.mxu0 %v1351_v22 }
  0x54   :  { %947 = vmatpush1.bf16.msra.mxu1 %v1354_v23  ;;  %905 = vmatprep.subr.bf16.mxu0 %v1359_v24 }
  0x55   :  { %948 = vmatprep.subr.bf16.mxu1 %v1362_v25 }
  0x57   :  { %906 = vmatpush1.bf16.msra.mxu0 %v1357_v26 }
  0x58   :  { %949 = vmatpush1.bf16.msra.mxu1 %v1360_v27  ;;  %907 = vmatprep.subr.bf16.mxu0 %v1365_v28 }
  0x59   :  { %950 = vmatprep.subr.bf16.mxu1 %v1368_v29 }
  0x5b   :  { %908 = vmatpush1.bf16.msra.mxu0 %v1363_v30 }
  0x5c   :  { %951 = vmatpush1.bf16.msra.mxu1 %v1366_v31  ;;  %909 = vmatprep.subr.bf16.mxu0 %v1371_v32 }
  0x5d   :  { %952 = vmatprep.subr.bf16.mxu1 %v1374_v33 }
  0x5f   :  { %910 = vmatpush1.bf16.msra.mxu0 %v1369_v34 }
  0x60   :  { %953 = vmatpush1.bf16.msra.mxu1 %v1372_v35  ;;  %911 = vmatprep.subr.bf16.mxu0 %v1377_v36 }
  0x61   :  { %954 = vmatprep.subr.bf16.mxu1 %v1380_v37 }
  0x63   :  { %912 = vmatpush2.bf16.msra.mxu0 %v1375_v38 }
  0x64   :  { %955 = vmatpush2.bf16.msra.mxu1 %v1378_v39  ;;  %913 = vmatprep.subr.bf16.mxu0 %v1383_v40 }
  0x65   :  { %956 = vmatprep.subr.bf16.mxu1 %v1386_v41 }
  0x67   :  { %914 = vmatpush2.bf16.msra.mxu0 %v1381_v42 }
  0x68   :  { %957 = vmatpush2.bf16.msra.mxu1 %v1384_v43  ;;  %915 = vmatprep.subr.bf16.mxu0 %v1389_v44 }
  0x69   :  { %958 = vmatprep.subr.bf16.mxu1 %v1392_v45 }
  0x6b   :  { %916 = vmatpush2.bf16.msra.mxu0 %v1387_v46 }
  0x6c   :  { %959 = vmatpush2.bf16.msra.mxu1 %v1390_v47  ;;  %917 = vmatprep.subr.bf16.mxu0 %v1395_v48  ;;  %v1427_v48 = vmov 0  }
  0x6d   :  { %960 = vmatprep.subr.bf16.mxu1 %v1398_v49  ;;  %1223 = vset.pattern.permute.xlu0 %v1427_v48 }
  0x6e   :  { %1224 = vset.pattern.permute.xlu1 %v1427_v48 }
  0x6f   :  { %918 = vmatpush2.bf16.msra.mxu0 %v1393_v50 }
  0x70   :  { %961 = vmatpush2.bf16.msra.mxu1 %v1396_v51  ;;  %919 = vmatprep.subr.bf16.mxu0 %v1401_v52 }
  0x71   :  { %962 = vmatprep.subr.bf16.mxu1 %v1404_v53 }
  0x73   :  { %920 = vmatpush2.bf16.msra.mxu0 %v1399_v54 }
  0x74   :  { %963 = vmatpush2.bf16.msra.mxu1 %v1402_v55  ;;  %921 = vmatprep.subr.bf16.mxu0 %v1407_v56 }
  0x75   :  { %964 = vmatprep.subr.bf16.mxu1 %v1410_v57 }
  0x77   :  { %922 = vmatpush2.bf16.msra.mxu0 %v1405_v58 }
  0x78   :  { %965 = vmatpush2.bf16.msra.mxu1 %v1408_v59  ;;  %923 = vmatprep.subr.bf16.mxu0 %v1413_v60 }
  0x79   :  { %966 = vmatprep.subr.bf16.mxu1 %v1416_v61 }
  0x7b   :  { %924 = vmatpush2.bf16.msra.mxu0 %v1411_v62 }
  0x7c   :  { %967 = vmatpush2.bf16.msra.mxu1 %v1414_v63  ;;  %925 = vmatprep.subr.bf16.mxu0 %v1419_v0 }
  0x7d   :  { %968 = vmatprep.subr.bf16.mxu1 %v1422_v1  ;;  %v1020_v1 = vld [vmem:[%s1943_s2] sm:$0xff] }
  0x7f   :  { %926 = vmatpush2.bf16.msra.mxu0 %v1417_v2 }
  0x80   :  { %969 = vmatpush2.bf16.msra.mxu1 %v1420_v3 }
  0x82   :  { %928 = vmatmul.mubr.bf16.vlgmr.msra.gmra.mxu0 %v1660_v4 }
  0x83   :  { %971 = vmatmul.mubr.bf16.vlgmr.msra.gmra.mxu1 %v1665_v5 }
 0x102   :  { %v843_v6 = vpop.f32.mrf.mxu0 }
 0x103   :  { %v886_v7 = vpop.f32.mrf.mxu1 }
 0x104   :  { %v845_v8 = vpop.f32.mrf.mxu0  ;;  %v1857_v12 = vadd.f32 %v886_v7, %v843_v6  ;;  %v1021_v6 = vld [vmem:[%s1943_s2 + $0x8] sm:$0xff] }
 0x105   :  { %v888_v9 = vpop.f32.mrf.mxu1 }
 0x106   :  { %v847_v10 = vpop.f32.mrf.mxu0  ;;  %v1859_v13 = vadd.f32 %v888_v9, %v845_v8  ;;  %v994_v17 = vmul.f32 %v1857_v12, %v1857_v12 }
 0x107   :  { %v890_v11 = vpop.f32.mrf.mxu1 }
 0x108   :  { %v849_v14 = vpop.f32.mrf.mxu0  ;;  %v995_v4 = vmul.f32 %v1859_v13, %v1859_v13  ;;  %v1867_v5 = vadd.f32 %v890_v11, %v847_v10  ;;  %v981_v21 = vadd.f32 %v1859_v13, %v1857_v12  ;;  %v1028_v10 = vld [vmem:[%s1944_s3] sm:$0xff] }
 0x109   :  { %v892_v15 = vpop.f32.mrf.mxu1 }
 0x10a   :  { %v1861_v16 = vadd.f32 %v892_v15, %v849_v14  ;;  %v1002_v28 = vadd.f32 %v995_v4, %v994_v17  ;;  %v998_v29 = vmul.f32 %v1867_v5, %v1867_v5  ;;  %v1029_v15 = vld [vmem:[%s1944_s3 + $0x8] sm:$0xff] }
 0x10c   :  { %v999_v22 = vmul.f32 %v1861_v16, %v1861_v16  ;;  %v986_v30 = vadd.f32 %v1861_v16, %v1867_v5 }
 0x10e   :  { %v1007_v39 = vadd.f32 %v999_v22, %v998_v29 }
 0x142   :  { %v929_v18 = vpop.f32.mrf.mxu0 }
 0x143   :  { %v972_v19 = vpop.f32.mrf.mxu1 }
 0x144   :  { %v1869_v20 = vadd.f32 %v972_v19, %v929_v18  ;;  %v931_v23 = vpop.f32.mrf.mxu0 }
 0x145   :  { %v974_v24 = vpop.f32.mrf.mxu1 }
 0x146   :  { %v1875_v25 = vadd.f32 %v974_v24, %v931_v23  ;;  %v982_v26 = vadd.f32 %v981_v21, %v1869_v20  ;;  %v996_v27 = vmul.f32 %v1869_v20, %v1869_v20  ;;  %v933_v31 = vpop.f32.mrf.mxu0 }
 0x147   :  { %v976_v32 = vpop.f32.mrf.mxu1 }
 0x148   :  { %v1884_v33 = vadd.f32 %v976_v32, %v933_v31  ;;  %v983_v34 = vadd.f32 %v982_v26, %v1875_v25  ;;  %v997_v35 = vmul.f32 %v1875_v25, %v1875_v25  ;;  %v1003_v36 = vadd.f32 %v1002_v28, %v996_v27  ;;  %v935_v37 = vpop.f32.mrf.mxu0 }
 0x149   :  { %v978_v38 = vpop.f32.mrf.mxu1 }
 0x14a   :  { %v1000_v40 = vmul.f32 %v1884_v33, %v1884_v33  ;;  %v1891_v41 = vadd.f32 %v978_v38, %v935_v37  ;;  %984 = vadd.xlane.f32.xlu0 %v983_v34  ;;  %v1004_v42 = vadd.f32 %v1003_v36, %v997_v35  ;;  %v987_v43 = vadd.f32 %v986_v30, %v1884_v33 }
 0x14c   :  { %1005 = vadd.xlane.f32.xlu1 %v1004_v42  ;;  %v988_v44 = vadd.f32 %v987_v43, %v1891_v41  ;;  %v1001_v45 = vmul.f32 %v1891_v41, %v1891_v41  ;;  %v1008_v46 = vadd.f32 %v1007_v39, %v1000_v40 }
 0x14e   :  { %989 = vadd.xlane.f32.xlu0 %v988_v44  ;;  %v1009_v47 = vadd.f32 %v1008_v46, %v1001_v45 }
 0x150   :  { %1010 = vadd.xlane.f32.xlu1 %v1009_v47 }
 0x1d3   :  { %v985_v49 = vpop.xlane.xlu0 %984 }
 0x1d4   :  { %v992_v50 = vmul.f32 0.001953125, %v985_v49 }
 0x1d5   :  { %v1006_v51 = vpop.xlane.xlu1 %1005 }
 0x1d6   :  { %v1014_v52 = vmul.f32 %v992_v50, %v992_v50  ;;  %v1012_v53 = vmul.f32 0.001953125, %v1006_v51 }
 0x1d7   :  { %v990_v54 = vpop.xlane.xlu0 %989 }
 0x1d8   :  { %v1016_v55 = vsub.f32 %v1012_v53, %v1014_v52  ;;  %v993_v56 = vmul.f32 0.001953125, %v990_v54 }
 0x1d9   :  { %v1011_v57 = vpop.xlane.xlu1 %1010 }
 0x1da   :  { %v1018_v58 = vmax.f32 %v1016_v55, 0.0  ;;  %v1015_v59 = vmul.f32 %v993_v56, %v993_v56  ;;  %v1013_v60 = vmul.f32 0.001953125, %v1011_v57 }
 0x1dc   :  { %v1022_v61 = vadd.f32 1e-05, %v1018_v58  ;;  %v1017_v62 = vsub.f32 %v1013_v60, %v1015_v59 }
 0x1de   :  { %1423 = vrsqrt.f32 %v1022_v61  ;;  %v1019_v63 = vmax.f32 %v1017_v62, 0.0 }
 0x1e0   :  { %v1023_v0 = vadd.f32 1e-05, %v1019_v63 }
 0x1e2   :  { %1425 = vrsqrt.f32 %v1023_v0 }
 0x1eb   :  { %v1424_v2 = vpop.eup %1423 }
 0x1ec   :  { %v1026_v3 = vmul.f32 %v1424_v2, %v1020_v1 }
 0x1ee   :  { %1036 = vperm.xlu0 %1223, %v1026_v3   ;;  %v1030_v9 = vmul.f32 %v1026_v3, %v992_v50 }
 0x1ef   :  { %v1426_v7 = vpop.eup %1425 }
 0x1f0   :  { %v1027_v8 = vmul.f32 %v1426_v7, %v1021_v6  ;;  %v1032_v11 = vsub.f32 %v1028_v10, %v1030_v9 }
 0x1f2   :  { %1041 = vperm.xlu1 %1224, %v1027_v8   ;;  %v1031_v14 = vmul.f32 %v1027_v8, %v993_v56 }
 0x1f4   :  { %v1033_v17 = vsub.f32 %v1029_v15, %v1031_v14 }
 0x1f6   :  { %1054 = vperm.xlu1 %1224, %v1032_v11  }
 0x1fa   :  { %1059 = vperm.xlu1 %1224, %v1033_v17  }
 0x269   :  { %v1037_v4 = vpop.permute.xlu0 %1036 }
 0x26a   :  { %v1044_v19 = vmul.f32 %v1037_v4, %v1857_v12  ;;  %v1045_v21 = vmul.f32 %v1037_v4, %v1859_v13  ;;  %v1046_v22 = vmul.f32 %v1037_v4, %v1869_v20  ;;  %v1047_v23 = vmul.f32 %v1037_v4, %v1875_v25 }
 0x26d   :  { %v1042_v18 = vpop.permute.xlu1 %1041 }
 0x26e   :  { %v1048_v30 = vmul.f32 %v1042_v18, %v1867_v5  ;;  %v1049_v31 = vmul.f32 %v1042_v18, %v1861_v16  ;;  %v1050_v32 = vmul.f32 %v1042_v18, %v1884_v33  ;;  %v1051_v34 = vmul.f32 %v1042_v18, %v1891_v41 }
 0x271   :  { %v1055_v24 = vpop.permute.xlu1 %1054 }
 0x272   :  { %v1062_v26 = vadd.f32 %v1055_v24, %v1044_v19  ;;  %v1063_v27 = vadd.f32 %v1055_v24, %v1045_v21  ;;  %v1064_v28 = vadd.f32 %v1055_v24, %v1046_v22  ;;  %v1065_v29 = vadd.f32 %v1055_v24, %v1047_v23 }
 0x274   :  { %v1070_v12 = vmax.f32 %v1062_v26, 0.0  ;;  %v1071_v35 = vmax.f32 %v1063_v27, 0.0  ;;  %v1072_v13 = vmax.f32 %v1064_v28, 0.0  ;;  %v1073_v36 = vmax.f32 %v1065_v29, 0.0 }
 0x275   :  { %v1060_v20 = vpop.permute.xlu1 %1059 }
 0x276   :  { %1078 = vst [vmem:[%s1945_s4] sm:$0xff] %v1070_v12  ;;  %1079 = vst [vmem:[%s1945_s4 + $0x8] sm:$0xff] %v1071_v35  ;;  %v1066_v16 = vadd.f32 %v1060_v20, %v1048_v30  ;;  %v1067_v5 = vadd.f32 %v1060_v20, %v1049_v31  ;;  %v1068_v25 = vadd.f32 %v1060_v20, %v1050_v32 }
 0x277   :  { %1080 = vst [vmem:[%s1945_s4 + $0x10] sm:$0xff] %v1072_v13  ;;  %1081 = vst [vmem:[%s1945_s4 + $0x18] sm:$0xff] %v1073_v36  ;;  %v1069_v33 = vadd.f32 %v1060_v20, %v1051_v34 }
 0x278   :  { %v1074_v37 = vmax.f32 %v1066_v16, 0.0  ;;  %v1075_v38 = vmax.f32 %v1067_v5, 0.0  ;;  %v1076_v39 = vmax.f32 %v1068_v25, 0.0 }
 0x279   :  { %v1077_v40 = vmax.f32 %v1069_v33, 0.0 }
 0x27a   :  { %1082 = vst [vmem:[%s1945_s4 + $0x20] sm:$0xff] %v1074_v37  ;;  %1083 = vst [vmem:[%s1945_s4 + $0x28] sm:$0xff] %v1075_v38 }
 0x27b   :  { %1084 = vst [vmem:[%s1945_s4 + $0x30] sm:$0xff] %v1076_v39  ;;  %1085 = vst [vmem:[%s1945_s4 + $0x38] sm:$0xff] %v1077_v40 }

// kernel: generator_forward.8
= control target key start
LH: loop header
LB: loop body
LE: loop exit
PB: predicated region body
PF: predicated region fallthrough
CT: control target
= control target key end

     0   :  { %s3244_s1 = inlined_call_operand.vmem [shape: bf16[256,2048], index: 1, kind: input, shape index: {}]   ;;  %s3245_s0 = inlined_call_operand.vmem [shape: bf16[8,256], index: 0, kind: input, shape index: {}]   ;;  %s3246_s2 = inlined_call_operand.vmem [shape: f32[8,1], index: 2, kind: input, shape index: {}]   ;;  %s3247_s3 = inlined_call_operand.vmem [shape: f32[8,1], index: 3, kind: input, shape index: {}]   ;;  %s3248_s4 = inlined_call_operand.vmem [shape: f32[8,2048], index: 4, kind: output, shape index: {}]  }
   0x1   :  { %v130_v0 = vld [vmem:[%s3244_s1 + $0x380] sm:$0xff]  ;;  %v131_v2 = vld [vmem:[%s3244_s1 + $0x388] sm:$0xff] }
   0x2   :  { %v138_v1 = vld [vmem:[%s3244_s1 + $0x3c0] sm:$0xff]  ;;  %v139_v4 = vld [vmem:[%s3244_s1 + $0x3c8] sm:$0xff] }
   0x3   :  { %v2145_v3 = vcombine.high %v130_v0, %v138_v1  ;;  %v2144_v5 = vcombine.low %v130_v0, %v138_v1  ;;  %v114_v6 = vld [vmem:[%s3244_s1 + $0x300] sm:$0xff]  ;;  %v2147_v8 = vcombine.high %v131_v2, %v139_v4  ;;  %v2146_v9 = vcombine.low %v131_v2, %v139_v4  ;;  %v115_v11 = vld [vmem:[%s3244_s1 + $0x308] sm:$0xff] }
   0x4   :  { %v122_v7 = vld [vmem:[%s3244_s1 + $0x340] sm:$0xff]  ;;  %v123_v12 = vld [vmem:[%s3244_s1 + $0x348] sm:$0xff] }
   0x5   :  { %v2129_v10 = vcombine.high %v114_v6, %v122_v7  ;;  %v98_v13 = vld [vmem:[%s3244_s1 + $0x280] sm:$0xff]  ;;  %1561 = vmatprep.subr.bf16.mxu0 %v2145_v3  ;;  %v2131_v14 = vcombine.high %v115_v11, %v123_v12  ;;  %v99_v16 = vld [vmem:[%s3244_s1 + $0x288] sm:$0xff]  ;;  %1602 = vmatprep.subr.bf16.mxu1 %v2147_v8  ;;  %v2128_v18 = vcombine.low %v114_v6, %v122_v7 }
   0x6   :  { %v106_v15 = vld [vmem:[%s3244_s1 + $0x2c0] sm:$0xff]  ;;  %v107_v17 = vld [vmem:[%s3244_s1 + $0x2c8] sm:$0xff]  ;;  %1562 = vmatpush1.bf16.msra.mxu0 %v2144_v5  ;;  %1603 = vmatpush1.bf16.msra.mxu1 %v2146_v9  ;;  %v2130_v19 = vcombine.low %v115_v11, %v123_v12 }
   0x7   :  { %1563 = vmatprep.subr.bf16.mxu0 %v2129_v10  ;;  %v2113_v20 = vcombine.high %v98_v13, %v106_v15  ;;  %1604 = vmatprep.subr.bf16.mxu1 %v2131_v14  ;;  %v2115_v21 = vcombine.high %v99_v16, %v107_v17  ;;  %v82_v22 = vld [vmem:[%s3244_s1 + $0x200] sm:$0xff]  ;;  %v83_v24 = vld [vmem:[%s3244_s1 + $0x208] sm:$0xff]  ;;  %v2112_v26 = vcombine.low %v98_v13, %v106_v15 }
   0x8   :  { %v90_v23 = vld [vmem:[%s3244_s1 + $0x240] sm:$0xff]  ;;  %v91_v25 = vld [vmem:[%s3244_s1 + $0x248] sm:$0xff]  ;;  %v2114_v27 = vcombine.low %v99_v16, %v107_v17 }
   0x9   :  { %v2097_v28 = vcombine.high %v82_v22, %v90_v23  ;;  %v2099_v29 = vcombine.high %v83_v24, %v91_v25  ;;  %v66_v30 = vld [vmem:[%s3244_s1 + $0x180] sm:$0xff]  ;;  %v67_v32 = vld [vmem:[%s3244_s1 + $0x188] sm:$0xff]  ;;  %v2096_v34 = vcombine.low %v82_v22, %v90_v23  ;;  %v2098_v35 = vcombine.low %v83_v24, %v91_v25 }
   0xa   :  { %1564 = vmatpush1.bf16.msra.mxu0 %v2128_v18  ;;  %1605 = vmatpush1.bf16.msra.mxu1 %v2130_v19  ;;  %v74_v31 = vld [vmem:[%s3244_s1 + $0x1c0] sm:$0xff]  ;;  %v75_v33 = vld [vmem:[%s3244_s1 + $0x1c8] sm:$0xff] }
   0xb   :  { %1565 = vmatprep.subr.bf16.mxu0 %v2113_v20  ;;  %1606 = vmatprep.subr.bf16.mxu1 %v2115_v21  ;;  %v2081_v36 = vcombine.high %v66_v30, %v74_v31  ;;  %v2083_v37 = vcombine.high %v67_v32, %v75_v33  ;;  %v50_v38 = vld [vmem:[%s3244_s1 + $0x100] sm:$0xff]  ;;  %v51_v40 = vld [vmem:[%s3244_s1 + $0x108] sm:$0xff]  ;;  %v2080_v42 = vcombine.low %v66_v30, %v74_v31 }
   0xc   :  { %v58_v39 = vld [vmem:[%s3244_s1 + $0x140] sm:$0xff]  ;;  %v59_v41 = vld [vmem:[%s3244_s1 + $0x148] sm:$0xff]  ;;  %v2082_v43 = vcombine.low %v67_v32, %v75_v33 }
   0xd   :  { %v2065_v44 = vcombine.high %v50_v38, %v58_v39  ;;  %v2067_v45 = vcombine.high %v51_v40, %v59_v41  ;;  %v34_v46 = vld [vmem:[%s3244_s1 + $0x80] sm:$0xff]  ;;  %v35_v48 = vld [vmem:[%s3244_s1 + $0x88] sm:$0xff]  ;;  %v2064_v50 = vcombine.low %v50_v38, %v58_v39  ;;  %v2066_v51 = vcombine.low %v51_v40, %v59_v41 }
   0xe   :  { %1566 = vmatpush1.bf16.msra.mxu0 %v2112_v26  ;;  %1607 = vmatpush1.bf16.msra.mxu1 %v2114_v27  ;;  %v42_v47 = vld [vmem:[%s3244_s1 + $0xc0] sm:$0xff]  ;;  %v43_v49 = vld [vmem:[%s3244_s1 + $0xc8] sm:$0xff] }
   0xf   :  { %1567 = vmatprep.subr.bf16.mxu0 %v2097_v28  ;;  %1608 = vmatprep.subr.bf16.mxu1 %v2099_v29  ;;  %v2049_v52 = vcombine.high %v34_v46, %v42_v47  ;;  %v2408_v53 = vld [vmem:[%s3245_s0] sm:$0xff]  ;;  %v2051_v54 = vcombine.high %v35_v48, %v43_v49  ;;  %v19_v58 = vld [vmem:[%s3244_s1 + $0x8] sm:$0xff]  ;;  %v2048_v60 = vcombine.low %v34_v46, %v42_v47 }
  0x10   :  { %v18_v55 = vld [vmem:[%s3244_s1] sm:$0xff]  ;;  %v2418_v57 = vcombine.high %v2408_v53, %v2408_v53  ;;  %v27_v59 = vld [vmem:[%s3244_s1 + $0x48] sm:$0xff]  ;;  %v2050_v61 = vcombine.low %v35_v48, %v43_v49 }
  0x11   :  { %v26_v56 = vld [vmem:[%s3244_s1 + $0x40] sm:$0xff]  ;;  %v2035_v63 = vcombine.high %v19_v58, %v27_v59  ;;  %v259_v2 = vld [vmem:[%s3244_s1 + $0x788] sm:$0xff]  ;;  %v2034_v5 = vcombine.low %v19_v58, %v27_v59 }
  0x12   :  { %1568 = vmatpush1.bf16.msra.mxu0 %v2096_v34  ;;  %1609 = vmatpush1.bf16.msra.mxu1 %v2098_v35  ;;  %v2033_v62 = vcombine.high %v18_v55, %v26_v56  ;;  %v258_v0 = vld [vmem:[%s3244_s1 + $0x780] sm:$0xff]  ;;  %v267_v3 = vld [vmem:[%s3244_s1 + $0x7c8] sm:$0xff]  ;;  %v2032_v4 = vcombine.low %v18_v55, %v26_v56 }
  0x13   :  { %1569 = vmatprep.subr.bf16.mxu0 %v2081_v36  ;;  %1610 = vmatprep.subr.bf16.mxu1 %v2083_v37  ;;  %v266_v1 = vld [vmem:[%s3244_s1 + $0x7c0] sm:$0xff]  ;;  %v2275_v7 = vcombine.high %v259_v2, %v267_v3  ;;  %v243_v10 = vld [vmem:[%s3244_s1 + $0x708] sm:$0xff]  ;;  %v2274_v13 = vcombine.low %v259_v2, %v267_v3  ;;  %v132_v2 = vld [vmem:[%s3244_s1 + $0x390] sm:$0xff] }
  0x14   :  { %1593 = vmatprep.mubr.bf16.mxu0 %v2418_v57  ;;  %1634 = vmatprep.mubr.bf16.mxu1 %v2418_v57  ;;  %v2273_v6 = vcombine.high %v258_v0, %v266_v1  ;;  %v242_v8 = vld [vmem:[%s3244_s1 + $0x700] sm:$0xff]  ;;  %v251_v11 = vld [vmem:[%s3244_s1 + $0x748] sm:$0xff]  ;;  %v2272_v12 = vcombine.low %v258_v0, %v266_v1  ;;  %v140_v3 = vld [vmem:[%s3244_s1 + $0x3d0] sm:$0xff] }
  0x15   :  { %v250_v9 = vld [vmem:[%s3244_s1 + $0x740] sm:$0xff]  ;;  %v2259_v15 = vcombine.high %v243_v10, %v251_v11  ;;  %v227_v18 = vld [vmem:[%s3244_s1 + $0x688] sm:$0xff]  ;;  %v2258_v21 = vcombine.low %v243_v10, %v251_v11  ;;  %v116_v10 = vld [vmem:[%s3244_s1 + $0x310] sm:$0xff] }
  0x16   :  { %1570 = vmatpush1.bf16.msra.mxu0 %v2080_v42  ;;  %1611 = vmatpush1.bf16.msra.mxu1 %v2082_v43  ;;  %v2257_v14 = vcombine.high %v242_v8, %v250_v9  ;;  %v226_v16 = vld [vmem:[%s3244_s1 + $0x680] sm:$0xff]  ;;  %v235_v19 = vld [vmem:[%s3244_s1 + $0x6c8] sm:$0xff]  ;;  %v2256_v20 = vcombine.low %v242_v8, %v250_v9  ;;  %v2149_v8 = vcombine.high %v132_v2, %v140_v3  ;;  %v124_v11 = vld [vmem:[%s3244_s1 + $0x350] sm:$0xff] }
  0x17   :  { %1571 = vmatprep.subr.bf16.mxu0 %v2065_v44  ;;  %1612 = vmatprep.subr.bf16.mxu1 %v2067_v45  ;;  %v234_v17 = vld [vmem:[%s3244_s1 + $0x6c0] sm:$0xff]  ;;  %v2243_v23 = vcombine.high %v227_v18, %v235_v19  ;;  %v211_v26 = vld [vmem:[%s3244_s1 + $0x608] sm:$0xff]  ;;  %v2242_v29 = vcombine.low %v227_v18, %v235_v19  ;;  %v108_v19 = vld [vmem:[%s3244_s1 + $0x2d0] sm:$0xff] }
  0x18   :  { %v2241_v22 = vcombine.high %v226_v16, %v234_v17  ;;  %v210_v24 = vld [vmem:[%s3244_s1 + $0x600] sm:$0xff]  ;;  %v219_v27 = vld [vmem:[%s3244_s1 + $0x648] sm:$0xff]  ;;  %v2240_v28 = vcombine.low %v226_v16, %v234_v17  ;;  %v2133_v17 = vcombine.high %v116_v10, %v124_v11 }
  0x19   :  { %v218_v25 = vld [vmem:[%s3244_s1 + $0x640] sm:$0xff]  ;;  %v2227_v31 = vcombine.high %v211_v26, %v219_v27  ;;  %v195_v34 = vld [vmem:[%s3244_s1 + $0x588] sm:$0xff]  ;;  %v2226_v37 = vcombine.low %v211_v26, %v219_v27  ;;  %v84_v26 = vld [vmem:[%s3244_s1 + $0x210] sm:$0xff] }
  0x1a   :  { %1572 = vmatpush1.bf16.msra.mxu0 %v2064_v50  ;;  %1613 = vmatpush1.bf16.msra.mxu1 %v2066_v51  ;;  %v2225_v30 = vcombine.high %v210_v24, %v218_v25  ;;  %v194_v32 = vld [vmem:[%s3244_s1 + $0x580] sm:$0xff]  ;;  %v203_v35 = vld [vmem:[%s3244_s1 + $0x5c8] sm:$0xff]  ;;  %v2224_v36 = vcombine.low %v210_v24, %v218_v25  ;;  %v92_v27 = vld [vmem:[%s3244_s1 + $0x250] sm:$0xff] }
  0x1b   :  { %1573 = vmatprep.subr.bf16.mxu0 %v2049_v52  ;;  %1614 = vmatprep.subr.bf16.mxu1 %v2051_v54  ;;  %v202_v33 = vld [vmem:[%s3244_s1 + $0x5c0] sm:$0xff]  ;;  %v2211_v39 = vcombine.high %v195_v34, %v203_v35  ;;  %v179_v42 = vld [vmem:[%s3244_s1 + $0x508] sm:$0xff]  ;;  %v2210_v45 = vcombine.low %v195_v34, %v203_v35  ;;  %v68_v34 = vld [vmem:[%s3244_s1 + $0x190] sm:$0xff] }
  0x1c   :  { %v2209_v38 = vcombine.high %v194_v32, %v202_v33  ;;  %v178_v40 = vld [vmem:[%s3244_s1 + $0x500] sm:$0xff]  ;;  %v187_v43 = vld [vmem:[%s3244_s1 + $0x548] sm:$0xff]  ;;  %v2208_v44 = vcombine.low %v194_v32, %v202_v33  ;;  %v2101_v32 = vcombine.high %v84_v26, %v92_v27  ;;  %v76_v35 = vld [vmem:[%s3244_s1 + $0x1d0] sm:$0xff] }
  0x1d   :  { %v186_v41 = vld [vmem:[%s3244_s1 + $0x540] sm:$0xff]  ;;  %v2195_v47 = vcombine.high %v179_v42, %v187_v43  ;;  %v163_v50 = vld [vmem:[%s3244_s1 + $0x488] sm:$0xff]  ;;  %v2194_v54 = vcombine.low %v179_v42, %v187_v43  ;;  %v52_v42 = vld [vmem:[%s3244_s1 + $0x110] sm:$0xff] }
  0x1e   :  { %1574 = vmatpush1.bf16.msra.mxu0 %v2048_v60  ;;  %1615 = vmatpush1.bf16.msra.mxu1 %v2050_v61  ;;  %v2193_v46 = vcombine.high %v178_v40, %v186_v41  ;;  %v162_v48 = vld [vmem:[%s3244_s1 + $0x480] sm:$0xff]  ;;  %v171_v51 = vld [vmem:[%s3244_s1 + $0x4c8] sm:$0xff]  ;;  %v2192_v52 = vcombine.low %v178_v40, %v186_v41  ;;  %v2085_v40 = vcombine.high %v68_v34, %v76_v35  ;;  %v60_v43 = vld [vmem:[%s3244_s1 + $0x150] sm:$0xff] }
  0x1f   :  { %1575 = vmatprep.subr.bf16.mxu0 %v2033_v62  ;;  %1616 = vmatprep.subr.bf16.mxu1 %v2035_v63  ;;  %v170_v49 = vld [vmem:[%s3244_s1 + $0x4c0] sm:$0xff]  ;;  %v2179_v56 = vcombine.high %v163_v50, %v171_v51  ;;  %v147_v60 = vld [vmem:[%s3244_s1 + $0x408] sm:$0xff]  ;;  %v2178_v63 = vcombine.low %v163_v50, %v171_v51  ;;  %v36_v50 = vld [vmem:[%s3244_s1 + $0x90] sm:$0xff] }
  0x20   :  { %v2177_v55 = vcombine.high %v162_v48, %v170_v49  ;;  %v146_v58 = vld [vmem:[%s3244_s1 + $0x400] sm:$0xff]  ;;  %v155_v61 = vld [vmem:[%s3244_s1 + $0x448] sm:$0xff]  ;;  %v2176_v62 = vcombine.low %v162_v48, %v170_v49  ;;  %v2069_v48 = vcombine.high %v52_v42, %v60_v43  ;;  %v44_v51 = vld [vmem:[%s3244_s1 + $0xd0] sm:$0xff] }
  0x21   :  { %v154_v59 = vld [vmem:[%s3244_s1 + $0x440] sm:$0xff]  ;;  %v2163_v1 = vcombine.high %v147_v60, %v155_v61 }
  0x22   :  { %1576 = vmatpush1.bf16.msra.mxu0 %v2032_v4  ;;  %1617 = vmatpush1.bf16.msra.mxu1 %v2034_v5  ;;  %v2161_v0 = vcombine.high %v146_v58, %v154_v59  ;;  %v133_v4 = vld [vmem:[%s3244_s1 + $0x398] sm:$0xff] }
  0x23   :  { %1577 = vmatprep.subr.bf16.mxu0 %v2273_v6  ;;  %1618 = vmatprep.subr.bf16.mxu1 %v2275_v7  ;;  %v141_v5 = vld [vmem:[%s3244_s1 + $0x3d8] sm:$0xff]  ;;  %v2160_v6 = vcombine.low %v146_v58, %v154_v59  ;;  %v2162_v7 = vcombine.low %v147_v60, %v155_v61  ;;  %v2053_v58 = vcombine.high %v36_v50, %v44_v51  ;;  %v20_v60 = vld [vmem:[%s3244_s1 + $0x10] sm:$0xff] }
  0x24   :  { %v2151_v9 = vcombine.high %v133_v4, %v141_v5  ;;  %v2150_v16 = vcombine.low %v133_v4, %v141_v5  ;;  %v28_v61 = vld [vmem:[%s3244_s1 + $0x50] sm:$0xff] }
  0x25   :  { %v260_v4 = vld [vmem:[%s3244_s1 + $0x790] sm:$0xff] }
  0x26   :  { %1578 = vmatpush2.bf16.msra.mxu0 %v2272_v12  ;;  %1619 = vmatpush2.bf16.msra.mxu1 %v2274_v13  ;;  %v2544_v12 = vcombine.low %v2408_v53, %v2408_v53  ;;  %v117_v13 = vld [vmem:[%s3244_s1 + $0x318] sm:$0xff]  ;;  %v100_v53 = vld [vmem:[%s3244_s1 + $0x290] sm:$0xff] }
  0x27   :  { %1579 = vmatprep.subr.bf16.mxu0 %v2257_v14  ;;  %1620 = vmatprep.subr.bf16.mxu1 %v2259_v15  ;;  %v125_v14 = vld [vmem:[%s3244_s1 + $0x358] sm:$0xff]  ;;  %v2148_v15 = vcombine.low %v132_v2, %v140_v3  ;;  %v2117_v24 = vcombine.high %v100_v53, %v108_v19  ;;  %v2037_v2 = vcombine.high %v20_v60, %v28_v61  ;;  %v268_v5 = vld [vmem:[%s3244_s1 + $0x7d0] sm:$0xff] }
  0x28   :  { %v2135_v18 = vcombine.high %v117_v13, %v125_v14 }
  0x2a   :  { %1580 = vmatpush2.bf16.msra.mxu0 %v2256_v20  ;;  %1621 = vmatpush2.bf16.msra.mxu1 %v2258_v21  ;;  %v101_v20 = vld [vmem:[%s3244_s1 + $0x298] sm:$0xff] }
  0x2b   :  { %1581 = vmatprep.subr.bf16.mxu0 %v2241_v22  ;;  %1622 = vmatprep.subr.bf16.mxu1 %v2243_v23  ;;  %v109_v21 = vld [vmem:[%s3244_s1 + $0x2d8] sm:$0xff]  ;;  %v2132_v22 = vcombine.low %v116_v10, %v124_v11  ;;  %v2134_v23 = vcombine.low %v117_v13, %v125_v14  ;;  %v2277_v10 = vcombine.high %v260_v4, %v268_v5  ;;  %v244_v13 = vld [vmem:[%s3244_s1 + $0x710] sm:$0xff] }
  0x2c   :  { %v2119_v25 = vcombine.high %v101_v20, %v109_v21  ;;  %v252_v14 = vld [vmem:[%s3244_s1 + $0x750] sm:$0xff] }
  0x2e   :  { %1582 = vmatpush2.bf16.msra.mxu0 %v2240_v28  ;;  %1623 = vmatpush2.bf16.msra.mxu1 %v2242_v29  ;;  %v85_v28 = vld [vmem:[%s3244_s1 + $0x218] sm:$0xff] }
  0x2f   :  { %1583 = vmatprep.subr.bf16.mxu0 %v2225_v30  ;;  %1624 = vmatprep.subr.bf16.mxu1 %v2227_v31  ;;  %v93_v29 = vld [vmem:[%s3244_s1 + $0x258] sm:$0xff]  ;;  %v2116_v30 = vcombine.low %v100_v53, %v108_v19  ;;  %v2118_v31 = vcombine.low %v101_v20, %v109_v21  ;;  %v2261_v53 = vcombine.high %v244_v13, %v252_v14  ;;  %v228_v20 = vld [vmem:[%s3244_s1 + $0x690] sm:$0xff] }
  0x30   :  { %v2103_v33 = vcombine.high %v85_v28, %v93_v29  ;;  %v236_v21 = vld [vmem:[%s3244_s1 + $0x6d0] sm:$0xff] }
  0x32   :  { %1584 = vmatpush2.bf16.msra.mxu0 %v2224_v36  ;;  %1625 = vmatpush2.bf16.msra.mxu1 %v2226_v37  ;;  %v69_v36 = vld [vmem:[%s3244_s1 + $0x198] sm:$0xff] }
  0x33   :  { %1585 = vmatprep.subr.bf16.mxu0 %v2209_v38  ;;  %1626 = vmatprep.subr.bf16.mxu1 %v2211_v39  ;;  %v77_v37 = vld [vmem:[%s3244_s1 + $0x1d8] sm:$0xff]  ;;  %v2100_v38 = vcombine.low %v84_v26, %v92_v27  ;;  %v2102_v39 = vcombine.low %v85_v28, %v93_v29  ;;  %v2245_v26 = vcombine.high %v228_v20, %v236_v21  ;;  %v212_v28 = vld [vmem:[%s3244_s1 + $0x610] sm:$0xff] }
  0x34   :  { %v2087_v41 = vcombine.high %v69_v36, %v77_v37  ;;  %v220_v29 = vld [vmem:[%s3244_s1 + $0x650] sm:$0xff] }
  0x36   :  { %1586 = vmatpush2.bf16.msra.mxu0 %v2208_v44  ;;  %1627 = vmatpush2.bf16.msra.mxu1 %v2210_v45  ;;  %v53_v44 = vld [vmem:[%s3244_s1 + $0x118] sm:$0xff] }
  0x37   :  { %1587 = vmatprep.subr.bf16.mxu0 %v2193_v46  ;;  %1628 = vmatprep.subr.bf16.mxu1 %v2195_v47  ;;  %v61_v45 = vld [vmem:[%s3244_s1 + $0x158] sm:$0xff]  ;;  %v2084_v46 = vcombine.low %v68_v34, %v76_v35  ;;  %v2086_v47 = vcombine.low %v69_v36, %v77_v37  ;;  %v2229_v34 = vcombine.high %v212_v28, %v220_v29  ;;  %v196_v36 = vld [vmem:[%s3244_s1 + $0x590] sm:$0xff] }
  0x38   :  { %v2071_v49 = vcombine.high %v53_v44, %v61_v45  ;;  %v204_v37 = vld [vmem:[%s3244_s1 + $0x5d0] sm:$0xff] }
  0x3a   :  { %1588 = vmatpush2.bf16.msra.mxu0 %v2192_v52  ;;  %1629 = vmatpush2.bf16.msra.mxu1 %v2194_v54  ;;  %v37_v52 = vld [vmem:[%s3244_s1 + $0x98] sm:$0xff] }
  0x3b   :  { %1589 = vmatprep.subr.bf16.mxu0 %v2177_v55  ;;  %1630 = vmatprep.subr.bf16.mxu1 %v2179_v56  ;;  %v45_v54 = vld [vmem:[%s3244_s1 + $0xd8] sm:$0xff]  ;;  %v2068_v55 = vcombine.low %v52_v42, %v60_v43  ;;  %v2070_v56 = vcombine.low %v53_v44, %v61_v45  ;;  %v2213_v42 = vcombine.high %v196_v36, %v204_v37  ;;  %v180_v44 = vld [vmem:[%s3244_s1 + $0x510] sm:$0xff] }
  0x3c   :  { %v2055_v59 = vcombine.high %v37_v52, %v45_v54  ;;  %v188_v45 = vld [vmem:[%s3244_s1 + $0x550] sm:$0xff] }
  0x3e   :  { %1590 = vmatpush2.bf16.msra.mxu0 %v2176_v62  ;;  %1631 = vmatpush2.bf16.msra.mxu1 %v2178_v63  ;;  %v21_v62 = vld [vmem:[%s3244_s1 + $0x18] sm:$0xff] }
  0x3f   :  { %1591 = vmatprep.subr.bf16.mxu0 %v2161_v0  ;;  %1632 = vmatprep.subr.bf16.mxu1 %v2163_v1  ;;  %v29_v63 = vld [vmem:[%s3244_s1 + $0x58] sm:$0xff]  ;;  %v2052_v0 = vcombine.low %v36_v50, %v44_v51  ;;  %v2054_v1 = vcombine.low %v37_v52, %v45_v54  ;;  %v2197_v50 = vcombine.high %v180_v44, %v188_v45  ;;  %v164_v52 = vld [vmem:[%s3244_s1 + $0x490] sm:$0xff] }
  0x40   :  { %v2039_v3 = vcombine.high %v21_v62, %v29_v63  ;;  %v172_v54 = vld [vmem:[%s3244_s1 + $0x4d0] sm:$0xff] }
  0x42   :  { %1592 = vmatpush2.bf16.msra.mxu0 %v2160_v6  ;;  %1633 = vmatpush2.bf16.msra.mxu1 %v2162_v7  ;;  %v261_v6 = vld [vmem:[%s3244_s1 + $0x798] sm:$0xff] }
  0x43   :  { %1643 = vmatprep.subr.bf16.mxu0 %v2149_v8  ;;  %1684 = vmatprep.subr.bf16.mxu1 %v2151_v9  ;;  %v269_v7 = vld [vmem:[%s3244_s1 + $0x7d8] sm:$0xff]  ;;  %v2036_v8 = vcombine.low %v20_v60, %v28_v61  ;;  %v2038_v9 = vcombine.low %v21_v62, %v29_v63  ;;  %v2181_v60 = vcombine.high %v164_v52, %v172_v54  ;;  %v148_v62 = vld [vmem:[%s3244_s1 + $0x410] sm:$0xff] }
  0x44   :  { %v2279_v11 = vcombine.high %v261_v6, %v269_v7  ;;  %v156_v63 = vld [vmem:[%s3244_s1 + $0x450] sm:$0xff] }
  0x45   :  { %1594 = vmatmul.mubr.bf16.vlgmr.msra.gmra.mxu0 %v2544_v12  ;;  %1635 = vmatmul.mubr.bf16.vlgmr.msra.gmra.mxu1 %v2544_v12 }
  0x46   :  { %1644 = vmatpush1.bf16.msra.mxu0 %v2148_v15  ;;  %1685 = vmatpush1.bf16.msra.mxu1 %v2150_v16  ;;  %v245_v15 = vld [vmem:[%s3244_s1 + $0x718] sm:$0xff] }
  0x47   :  { %1645 = vmatprep.subr.bf16.mxu0 %v2133_v17  ;;  %1686 = vmatprep.subr.bf16.mxu1 %v2135_v18  ;;  %v253_v16 = vld [vmem:[%s3244_s1 + $0x758] sm:$0xff]  ;;  %v2276_v17 = vcombine.low %v260_v4, %v268_v5  ;;  %v2278_v18 = vcombine.low %v261_v6, %v269_v7  ;;  %v2165_v4 = vcombine.high %v148_v62, %v156_v63  ;;  %v134_v6 = vld [vmem:[%s3244_s1 + $0x3a0] sm:$0xff] }
  0x48   :  { %1675 = vmatprep.mubr.bf16.mxu0 %v2418_v57  ;;  %1716 = vmatprep.mubr.bf16.mxu1 %v2418_v57  ;;  %v2263_v19 = vcombine.high %v245_v15, %v253_v16  ;;  %v142_v7 = vld [vmem:[%s3244_s1 + $0x3e0] sm:$0xff] }
  0x4a   :  { %1646 = vmatpush1.bf16.msra.mxu0 %v2132_v22  ;;  %1687 = vmatpush1.bf16.msra.mxu1 %v2134_v23  ;;  %v229_v22 = vld [vmem:[%s3244_s1 + $0x698] sm:$0xff] }
  0x4b   :  { %1647 = vmatprep.subr.bf16.mxu0 %v2117_v24  ;;  %1688 = vmatprep.subr.bf16.mxu1 %v2119_v25  ;;  %v237_v23 = vld [vmem:[%s3244_s1 + $0x6d8] sm:$0xff]  ;;  %v2260_v24 = vcombine.low %v244_v13, %v252_v14  ;;  %v2262_v25 = vcombine.low %v245_v15, %v253_v16  ;;  %v2153_v13 = vcombine.high %v134_v6, %v142_v7  ;;  %v118_v15 = vld [vmem:[%s3244_s1 + $0x320] sm:$0xff] }
  0x4c   :  { %v2247_v27 = vcombine.high %v229_v22, %v237_v23  ;;  %v126_v16 = vld [vmem:[%s3244_s1 + $0x360] sm:$0xff] }
  0x4e   :  { %1648 = vmatpush1.bf16.msra.mxu0 %v2116_v30  ;;  %1689 = vmatpush1.bf16.msra.mxu1 %v2118_v31  ;;  %v213_v30 = vld [vmem:[%s3244_s1 + $0x618] sm:$0xff] }
  0x4f   :  { %1649 = vmatprep.subr.bf16.mxu0 %v2101_v32  ;;  %1690 = vmatprep.subr.bf16.mxu1 %v2103_v33  ;;  %v221_v31 = vld [vmem:[%s3244_s1 + $0x658] sm:$0xff]  ;;  %v2244_v32 = vcombine.low %v228_v20, %v236_v21  ;;  %v2246_v33 = vcombine.low %v229_v22, %v237_v23  ;;  %v2137_v20 = vcombine.high %v118_v15, %v126_v16  ;;  %v102_v22 = vld [vmem:[%s3244_s1 + $0x2a0] sm:$0xff] }
  0x50   :  { %v2231_v35 = vcombine.high %v213_v30, %v221_v31  ;;  %v110_v23 = vld [vmem:[%s3244_s1 + $0x2e0] sm:$0xff] }
  0x52   :  { %1650 = vmatpush1.bf16.msra.mxu0 %v2100_v38  ;;  %1691 = vmatpush1.bf16.msra.mxu1 %v2102_v39  ;;  %v197_v38 = vld [vmem:[%s3244_s1 + $0x598] sm:$0xff] }
  0x53   :  { %1651 = vmatprep.subr.bf16.mxu0 %v2085_v40  ;;  %1692 = vmatprep.subr.bf16.mxu1 %v2087_v41  ;;  %v205_v39 = vld [vmem:[%s3244_s1 + $0x5d8] sm:$0xff]  ;;  %v2228_v40 = vcombine.low %v212_v28, %v220_v29  ;;  %v2230_v41 = vcombine.low %v213_v30, %v221_v31  ;;  %v2121_v28 = vcombine.high %v102_v22, %v110_v23  ;;  %v86_v30 = vld [vmem:[%s3244_s1 + $0x220] sm:$0xff] }
  0x54   :  { %v2215_v43 = vcombine.high %v197_v38, %v205_v39  ;;  %v94_v31 = vld [vmem:[%s3244_s1 + $0x260] sm:$0xff] }
  0x56   :  { %1652 = vmatpush1.bf16.msra.mxu0 %v2084_v46  ;;  %1693 = vmatpush1.bf16.msra.mxu1 %v2086_v47  ;;  %v181_v46 = vld [vmem:[%s3244_s1 + $0x518] sm:$0xff] }
  0x57   :  { %1653 = vmatprep.subr.bf16.mxu0 %v2069_v48  ;;  %1694 = vmatprep.subr.bf16.mxu1 %v2071_v49  ;;  %v189_v47 = vld [vmem:[%s3244_s1 + $0x558] sm:$0xff]  ;;  %v2212_v48 = vcombine.low %v196_v36, %v204_v37  ;;  %v2214_v49 = vcombine.low %v197_v38, %v205_v39  ;;  %v2105_v36 = vcombine.high %v86_v30, %v94_v31  ;;  %v70_v38 = vld [vmem:[%s3244_s1 + $0x1a0] sm:$0xff] }
  0x58   :  { %v2199_v51 = vcombine.high %v181_v46, %v189_v47  ;;  %v78_v39 = vld [vmem:[%s3244_s1 + $0x1e0] sm:$0xff] }
  0x5a   :  { %1654 = vmatpush1.bf16.msra.mxu0 %v2068_v55  ;;  %1695 = vmatpush1.bf16.msra.mxu1 %v2070_v56  ;;  %v165_v55 = vld [vmem:[%s3244_s1 + $0x498] sm:$0xff] }
  0x5b   :  { %1655 = vmatprep.subr.bf16.mxu0 %v2053_v58  ;;  %1696 = vmatprep.subr.bf16.mxu1 %v2055_v59  ;;  %v173_v56 = vld [vmem:[%s3244_s1 + $0x4d8] sm:$0xff]  ;;  %v2196_v58 = vcombine.low %v180_v44, %v188_v45  ;;  %v2198_v59 = vcombine.low %v181_v46, %v189_v47  ;;  %v2089_v44 = vcombine.high %v70_v38, %v78_v39  ;;  %v54_v46 = vld [vmem:[%s3244_s1 + $0x120] sm:$0xff] }
  0x5c   :  { %v2183_v61 = vcombine.high %v165_v55, %v173_v56  ;;  %v62_v47 = vld [vmem:[%s3244_s1 + $0x160] sm:$0xff] }
  0x5e   :  { %1656 = vmatpush1.bf16.msra.mxu0 %v2052_v0  ;;  %1697 = vmatpush1.bf16.msra.mxu1 %v2054_v1  ;;  %v149_v0 = vld [vmem:[%s3244_s1 + $0x418] sm:$0xff] }
  0x5f   :  { %1657 = vmatprep.subr.bf16.mxu0 %v2037_v2  ;;  %1698 = vmatprep.subr.bf16.mxu1 %v2039_v3  ;;  %v157_v1 = vld [vmem:[%s3244_s1 + $0x458] sm:$0xff]  ;;  %v2180_v2 = vcombine.low %v164_v52, %v172_v54  ;;  %v2182_v3 = vcombine.low %v165_v55, %v173_v56  ;;  %v2073_v52 = vcombine.high %v54_v46, %v62_v47  ;;  %v38_v55 = vld [vmem:[%s3244_s1 + $0xa0] sm:$0xff] }
  0x60   :  { %v2167_v5 = vcombine.high %v149_v0, %v157_v1  ;;  %v46_v56 = vld [vmem:[%s3244_s1 + $0xe0] sm:$0xff] }
  0x62   :  { %1658 = vmatpush1.bf16.msra.mxu0 %v2036_v8  ;;  %1699 = vmatpush1.bf16.msra.mxu1 %v2038_v9  ;;  %v135_v8 = vld [vmem:[%s3244_s1 + $0x3a8] sm:$0xff] }
  0x63   :  { %1659 = vmatprep.subr.bf16.mxu0 %v2277_v10  ;;  %1700 = vmatprep.subr.bf16.mxu1 %v2279_v11  ;;  %v143_v9 = vld [vmem:[%s3244_s1 + $0x3e8] sm:$0xff]  ;;  %v2164_v10 = vcombine.low %v148_v62, %v156_v63  ;;  %v2166_v11 = vcombine.low %v149_v0, %v157_v1  ;;  %v2057_v62 = vcombine.high %v38_v55, %v46_v56  ;;  %v22_v0 = vld [vmem:[%s3244_s1 + $0x20] sm:$0xff] }
  0x64   :  { %v2155_v14 = vcombine.high %v135_v8, %v143_v9  ;;  %v30_v1 = vld [vmem:[%s3244_s1 + $0x60] sm:$0xff] }
  0x66   :  { %1660 = vmatpush2.bf16.msra.mxu0 %v2276_v17  ;;  %1701 = vmatpush2.bf16.msra.mxu1 %v2278_v18  ;;  %v119_v17 = vld [vmem:[%s3244_s1 + $0x328] sm:$0xff] }
  0x67   :  { %1661 = vmatprep.subr.bf16.mxu0 %v2261_v53  ;;  %1702 = vmatprep.subr.bf16.mxu1 %v2263_v19  ;;  %v127_v18 = vld [vmem:[%s3244_s1 + $0x368] sm:$0xff]  ;;  %v2152_v53 = vcombine.low %v134_v6, %v142_v7  ;;  %v2154_v19 = vcombine.low %v135_v8, %v143_v9  ;;  %v2041_v6 = vcombine.high %v22_v0, %v30_v1  ;;  %v262_v8 = vld [vmem:[%s3244_s1 + $0x7a0] sm:$0xff] }
  0x68   :  { %v2139_v21 = vcombine.high %v119_v17, %v127_v18  ;;  %v270_v9 = vld [vmem:[%s3244_s1 + $0x7e0] sm:$0xff] }
  0x6a   :  { %1662 = vmatpush2.bf16.msra.mxu0 %v2260_v24  ;;  %1703 = vmatpush2.bf16.msra.mxu1 %v2262_v25  ;;  %v103_v24 = vld [vmem:[%s3244_s1 + $0x2a8] sm:$0xff] }
  0x6b   :  { %1663 = vmatprep.subr.bf16.mxu0 %v2245_v26  ;;  %1704 = vmatprep.subr.bf16.mxu1 %v2247_v27  ;;  %v111_v25 = vld [vmem:[%s3244_s1 + $0x2e8] sm:$0xff]  ;;  %v2136_v26 = vcombine.low %v118_v15, %v126_v16  ;;  %v2138_v27 = vcombine.low %v119_v17, %v127_v18  ;;  %v2281_v15 = vcombine.high %v262_v8, %v270_v9  ;;  %v246_v17 = vld [vmem:[%s3244_s1 + $0x720] sm:$0xff] }
  0x6c   :  { %v2123_v29 = vcombine.high %v103_v24, %v111_v25  ;;  %v254_v18 = vld [vmem:[%s3244_s1 + $0x760] sm:$0xff] }
  0x6e   :  { %1664 = vmatpush2.bf16.msra.mxu0 %v2244_v32  ;;  %1705 = vmatpush2.bf16.msra.mxu1 %v2246_v33  ;;  %v87_v32 = vld [vmem:[%s3244_s1 + $0x228] sm:$0xff] }
  0x6f   :  { %1665 = vmatprep.subr.bf16.mxu0 %v2229_v34  ;;  %1706 = vmatprep.subr.bf16.mxu1 %v2231_v35  ;;  %v95_v33 = vld [vmem:[%s3244_s1 + $0x268] sm:$0xff]  ;;  %v2120_v34 = vcombine.low %v102_v22, %v110_v23  ;;  %v2122_v35 = vcombine.low %v103_v24, %v111_v25  ;;  %v2265_v22 = vcombine.high %v246_v17, %v254_v18  ;;  %v230_v24 = vld [vmem:[%s3244_s1 + $0x6a0] sm:$0xff] }
  0x70   :  { %v2107_v37 = vcombine.high %v87_v32, %v95_v33  ;;  %v238_v25 = vld [vmem:[%s3244_s1 + $0x6e0] sm:$0xff] }
  0x72   :  { %1666 = vmatpush2.bf16.msra.mxu0 %v2228_v40  ;;  %1707 = vmatpush2.bf16.msra.mxu1 %v2230_v41  ;;  %v71_v40 = vld [vmem:[%s3244_s1 + $0x1a8] sm:$0xff] }
  0x73   :  { %1667 = vmatprep.subr.bf16.mxu0 %v2213_v42  ;;  %1708 = vmatprep.subr.bf16.mxu1 %v2215_v43  ;;  %v79_v41 = vld [vmem:[%s3244_s1 + $0x1e8] sm:$0xff]  ;;  %v2104_v42 = vcombine.low %v86_v30, %v94_v31  ;;  %v2106_v43 = vcombine.low %v87_v32, %v95_v33  ;;  %v2249_v30 = vcombine.high %v230_v24, %v238_v25  ;;  %v214_v32 = vld [vmem:[%s3244_s1 + $0x620] sm:$0xff] }
  0x74   :  { %v2091_v45 = vcombine.high %v71_v40, %v79_v41  ;;  %v222_v33 = vld [vmem:[%s3244_s1 + $0x660] sm:$0xff] }
  0x76   :  { %1668 = vmatpush2.bf16.msra.mxu0 %v2212_v48  ;;  %1709 = vmatpush2.bf16.msra.mxu1 %v2214_v49  ;;  %v55_v48 = vld [vmem:[%s3244_s1 + $0x128] sm:$0xff] }
  0x77   :  { %1669 = vmatprep.subr.bf16.mxu0 %v2197_v50  ;;  %1710 = vmatprep.subr.bf16.mxu1 %v2199_v51  ;;  %v63_v49 = vld [vmem:[%s3244_s1 + $0x168] sm:$0xff]  ;;  %v2088_v50 = vcombine.low %v70_v38, %v78_v39  ;;  %v2090_v51 = vcombine.low %v71_v40, %v79_v41  ;;  %v2233_v38 = vcombine.high %v214_v32, %v222_v33  ;;  %v198_v40 = vld [vmem:[%s3244_s1 + $0x5a0] sm:$0xff] }
  0x78   :  { %v2075_v54 = vcombine.high %v55_v48, %v63_v49  ;;  %v206_v41 = vld [vmem:[%s3244_s1 + $0x5e0] sm:$0xff] }
  0x7a   :  { %1670 = vmatpush2.bf16.msra.mxu0 %v2196_v58  ;;  %1711 = vmatpush2.bf16.msra.mxu1 %v2198_v59  ;;  %v39_v58 = vld [vmem:[%s3244_s1 + $0xa8] sm:$0xff] }
  0x7b   :  { %1671 = vmatprep.subr.bf16.mxu0 %v2181_v60  ;;  %1712 = vmatprep.subr.bf16.mxu1 %v2183_v61  ;;  %v47_v59 = vld [vmem:[%s3244_s1 + $0xe8] sm:$0xff]  ;;  %v2072_v60 = vcombine.low %v54_v46, %v62_v47  ;;  %v2074_v61 = vcombine.low %v55_v48, %v63_v49  ;;  %v2217_v46 = vcombine.high %v198_v40, %v206_v41  ;;  %v182_v48 = vld [vmem:[%s3244_s1 + $0x520] sm:$0xff] }
  0x7c   :  { %v2059_v63 = vcombine.high %v39_v58, %v47_v59  ;;  %v190_v49 = vld [vmem:[%s3244_s1 + $0x560] sm:$0xff] }
  0x7e   :  { %1672 = vmatpush2.bf16.msra.mxu0 %v2180_v2  ;;  %1713 = vmatpush2.bf16.msra.mxu1 %v2182_v3  ;;  %v23_v2 = vld [vmem:[%s3244_s1 + $0x28] sm:$0xff] }
  0x7f   :  { %1673 = vmatprep.subr.bf16.mxu0 %v2165_v4  ;;  %1714 = vmatprep.subr.bf16.mxu1 %v2167_v5  ;;  %v31_v3 = vld [vmem:[%s3244_s1 + $0x68] sm:$0xff]  ;;  %v2056_v4 = vcombine.low %v38_v55, %v46_v56  ;;  %v2058_v5 = vcombine.low %v39_v58, %v47_v59  ;;  %v2201_v55 = vcombine.high %v182_v48, %v190_v49  ;;  %v166_v58 = vld [vmem:[%s3244_s1 + $0x4a0] sm:$0xff] }
  0x80   :  { %v2043_v7 = vcombine.high %v23_v2, %v31_v3  ;;  %v174_v59 = vld [vmem:[%s3244_s1 + $0x4e0] sm:$0xff] }
  0x82   :  { %1674 = vmatpush2.bf16.msra.mxu0 %v2164_v10  ;;  %1715 = vmatpush2.bf16.msra.mxu1 %v2166_v11  ;;  %v263_v10 = vld [vmem:[%s3244_s1 + $0x7a8] sm:$0xff] }
  0x83   :  { %1725 = vmatprep.subr.bf16.mxu0 %v2153_v13  ;;  %1766 = vmatprep.subr.bf16.mxu1 %v2155_v14  ;;  %v271_v11 = vld [vmem:[%s3244_s1 + $0x7e8] sm:$0xff]  ;;  %v2040_v13 = vcombine.low %v22_v0, %v30_v1  ;;  %v2042_v14 = vcombine.low %v23_v2, %v31_v3  ;;  %v2185_v0 = vcombine.high %v166_v58, %v174_v59  ;;  %v150_v2 = vld [vmem:[%s3244_s1 + $0x420] sm:$0xff] }
  0x84   :  { %v2283_v16 = vcombine.high %v263_v10, %v271_v11  ;;  %v158_v3 = vld [vmem:[%s3244_s1 + $0x460] sm:$0xff] }
  0x85   :  { %1676 = vmatmul.mubr.bf16.vlgmr.msra.gmra.mxu0 %v2544_v12  ;;  %1717 = vmatmul.mubr.bf16.vlgmr.msra.gmra.mxu1 %v2544_v12 }
  0x86   :  { %1726 = vmatpush1.bf16.msra.mxu0 %v2152_v53  ;;  %1767 = vmatpush1.bf16.msra.mxu1 %v2154_v19  ;;  %v247_v53 = vld [vmem:[%s3244_s1 + $0x728] sm:$0xff] }
  0x87   :  { %1727 = vmatprep.subr.bf16.mxu0 %v2137_v20  ;;  %1768 = vmatprep.subr.bf16.mxu1 %v2139_v21  ;;  %v255_v19 = vld [vmem:[%s3244_s1 + $0x768] sm:$0xff]  ;;  %v2280_v20 = vcombine.low %v262_v8, %v270_v9  ;;  %v2282_v21 = vcombine.low %v263_v10, %v271_v11  ;;  %v2169_v8 = vcombine.high %v150_v2, %v158_v3  ;;  %v136_v10 = vld [vmem:[%s3244_s1 + $0x3b0] sm:$0xff] }
  0x88   :  { %1757 = vmatprep.mubr.bf16.mxu0 %v2418_v57  ;;  %1798 = vmatprep.mubr.bf16.mxu1 %v2418_v57  ;;  %v2267_v23 = vcombine.high %v247_v53, %v255_v19  ;;  %v144_v11 = vld [vmem:[%s3244_s1 + $0x3f0] sm:$0xff] }
  0x8a   :  { %1728 = vmatpush1.bf16.msra.mxu0 %v2136_v26  ;;  %1769 = vmatpush1.bf16.msra.mxu1 %v2138_v27  ;;  %v231_v26 = vld [vmem:[%s3244_s1 + $0x6a8] sm:$0xff] }
  0x8b   :  { %1729 = vmatprep.subr.bf16.mxu0 %v2121_v28  ;;  %1770 = vmatprep.subr.bf16.mxu1 %v2123_v29  ;;  %v239_v27 = vld [vmem:[%s3244_s1 + $0x6e8] sm:$0xff]  ;;  %v2264_v28 = vcombine.low %v246_v17, %v254_v18  ;;  %v2266_v29 = vcombine.low %v247_v53, %v255_v19  ;;  %v2157_v17 = vcombine.high %v136_v10, %v144_v11  ;;  %v120_v53 = vld [vmem:[%s3244_s1 + $0x330] sm:$0xff] }
  0x8c   :  { %v2251_v31 = vcombine.high %v231_v26, %v239_v27  ;;  %v128_v19 = vld [vmem:[%s3244_s1 + $0x370] sm:$0xff] }
  0x8e   :  { %1730 = vmatpush1.bf16.msra.mxu0 %v2120_v34  ;;  %1771 = vmatpush1.bf16.msra.mxu1 %v2122_v35  ;;  %v215_v34 = vld [vmem:[%s3244_s1 + $0x628] sm:$0xff] }
  0x8f   :  { %1731 = vmatprep.subr.bf16.mxu0 %v2105_v36  ;;  %1772 = vmatprep.subr.bf16.mxu1 %v2107_v37  ;;  %v223_v35 = vld [vmem:[%s3244_s1 + $0x668] sm:$0xff]  ;;  %v2248_v36 = vcombine.low %v230_v24, %v238_v25  ;;  %v2250_v37 = vcombine.low %v231_v26, %v239_v27  ;;  %v2141_v24 = vcombine.high %v120_v53, %v128_v19  ;;  %v104_v26 = vld [vmem:[%s3244_s1 + $0x2b0] sm:$0xff] }
  0x90   :  { %v2235_v39 = vcombine.high %v215_v34, %v223_v35  ;;  %v112_v27 = vld [vmem:[%s3244_s1 + $0x2f0] sm:$0xff] }
  0x92   :  { %1732 = vmatpush1.bf16.msra.mxu0 %v2104_v42  ;;  %1773 = vmatpush1.bf16.msra.mxu1 %v2106_v43  ;;  %v199_v42 = vld [vmem:[%s3244_s1 + $0x5a8] sm:$0xff] }
  0x93   :  { %1733 = vmatprep.subr.bf16.mxu0 %v2089_v44  ;;  %1774 = vmatprep.subr.bf16.mxu1 %v2091_v45  ;;  %v207_v43 = vld [vmem:[%s3244_s1 + $0x5e8] sm:$0xff]  ;;  %v2232_v44 = vcombine.low %v214_v32, %v222_v33  ;;  %v2234_v45 = vcombine.low %v215_v34, %v223_v35  ;;  %v2125_v32 = vcombine.high %v104_v26, %v112_v27  ;;  %v88_v34 = vld [vmem:[%s3244_s1 + $0x230] sm:$0xff] }
  0x94   :  { %v2219_v47 = vcombine.high %v199_v42, %v207_v43  ;;  %v96_v35 = vld [vmem:[%s3244_s1 + $0x270] sm:$0xff] }
  0x96   :  { %1734 = vmatpush1.bf16.msra.mxu0 %v2088_v50  ;;  %1775 = vmatpush1.bf16.msra.mxu1 %v2090_v51  ;;  %v183_v50 = vld [vmem:[%s3244_s1 + $0x528] sm:$0xff] }
  0x97   :  { %1735 = vmatprep.subr.bf16.mxu0 %v2073_v52  ;;  %1776 = vmatprep.subr.bf16.mxu1 %v2075_v54  ;;  %v191_v51 = vld [vmem:[%s3244_s1 + $0x568] sm:$0xff]  ;;  %v2216_v52 = vcombine.low %v198_v40, %v206_v41  ;;  %v2218_v54 = vcombine.low %v199_v42, %v207_v43  ;;  %v2109_v40 = vcombine.high %v88_v34, %v96_v35  ;;  %v72_v42 = vld [vmem:[%s3244_s1 + $0x1b0] sm:$0xff] }
  0x98   :  { %v2203_v56 = vcombine.high %v183_v50, %v191_v51  ;;  %v80_v43 = vld [vmem:[%s3244_s1 + $0x1f0] sm:$0xff] }
  0x9a   :  { %1736 = vmatpush1.bf16.msra.mxu0 %v2072_v60  ;;  %1777 = vmatpush1.bf16.msra.mxu1 %v2074_v61  ;;  %v167_v60 = vld [vmem:[%s3244_s1 + $0x4a8] sm:$0xff] }
  0x9b   :  { %1737 = vmatprep.subr.bf16.mxu0 %v2057_v62  ;;  %1778 = vmatprep.subr.bf16.mxu1 %v2059_v63  ;;  %v175_v61 = vld [vmem:[%s3244_s1 + $0x4e8] sm:$0xff]  ;;  %v2200_v62 = vcombine.low %v182_v48, %v190_v49  ;;  %v2202_v63 = vcombine.low %v183_v50, %v191_v51  ;;  %v56_v49 = vld [vmem:[%s3244_s1 + $0x130] sm:$0xff]  ;;  %v57_v51 = vld [vmem:[%s3244_s1 + $0x138] sm:$0xff] }
  0x9c   :  { %v2187_v1 = vcombine.high %v167_v60, %v175_v61  ;;  %v64_v50 = vld [vmem:[%s3244_s1 + $0x170] sm:$0xff] }
  0x9e   :  { %1738 = vmatpush1.bf16.msra.mxu0 %v2056_v4  ;;  %1779 = vmatpush1.bf16.msra.mxu1 %v2058_v5  ;;  %v151_v4 = vld [vmem:[%s3244_s1 + $0x428] sm:$0xff] }
  0x9f   :  { %1739 = vmatprep.subr.bf16.mxu0 %v2041_v6  ;;  %1780 = vmatprep.subr.bf16.mxu1 %v2043_v7  ;;  %v159_v5 = vld [vmem:[%s3244_s1 + $0x468] sm:$0xff]  ;;  %v2184_v6 = vcombine.low %v166_v58, %v174_v59  ;;  %v2186_v7 = vcombine.low %v167_v60, %v175_v61  ;;  %v40_v59 = vld [vmem:[%s3244_s1 + $0xb0] sm:$0xff]  ;;  %v41_v61 = vld [vmem:[%s3244_s1 + $0xb8] sm:$0xff] }
  0xa0   :  { %v2171_v9 = vcombine.high %v151_v4, %v159_v5  ;;  %v48_v60 = vld [vmem:[%s3244_s1 + $0xf0] sm:$0xff] }
  0xa2   :  { %1740 = vmatpush1.bf16.msra.mxu0 %v2040_v13  ;;  %1781 = vmatpush1.bf16.msra.mxu1 %v2042_v14  ;;  %v137_v13 = vld [vmem:[%s3244_s1 + $0x3b8] sm:$0xff] }
  0xa3   :  { %1741 = vmatprep.subr.bf16.mxu0 %v2281_v15  ;;  %1782 = vmatprep.subr.bf16.mxu1 %v2283_v16  ;;  %v145_v14 = vld [vmem:[%s3244_s1 + $0x3f8] sm:$0xff]  ;;  %v2168_v15 = vcombine.low %v150_v2, %v158_v3  ;;  %v2170_v16 = vcombine.low %v151_v4, %v159_v5  ;;  %v24_v3 = vld [vmem:[%s3244_s1 + $0x30] sm:$0xff] }
  0xa4   :  { %v2159_v18 = vcombine.high %v137_v13, %v145_v14  ;;  %v32_v4 = vld [vmem:[%s3244_s1 + $0x70] sm:$0xff]  ;;  %v25_v5 = vld [vmem:[%s3244_s1 + $0x38] sm:$0xff] }
  0xa6   :  { %1742 = vmatpush2.bf16.msra.mxu0 %v2280_v20  ;;  %1783 = vmatpush2.bf16.msra.mxu1 %v2282_v21  ;;  %v121_v20 = vld [vmem:[%s3244_s1 + $0x338] sm:$0xff] }
  0xa7   :  { %1743 = vmatprep.subr.bf16.mxu0 %v2265_v22  ;;  %1784 = vmatprep.subr.bf16.mxu1 %v2267_v23  ;;  %v129_v21 = vld [vmem:[%s3244_s1 + $0x378] sm:$0xff]  ;;  %v2156_v22 = vcombine.low %v136_v10, %v144_v11  ;;  %v2158_v23 = vcombine.low %v137_v13, %v145_v14  ;;  %v264_v11 = vld [vmem:[%s3244_s1 + $0x7b0] sm:$0xff] }
  0xa8   :  { %v2143_v25 = vcombine.high %v121_v20, %v129_v21  ;;  %v272_v13 = vld [vmem:[%s3244_s1 + $0x7f0] sm:$0xff]  ;;  %v265_v14 = vld [vmem:[%s3244_s1 + $0x7b8] sm:$0xff] }
  0xaa   :  { %1744 = vmatpush2.bf16.msra.mxu0 %v2264_v28  ;;  %1785 = vmatpush2.bf16.msra.mxu1 %v2266_v29  ;;  %v105_v28 = vld [vmem:[%s3244_s1 + $0x2b8] sm:$0xff] }
  0xab   :  { %1745 = vmatprep.subr.bf16.mxu0 %v2249_v30  ;;  %1786 = vmatprep.subr.bf16.mxu1 %v2251_v31  ;;  %v113_v29 = vld [vmem:[%s3244_s1 + $0x2f8] sm:$0xff]  ;;  %v2140_v30 = vcombine.low %v120_v53, %v128_v19  ;;  %v2142_v31 = vcombine.low %v121_v20, %v129_v21  ;;  %v248_v19 = vld [vmem:[%s3244_s1 + $0x730] sm:$0xff] }
  0xac   :  { %v2127_v33 = vcombine.high %v105_v28, %v113_v29  ;;  %v256_v20 = vld [vmem:[%s3244_s1 + $0x770] sm:$0xff]  ;;  %v249_v21 = vld [vmem:[%s3244_s1 + $0x738] sm:$0xff] }
  0xae   :  { %1746 = vmatpush2.bf16.msra.mxu0 %v2248_v36  ;;  %1787 = vmatpush2.bf16.msra.mxu1 %v2250_v37  ;;  %v89_v36 = vld [vmem:[%s3244_s1 + $0x238] sm:$0xff] }
  0xaf   :  { %1747 = vmatprep.subr.bf16.mxu0 %v2233_v38  ;;  %1788 = vmatprep.subr.bf16.mxu1 %v2235_v39  ;;  %v97_v37 = vld [vmem:[%s3244_s1 + $0x278] sm:$0xff]  ;;  %v2124_v38 = vcombine.low %v104_v26, %v112_v27  ;;  %v2126_v39 = vcombine.low %v105_v28, %v113_v29  ;;  %v232_v27 = vld [vmem:[%s3244_s1 + $0x6b0] sm:$0xff] }
  0xb0   :  { %v2111_v41 = vcombine.high %v89_v36, %v97_v37  ;;  %v240_v28 = vld [vmem:[%s3244_s1 + $0x6f0] sm:$0xff]  ;;  %v233_v29 = vld [vmem:[%s3244_s1 + $0x6b8] sm:$0xff] }
  0xb2   :  { %1748 = vmatpush2.bf16.msra.mxu0 %v2232_v44  ;;  %1789 = vmatpush2.bf16.msra.mxu1 %v2234_v45  ;;  %v81_v44 = vld [vmem:[%s3244_s1 + $0x1f8] sm:$0xff]  ;;  %v2108_v45 = vcombine.low %v88_v34, %v96_v35  ;;  %v216_v35 = vld [vmem:[%s3244_s1 + $0x630] sm:$0xff] }
  0xb3   :  { %1749 = vmatprep.subr.bf16.mxu0 %v2217_v46  ;;  %1790 = vmatprep.subr.bf16.mxu1 %v2219_v47  ;;  %v2110_v46 = vcombine.low %v89_v36, %v97_v37  ;;  %v2093_v47 = vcombine.high %v72_v42, %v80_v43  ;;  %v224_v36 = vld [vmem:[%s3244_s1 + $0x670] sm:$0xff]  ;;  %v217_v37 = vld [vmem:[%s3244_s1 + $0x638] sm:$0xff] }
  0xb6   :  { %1750 = vmatpush2.bf16.msra.mxu0 %v2216_v52  ;;  %1791 = vmatpush2.bf16.msra.mxu1 %v2218_v54  ;;  %v65_v52 = vld [vmem:[%s3244_s1 + $0x178] sm:$0xff]  ;;  %v2092_v54 = vcombine.low %v72_v42, %v80_v43  ;;  %v200_v43 = vld [vmem:[%s3244_s1 + $0x5b0] sm:$0xff] }
  0xb7   :  { %1751 = vmatprep.subr.bf16.mxu0 %v2201_v55  ;;  %1792 = vmatprep.subr.bf16.mxu1 %v2203_v56  ;;  %v2077_v56 = vcombine.high %v56_v49, %v64_v50  ;;  %v2079_v58 = vcombine.high %v57_v51, %v65_v52 }
  0xba   :  { %1752 = vmatpush2.bf16.msra.mxu0 %v2200_v62  ;;  %1793 = vmatpush2.bf16.msra.mxu1 %v2202_v63  ;;  %v49_v62 = vld [vmem:[%s3244_s1 + $0xf8] sm:$0xff]  ;;  %v2076_v63 = vcombine.low %v56_v49, %v64_v50  ;;  %v184_v50 = vld [vmem:[%s3244_s1 + $0x530] sm:$0xff] }
  0xbb   :  { %1753 = vmatprep.subr.bf16.mxu0 %v2185_v0  ;;  %1794 = vmatprep.subr.bf16.mxu1 %v2187_v1  ;;  %v2078_v0 = vcombine.low %v57_v51, %v65_v52  ;;  %v2061_v1 = vcombine.high %v40_v59, %v48_v60  ;;  %v2063_v2 = vcombine.high %v41_v61, %v49_v62  ;;  %v192_v51 = vld [vmem:[%s3244_s1 + $0x570] sm:$0xff]  ;;  %v185_v52 = vld [vmem:[%s3244_s1 + $0x538] sm:$0xff] }
  0xbe   :  { %1754 = vmatpush2.bf16.msra.mxu0 %v2184_v6  ;;  %1795 = vmatpush2.bf16.msra.mxu1 %v2186_v7  ;;  %v33_v6 = vld [vmem:[%s3244_s1 + $0x78] sm:$0xff]  ;;  %v2060_v7 = vcombine.low %v40_v59, %v48_v60  ;;  %v168_v60 = vld [vmem:[%s3244_s1 + $0x4b0] sm:$0xff] }
  0xbf   :  { %1755 = vmatprep.subr.bf16.mxu0 %v2169_v8  ;;  %1796 = vmatprep.subr.bf16.mxu1 %v2171_v9  ;;  %v2062_v8 = vcombine.low %v41_v61, %v49_v62  ;;  %v2045_v9 = vcombine.high %v24_v3, %v32_v4  ;;  %v2047_v10 = vcombine.high %v25_v5, %v33_v6  ;;  %v176_v61 = vld [vmem:[%s3244_s1 + $0x4f0] sm:$0xff]  ;;  %v169_v62 = vld [vmem:[%s3244_s1 + $0x4b8] sm:$0xff] }
  0xc2   :  { %1756 = vmatpush2.bf16.msra.mxu0 %v2168_v15  ;;  %1797 = vmatpush2.bf16.msra.mxu1 %v2170_v16  ;;  %v273_v15 = vld [vmem:[%s3244_s1 + $0x7f8] sm:$0xff]  ;;  %v2044_v16 = vcombine.low %v24_v3, %v32_v4  ;;  %v152_v4 = vld [vmem:[%s3244_s1 + $0x430] sm:$0xff] }
  0xc3   :  { %1807 = vmatprep.subr.bf16.mxu0 %v2157_v17  ;;  %1848 = vmatprep.subr.bf16.mxu1 %v2159_v18  ;;  %v2046_v17 = vcombine.low %v25_v5, %v33_v6  ;;  %v2285_v18 = vcombine.high %v264_v11, %v272_v13  ;;  %v2287_v53 = vcombine.high %v265_v14, %v273_v15  ;;  %v160_v5 = vld [vmem:[%s3244_s1 + $0x470] sm:$0xff]  ;;  %v153_v6 = vld [vmem:[%s3244_s1 + $0x438] sm:$0xff] }
  0xc5   :  { %1758 = vmatmul.mubr.bf16.vlgmr.msra.gmra.mxu0 %v2544_v12  ;;  %1799 = vmatmul.mubr.bf16.vlgmr.msra.gmra.mxu1 %v2544_v12 }
  0xc6   :  { %1808 = vmatpush1.bf16.msra.mxu0 %v2156_v22  ;;  %1849 = vmatpush1.bf16.msra.mxu1 %v2158_v23  ;;  %v257_v22 = vld [vmem:[%s3244_s1 + $0x778] sm:$0xff]  ;;  %v2284_v23 = vcombine.low %v264_v11, %v272_v13  ;;  %v2172_v13 = vcombine.low %v152_v4, %v160_v5 }
  0xc7   :  { %1809 = vmatprep.subr.bf16.mxu0 %v2141_v24  ;;  %1850 = vmatprep.subr.bf16.mxu1 %v2143_v25  ;;  %v2286_v24 = vcombine.low %v265_v14, %v273_v15  ;;  %v2269_v25 = vcombine.high %v248_v19, %v256_v20  ;;  %v2271_v26 = vcombine.high %v249_v21, %v257_v22 }
  0xc8   :  { %1839 = vmatprep.mubr.bf16.mxu0 %v2418_v57  ;;  %1880 = vmatprep.mubr.bf16.mxu1 %v2418_v57  ;;  %v73_v57 = vld [vmem:[%s3244_s1 + $0x1b8] sm:$0xff] }
  0xc9   :  { %v2095_v48 = vcombine.high %v73_v57, %v81_v44  ;;  %v2094_v55 = vcombine.low %v73_v57, %v81_v44  ;;  %v208_v57 = vld [vmem:[%s3244_s1 + $0x5f0] sm:$0xff]  ;;  %v201_v44 = vld [vmem:[%s3244_s1 + $0x5b8] sm:$0xff] }
  0xca   :  { %1810 = vmatpush1.bf16.msra.mxu0 %v2140_v30  ;;  %1851 = vmatpush1.bf16.msra.mxu1 %v2142_v31  ;;  %v241_v30 = vld [vmem:[%s3244_s1 + $0x6f8] sm:$0xff]  ;;  %v2268_v31 = vcombine.low %v248_v19, %v256_v20 }
  0xcb   :  { %1811 = vmatprep.subr.bf16.mxu0 %v2125_v32  ;;  %1852 = vmatprep.subr.bf16.mxu1 %v2127_v33  ;;  %v2270_v32 = vcombine.low %v249_v21, %v257_v22  ;;  %v2253_v33 = vcombine.high %v232_v27, %v240_v28  ;;  %v2255_v34 = vcombine.high %v233_v29, %v241_v30 }
  0xce   :  { %1812 = vmatpush1.bf16.msra.mxu0 %v2124_v38  ;;  %1853 = vmatpush1.bf16.msra.mxu1 %v2126_v39  ;;  %v225_v38 = vld [vmem:[%s3244_s1 + $0x678] sm:$0xff]  ;;  %v2252_v39 = vcombine.low %v232_v27, %v240_v28 }
  0xcf   :  { %1813 = vmatprep.subr.bf16.mxu0 %v2109_v40  ;;  %1854 = vmatprep.subr.bf16.mxu1 %v2111_v41  ;;  %v2254_v40 = vcombine.low %v233_v29, %v241_v30  ;;  %v2237_v41 = vcombine.high %v216_v35, %v224_v36  ;;  %v2239_v42 = vcombine.high %v217_v37, %v225_v38 }
  0xd2   :  { %1814 = vmatpush1.bf16.msra.mxu0 %v2108_v45  ;;  %1855 = vmatpush1.bf16.msra.mxu1 %v2110_v46  ;;  %v209_v45 = vld [vmem:[%s3244_s1 + $0x5f8] sm:$0xff]  ;;  %v2236_v46 = vcombine.low %v216_v35, %v224_v36 }
  0xd3   :  { %1815 = vmatprep.subr.bf16.mxu0 %v2093_v47  ;;  %1856 = vmatprep.subr.bf16.mxu1 %v2095_v48  ;;  %v2238_v47 = vcombine.low %v217_v37, %v225_v38  ;;  %v2221_v48 = vcombine.high %v200_v43, %v208_v57  ;;  %v2223_v49 = vcombine.high %v201_v44, %v209_v45 }
  0xd6   :  { %1816 = vmatpush1.bf16.msra.mxu0 %v2092_v54  ;;  %1857 = vmatpush1.bf16.msra.mxu1 %v2094_v55  ;;  %v193_v54 = vld [vmem:[%s3244_s1 + $0x578] sm:$0xff]  ;;  %v2220_v55 = vcombine.low %v200_v43, %v208_v57 }
  0xd7   :  { %1817 = vmatprep.subr.bf16.mxu0 %v2077_v56  ;;  %1858 = vmatprep.subr.bf16.mxu1 %v2079_v58  ;;  %v2222_v56 = vcombine.low %v201_v44, %v209_v45  ;;  %v2205_v58 = vcombine.high %v184_v50, %v192_v51  ;;  %v2207_v59 = vcombine.high %v185_v52, %v193_v54 }
  0xda   :  { %1818 = vmatpush1.bf16.msra.mxu0 %v2076_v63  ;;  %1859 = vmatpush1.bf16.msra.mxu1 %v2078_v0  ;;  %v177_v63 = vld [vmem:[%s3244_s1 + $0x4f8] sm:$0xff]  ;;  %v2204_v0 = vcombine.low %v184_v50, %v192_v51 }
  0xdb   :  { %1819 = vmatprep.subr.bf16.mxu0 %v2061_v1  ;;  %1860 = vmatprep.subr.bf16.mxu1 %v2063_v2  ;;  %v2206_v1 = vcombine.low %v185_v52, %v193_v54  ;;  %v2189_v2 = vcombine.high %v168_v60, %v176_v61  ;;  %v2191_v3 = vcombine.high %v169_v62, %v177_v63 }
  0xde   :  { %1820 = vmatpush1.bf16.msra.mxu0 %v2060_v7  ;;  %1861 = vmatpush1.bf16.msra.mxu1 %v2062_v8  ;;  %v161_v7 = vld [vmem:[%s3244_s1 + $0x478] sm:$0xff]  ;;  %v2188_v8 = vcombine.low %v168_v60, %v176_v61 }
  0xdf   :  { %1821 = vmatprep.subr.bf16.mxu0 %v2045_v9  ;;  %1862 = vmatprep.subr.bf16.mxu1 %v2047_v10  ;;  %v2190_v9 = vcombine.low %v169_v62, %v177_v63  ;;  %v2173_v10 = vcombine.high %v152_v4, %v160_v5  ;;  %v2175_v11 = vcombine.high %v153_v6, %v161_v7 }
  0xe0   :  { %v2174_v14 = vcombine.low %v153_v6, %v161_v7 }
  0xe2   :  { %1822 = vmatpush1.bf16.msra.mxu0 %v2044_v16  ;;  %1863 = vmatpush1.bf16.msra.mxu1 %v2046_v17 }
  0xe3   :  { %1823 = vmatprep.subr.bf16.mxu0 %v2285_v18  ;;  %1864 = vmatprep.subr.bf16.mxu1 %v2287_v53 }
  0xe6   :  { %1824 = vmatpush2.bf16.msra.mxu0 %v2284_v23  ;;  %1865 = vmatpush2.bf16.msra.mxu1 %v2286_v24 }
  0xe7   :  { %1825 = vmatprep.subr.bf16.mxu0 %v2269_v25  ;;  %1866 = vmatprep.subr.bf16.mxu1 %v2271_v26 }
  0xea   :  { %1826 = vmatpush2.bf16.msra.mxu0 %v2268_v31  ;;  %1867 = vmatpush2.bf16.msra.mxu1 %v2270_v32 }
  0xeb   :  { %1827 = vmatprep.subr.bf16.mxu0 %v2253_v33  ;;  %1868 = vmatprep.subr.bf16.mxu1 %v2255_v34 }
  0xee   :  { %1828 = vmatpush2.bf16.msra.mxu0 %v2252_v39  ;;  %1869 = vmatpush2.bf16.msra.mxu1 %v2254_v40 }
  0xef   :  { %1829 = vmatprep.subr.bf16.mxu0 %v2237_v41  ;;  %1870 = vmatprep.subr.bf16.mxu1 %v2239_v42 }
  0xf2   :  { %1830 = vmatpush2.bf16.msra.mxu0 %v2236_v46  ;;  %1871 = vmatpush2.bf16.msra.mxu1 %v2238_v47 }
  0xf3   :  { %1831 = vmatprep.subr.bf16.mxu0 %v2221_v48  ;;  %1872 = vmatprep.subr.bf16.mxu1 %v2223_v49 }
  0xf6   :  { %1832 = vmatpush2.bf16.msra.mxu0 %v2220_v55  ;;  %1873 = vmatpush2.bf16.msra.mxu1 %v2222_v56 }
  0xf7   :  { %1833 = vmatprep.subr.bf16.mxu0 %v2205_v58  ;;  %1874 = vmatprep.subr.bf16.mxu1 %v2207_v59 }
  0xfa   :  { %1834 = vmatpush2.bf16.msra.mxu0 %v2204_v0  ;;  %1875 = vmatpush2.bf16.msra.mxu1 %v2206_v1 }
  0xfb   :  { %1835 = vmatprep.subr.bf16.mxu0 %v2189_v2  ;;  %1876 = vmatprep.subr.bf16.mxu1 %v2191_v3 }
  0xfe   :  { %1836 = vmatpush2.bf16.msra.mxu0 %v2188_v8  ;;  %1877 = vmatpush2.bf16.msra.mxu1 %v2190_v9 }
  0xff   :  { %1837 = vmatprep.subr.bf16.mxu0 %v2173_v10  ;;  %1878 = vmatprep.subr.bf16.mxu1 %v2175_v11 }
 0x102   :  { %1838 = vmatpush2.bf16.msra.mxu0 %v2172_v13  ;;  %1879 = vmatpush2.bf16.msra.mxu1 %v2174_v14 }
 0x105   :  { %v3116_v15 = vpop.f32.mrf.mxu0  ;;  %1840 = vmatmul.mubr.bf16.vlgmr.msra.gmra.mxu0 %v2544_v12  ;;  %v3119_v16 = vpop.f32.mrf.mxu1  ;;  %1881 = vmatmul.mubr.bf16.vlgmr.msra.gmra.mxu1 %v2544_v12 }
 0x106   :  { %v1908_v37 = vmul.f32 %v3116_v15, %v3116_v15  ;;  %v1910_v40 = vmul.f32 %v3119_v16, %v3119_v16 }
 0x107   :  { %v3122_v17 = vpop.f32.mrf.mxu0  ;;  %v3124_v18 = vpop.f32.mrf.mxu1 }
 0x108   :  { %v1909_v38 = vmul.f32 %v3122_v17, %v3122_v17  ;;  %v1889_v39 = vadd.f32 %v3122_v17, %v3116_v15  ;;  %v1911_v43 = vmul.f32 %v3124_v18, %v3124_v18 }
 0x109   :  { %v1599_v53 = vpop.f32.mrf.mxu0  ;;  %v1640_v19 = vpop.f32.mrf.mxu1 }
 0x10a   :  { %v1924_v41 = vadd.f32 %v1909_v38, %v1908_v37  ;;  %v1890_v42 = vadd.f32 %v1889_v39, %v3119_v16  ;;  %v2295_v39 = vmov 0  }
 0x10b   :  { %v1600_v20 = vpop.f32.mrf.mxu0  ;;  %v1641_v21 = vpop.f32.mrf.mxu1  ;;  %2289 = vset.pattern.permute.xlu1 %v2295_v39  ;;  %2290 = vset.pattern.permute.xlu0 %v2295_v39 }
 0x10c   :  { %v1925_v57 = vadd.f32 %v1924_v41, %v1910_v40  ;;  %v1891_v44 = vadd.f32 %v1890_v42, %v3124_v18 }
 0x10e   :  { %v1926_v46 = vadd.f32 %v1925_v57, %v1911_v43 }
 0x145   :  { %v3126_v22 = vpop.f32.mrf.mxu0  ;;  %v3128_v23 = vpop.f32.mrf.mxu1 }
 0x146   :  { %v1912_v45 = vmul.f32 %v3126_v22, %v3126_v22  ;;  %v1892_v47 = vadd.f32 %v1891_v44, %v3126_v22  ;;  %v1914_v51 = vmul.f32 %v3128_v23, %v3128_v23 }
 0x147   :  { %v3130_v24 = vpop.f32.mrf.mxu0  ;;  %v3132_v25 = vpop.f32.mrf.mxu1 }
 0x148   :  { %v1927_v48 = vadd.f32 %v1926_v46, %v1912_v45  ;;  %v1913_v49 = vmul.f32 %v3130_v24, %v3130_v24  ;;  %v1893_v50 = vadd.f32 %v1892_v47, %v3130_v24  ;;  %v1915_v55 = vmul.f32 %v3132_v25, %v3132_v25  ;;  %v1945_v47 = vld [vmem:[%s3246_s2] sm:$0xff] }
 0x149   :  { %v1681_v26 = vpop.f32.mrf.mxu0  ;;  %v1722_v27 = vpop.f32.mrf.mxu1 }
 0x14a   :  { %v1928_v52 = vadd.f32 %v1927_v48, %v1913_v49  ;;  %v1894_v54 = vadd.f32 %v1893_v50, %v3128_v23  ;;  %v1949_v50 = vld [vmem:[%s3247_s3] sm:$0xff] }
 0x14b   :  { %v1682_v28 = vpop.f32.mrf.mxu0  ;;  %v1723_v12 = vpop.f32.mrf.mxu1 }
 0x14c   :  { %v1929_v56 = vadd.f32 %v1928_v52, %v1914_v51  ;;  %v1895_v58 = vadd.f32 %v1894_v54, %v3132_v25 }
 0x14e   :  { %v1930_v60 = vadd.f32 %v1929_v56, %v1915_v55 }
 0x185   :  { %v3134_v29 = vpop.f32.mrf.mxu0  ;;  %v3136_v30 = vpop.f32.mrf.mxu1 }
 0x186   :  { %v1916_v59 = vmul.f32 %v3134_v29, %v3134_v29  ;;  %v1896_v61 = vadd.f32 %v1895_v58, %v3134_v29  ;;  %v1918_v1 = vmul.f32 %v3136_v30, %v3136_v30 }
 0x187   :  { %v3138_v31 = vpop.f32.mrf.mxu0  ;;  %v3140_v32 = vpop.f32.mrf.mxu1 }
 0x188   :  { %v1931_v62 = vadd.f32 %v1930_v60, %v1916_v59  ;;  %v1917_v63 = vmul.f32 %v3138_v31, %v3138_v31  ;;  %v1897_v0 = vadd.f32 %v1896_v61, %v3138_v31  ;;  %v1919_v4 = vmul.f32 %v3140_v32, %v3140_v32 }
 0x189   :  { %v1763_v33 = vpop.f32.mrf.mxu0  ;;  %v1804_v34 = vpop.f32.mrf.mxu1 }
 0x18a   :  { %v1932_v2 = vadd.f32 %v1931_v62, %v1917_v63  ;;  %v1898_v3 = vadd.f32 %v1897_v0, %v3136_v30 }
 0x18b   :  { %v1764_v35 = vpop.f32.mrf.mxu0  ;;  %v1805_v36 = vpop.f32.mrf.mxu1 }
 0x18c   :  { %v1933_v5 = vadd.f32 %v1932_v2, %v1918_v1  ;;  %v1899_v6 = vadd.f32 %v1898_v3, %v3140_v32 }
 0x18e   :  { %v1934_v8 = vadd.f32 %v1933_v5, %v1919_v4 }
 0x1c5   :  { %v1841_v7 = vpop.f32.mrf.mxu0  ;;  %v1882_v11 = vpop.f32.mrf.mxu1 }
 0x1c6   :  { %v1900_v9 = vadd.f32 %v1899_v6, %v1841_v7  ;;  %v1920_v10 = vmul.f32 %v1841_v7, %v1841_v7  ;;  %v1922_v53 = vmul.f32 %v1882_v11, %v1882_v11 }
 0x1c7   :  { %v1843_v13 = vpop.f32.mrf.mxu0  ;;  %v1884_v21 = vpop.f32.mrf.mxu1 }
 0x1c8   :  { %v1935_v14 = vadd.f32 %v1934_v8, %v1920_v10  ;;  %v1901_v19 = vadd.f32 %v1900_v9, %v1843_v13  ;;  %v1921_v20 = vmul.f32 %v1843_v13, %v1843_v13  ;;  %v1923_v37 = vmul.f32 %v1884_v21, %v1884_v21 }
 0x1c9   :  { %v1845_v26 = vpop.f32.mrf.mxu0  ;;  %v1886_v27 = vpop.f32.mrf.mxu1 }
 0x1ca   :  { %v1902_v28 = vadd.f32 %v1901_v19, %v1882_v11  ;;  %v1936_v12 = vadd.f32 %v1935_v14, %v1921_v20 }
 0x1cb   :  { %v1846_v33 = vpop.f32.mrf.mxu0  ;;  %v1887_v34 = vpop.f32.mrf.mxu1 }
 0x1cc   :  { %v1903_v35 = vadd.f32 %v1902_v28, %v1884_v21  ;;  %v1937_v36 = vadd.f32 %v1936_v12, %v1922_v53 }
 0x1ce   :  { %1904 = vadd.xlane.f32.xlu0 %v1903_v35  ;;  %v1938_v38 = vadd.f32 %v1937_v36, %v1923_v37 }
 0x1d2   :  { %1939 = vadd.xlane.f32.xlu0 %v1938_v38 }
 0x257   :  { %v1905_v40 = vpop.xlane.xlu0 %1904 }
 0x258   :  { %v1907_v41 = vmul.f32 0.00048828125, %v1905_v40 }
 0x25a   :  { %v1942_v43 = vmul.f32 %v1907_v41, %v1907_v41 }
 0x25b   :  { %v1940_v42 = vpop.xlane.xlu0 %1939 }
 0x25c   :  { %v1941_v57 = vmul.f32 0.00048828125, %v1940_v42 }
 0x25e   :  { %v1943_v44 = vsub.f32 %v1941_v57, %v1942_v43 }
 0x260   :  { %v1944_v45 = vmax.f32 %v1943_v44, 0.0 }
 0x262   :  { %v1946_v46 = vadd.f32 1e-05, %v1944_v45 }
 0x264   :  { %2293 = vrsqrt.f32 %v1946_v46 }
 0x271   :  { %v2294_v48 = vpop.eup %2293 }
 0x272   :  { %v1948_v49 = vmul.f32 %v2294_v48, %v1945_v47 }
 0x274   :  { %1954 = vperm.xlu1 %2289, %v1948_v49   ;;  %v1950_v51 = vmul.f32 %v1948_v49, %v1907_v41 }
 0x276   :  { %v1951_v52 = vsub.f32 %v1949_v50, %v1950_v51 }
 0x278   :  { %1975 = vperm.xlu1 %2289, %v1951_v52  }
 0x2ef   :  { %v1955_v54 = vpop.permute.xlu1 %1954 }
 0x2f0   :  { %v1957_v55 = vmul.f32 %v1955_v54, %v3116_v15  ;;  %v1958_v56 = vmul.f32 %v1955_v54, %v3122_v17  ;;  %v1959_v58 = vmul.f32 %v1955_v54, %v3119_v16  ;;  %v1960_v59 = vmul.f32 %v1955_v54, %v3124_v18 }
 0x2f1   :  { %v1961_v60 = vmul.f32 %v1955_v54, %v3126_v22  ;;  %v1962_v61 = vmul.f32 %v1955_v54, %v3130_v24  ;;  %v1963_v62 = vmul.f32 %v1955_v54, %v3128_v23  ;;  %v1964_v63 = vmul.f32 %v1955_v54, %v3132_v25 }
 0x2f2   :  { %v1965_v0 = vmul.f32 %v1955_v54, %v3134_v29  ;;  %v1966_v1 = vmul.f32 %v1955_v54, %v3138_v31  ;;  %v1967_v15 = vmul.f32 %v1955_v54, %v3136_v30  ;;  %v1968_v17 = vmul.f32 %v1955_v54, %v3140_v32 }
 0x2f3   :  { %v1969_v2 = vmul.f32 %v1955_v54, %v1841_v7  ;;  %v1970_v16 = vmul.f32 %v1955_v54, %v1843_v13  ;;  %v1971_v3 = vmul.f32 %v1955_v54, %v1882_v11  ;;  %v1972_v18 = vmul.f32 %v1955_v54, %v1884_v21  ;;  %v1976_v4 = vpop.permute.xlu1 %1975 }
 0x2f4   :  { %v1978_v22 = vadd.f32 %v1976_v4, %v1957_v55  ;;  %v1979_v5 = vadd.f32 %v1976_v4, %v1958_v56  ;;  %v1980_v24 = vadd.f32 %v1976_v4, %v1959_v58  ;;  %v1981_v6 = vadd.f32 %v1976_v4, %v1960_v59 }
 0x2f5   :  { %v1982_v23 = vadd.f32 %v1976_v4, %v1961_v60  ;;  %v1983_v8 = vadd.f32 %v1976_v4, %v1962_v61  ;;  %v1984_v25 = vadd.f32 %v1976_v4, %v1963_v62  ;;  %v1985_v9 = vadd.f32 %v1976_v4, %v1964_v63 }
 0x2f6   :  { %v1986_v29 = vadd.f32 %v1976_v4, %v1965_v0  ;;  %v1987_v10 = vadd.f32 %v1976_v4, %v1966_v1  ;;  %v1988_v31 = vadd.f32 %v1976_v4, %v1967_v15  ;;  %v1989_v14 = vadd.f32 %v1976_v4, %v1968_v17 }
 0x2f7   :  { %v1990_v30 = vadd.f32 %v1976_v4, %v1969_v2  ;;  %v1991_v53 = vadd.f32 %v1976_v4, %v1970_v16  ;;  %v1992_v32 = vadd.f32 %v1976_v4, %v1971_v3  ;;  %v1993_v7 = vadd.f32 %v1976_v4, %v1972_v18 }
 0x2f8   :  { %v1994_v13 = vmax.f32 %v1978_v22, 0.0  ;;  %v1995_v11 = vmax.f32 %v1979_v5, 0.0  ;;  %v1996_v19 = vmax.f32 %v1980_v24, 0.0  ;;  %v1997_v20 = vmax.f32 %v1981_v6, 0.0 }
 0x2f9   :  { %v1998_v21 = vmax.f32 %v1982_v23, 0.0  ;;  %v1999_v26 = vmax.f32 %v1983_v8, 0.0  ;;  %v2000_v27 = vmax.f32 %v1984_v25, 0.0  ;;  %v2001_v28 = vmax.f32 %v1985_v9, 0.0 }
 0x2fa   :  { %v2002_v12 = vmax.f32 %v1986_v29, 0.0  ;;  %v2003_v33 = vmax.f32 %v1987_v10, 0.0  ;;  %v2004_v34 = vmax.f32 %v1988_v31, 0.0  ;;  %v2005_v35 = vmax.f32 %v1989_v14, 0.0  ;;  %2010 = vst [vmem:[%s3248_s4] sm:$0xff] %v1994_v13  ;;  %2011 = vst [vmem:[%s3248_s4 + $0x8] sm:$0xff] %v1995_v11 }
 0x2fb   :  { %2012 = vst [vmem:[%s3248_s4 + $0x10] sm:$0xff] %v1996_v19  ;;  %2013 = vst [vmem:[%s3248_s4 + $0x18] sm:$0xff] %v1997_v20  ;;  %v2006_v36 = vmax.f32 %v1990_v30, 0.0  ;;  %v2007_v37 = vmax.f32 %v1991_v53, 0.0  ;;  %v2008_v38 = vmax.f32 %v1992_v32, 0.0  ;;  %v2009_v39 = vmax.f32 %v1993_v7, 0.0 }
 0x2fc   :  { %2014 = vst [vmem:[%s3248_s4 + $0x20] sm:$0xff] %v1998_v21  ;;  %2015 = vst [vmem:[%s3248_s4 + $0x28] sm:$0xff] %v1999_v26 }
 0x2fd   :  { %2016 = vst [vmem:[%s3248_s4 + $0x30] sm:$0xff] %v2000_v27  ;;  %2017 = vst [vmem:[%s3248_s4 + $0x38] sm:$0xff] %v2001_v28 }
 0x2fe   :  { %2018 = vst [vmem:[%s3248_s4 + $0x40] sm:$0xff] %v2002_v12  ;;  %2019 = vst [vmem:[%s3248_s4 + $0x48] sm:$0xff] %v2003_v33 }
 0x2ff   :  { %2020 = vst [vmem:[%s3248_s4 + $0x50] sm:$0xff] %v2004_v34  ;;  %2021 = vst [vmem:[%s3248_s4 + $0x58] sm:$0xff] %v2005_v35 }
 0x300   :  { %2022 = vst [vmem:[%s3248_s4 + $0x60] sm:$0xff] %v2006_v36  ;;  %2023 = vst [vmem:[%s3248_s4 + $0x68] sm:$0xff] %v2007_v37 }
 0x301   :  { %2024 = vst [vmem:[%s3248_s4 + $0x70] sm:$0xff] %v2008_v38  ;;  %2025 = vst [vmem:[%s3248_s4 + $0x78] sm:$0xff] %v2009_v39 }

// kernel: generator_forward.9
= control target key start
LH: loop header
LB: loop body
LE: loop exit
PB: predicated region body
PF: predicated region fallthrough
CT: control target
= control target key end

     0   :  { %s1875_s9 = smov 0   ;;  %s1877_s10 = smov 0   ;;  %s2348_s0 = inlined_call_operand.vmem [shape: bf16[3,128], index: 0, kind: input, shape index: {}]   ;;  %s2349_s1 = inlined_call_operand.vmem [shape: bf16[128,8192], index: 1, kind: input, shape index: {}]   ;;  %s2350_s2 = inlined_call_operand.vmem [shape: f32[3,8192], index: 2, kind: output, shape index: {}]  }
   0x1   :  { %s1879_s11 = smov 0  }
   0x2 LB: > { %s1636_s12 = sadd.s32 4294967295, %s1857_s11   ;;  %s1892_s13 = sadd.s32 1, %s1857_s11   ;;  %s1857_s11 = sphi %s1879_s11, %s2353_s11   ;;  %s1853_s10 = sphi %s1877_s10, %s2352_s10   ;;  %s1849_s9 = sphi %s1875_s9, %s2351_s9  }
   0x3   : > { %s37_s14 = ssub.s32 %s1857_s11, %s1892_s13  ;;  %s40_s15 = sadd.s32 1, %s1853_s10 }
   0x4   : > { %p38_p0 = scmp.eq.s32.totalorder %s37_s14, 0  ;;  %p47_p1 = scmp.ne.s32.totalorder %s1853_s10, %s1849_s9 }
   0x5   : > { %p48_p2 = scmp.eq.s32.totalorder %s1857_s11, 0  ;;  %p1639_p4 = scmp.ge.s32.totalorder %s1857_s11, 4 }
   0x6   : > { %s1901_s16 = scalar_select %p38_p0, %s1853_s10, %s40_s15  }
   0x7   : > { %p49_p3 = por %p48_p2, %p47_p1  ;;  %102 = sbr.rel (%p1639_p4) target bundleno = 80 (0x50), region = 20 }
   0xc   : > { %105 = sbr.rel (!%p49_p3) target bundleno = 80 (0x50), region = 24  ;;  %s107_s17 = sand.u32 (%p49_p3), 1, %s1853_s10  }
   0xd   : > { %s1777_s18 = sshll.u32 (%p49_p3), %s1857_s11, 6  ;;  %s1640_s19 = sshll.u32 (%p49_p3), %s107_s17, 10 }
   0xe   : > { %s1909_s22 = scalar_lea.vmem (%p49_p3), %s2349_s1, %s1777_s18  ;;  %s1914_s23 = scalar_lea.vmem (%p49_p3), [#allocation2], %s1640_s19 }
   0xf   : > { %v125_v0 = vld [vmem:[%s1909_s22] sm:$0xff] (%p49_p3)  ;;  %v127_v1 = vld [vmem:[%s1909_s22 + $0x8] sm:$0xff] (%p49_p3)  ;;  %v129_v2 = vld [vmem:[%s1909_s22 + $0x10] sm:$0xff] (%p49_p3) }
  0x10   : > { %126 = vst [vmem:[%s1914_s23] sm:$0xff] (%p49_p3), %v125_v0  ;;  %128 = vst [vmem:[%s1914_s23 + $0x8] sm:$0xff] (%p49_p3), %v127_v1  ;;  %v131_v3 = vld [vmem:[%s1909_s22 + $0x18] sm:$0xff] (%p49_p3)  ;;  %v133_v4 = vld [vmem:[%s1909_s22 + $0x20] sm:$0xff] (%p49_p3) }
  0x11   : > { %130 = vst [vmem:[%s1914_s23 + $0x10] sm:$0xff] %v129_v2  ;;  %v135_v5 = vld [vmem:[%s1909_s22 + $0x28] sm:$0xff]  ;;  %132 = vst [vmem:[%s1914_s23 + $0x18] sm:$0xff] %v131_v3  ;;  %v137_v6 = vld [vmem:[%s1909_s22 + $0x30] sm:$0xff] }
  0x12   : > { %134 = vst [vmem:[%s1914_s23 + $0x20] sm:$0xff] %v133_v4  ;;  %136 = vst [vmem:[%s1914_s23 + $0x28] sm:$0xff] %v135_v5  ;;  %v139_v7 = vld [vmem:[%s1909_s22 + $0x38] sm:$0xff]  ;;  %v141_v8 = vld [vmem:[%s1909_s22 + $0x100] sm:$0xff] }
  0x13   : > { %138 = vst [vmem:[%s1914_s23 + $0x30] sm:$0xff] %v137_v6  ;;  %140 = vst [vmem:[%s1914_s23 + $0x38] sm:$0xff] %v139_v7  ;;  %v143_v9 = vld [vmem:[%s1909_s22 + $0x108] sm:$0xff]  ;;  %v145_v10 = vld [vmem:[%s1909_s22 + $0x110] sm:$0xff] }
  0x14   : > { %142 = vst [vmem:[%s1914_s23 + $0x40] sm:$0xff] %v141_v8  ;;  %v147_v11 = vld [vmem:[%s1909_s22 + $0x118] sm:$0xff]  ;;  %144 = vst [vmem:[%s1914_s23 + $0x48] sm:$0xff] %v143_v9  ;;  %v149_v12 = vld [vmem:[%s1909_s22 + $0x120] sm:$0xff] }
  0x15   : > { %146 = vst [vmem:[%s1914_s23 + $0x50] sm:$0xff] %v145_v10  ;;  %148 = vst [vmem:[%s1914_s23 + $0x58] sm:$0xff] %v147_v11  ;;  %v151_v13 = vld [vmem:[%s1909_s22 + $0x128] sm:$0xff]  ;;  %v153_v14 = vld [vmem:[%s1909_s22 + $0x130] sm:$0xff] }
  0x16   : > { %150 = vst [vmem:[%s1914_s23 + $0x60] sm:$0xff] %v149_v12  ;;  %152 = vst [vmem:[%s1914_s23 + $0x68] sm:$0xff] %v151_v13  ;;  %v155_v15 = vld [vmem:[%s1909_s22 + $0x138] sm:$0xff]  ;;  %v157_v16 = vld [vmem:[%s1909_s22 + $0x200] sm:$0xff] }
  0x17   : > { %154 = vst [vmem:[%s1914_s23 + $0x70] sm:$0xff] %v153_v14  ;;  %v159_v17 = vld [vmem:[%s1909_s22 + $0x208] sm:$0xff]  ;;  %156 = vst [vmem:[%s1914_s23 + $0x78] sm:$0xff] %v155_v15  ;;  %v161_v18 = vld [vmem:[%s1909_s22 + $0x210] sm:$0xff] }
  0x18   : > { %158 = vst [vmem:[%s1914_s23 + $0x80] sm:$0xff] %v157_v16  ;;  %160 = vst [vmem:[%s1914_s23 + $0x88] sm:$0xff] %v159_v17  ;;  %v163_v19 = vld [vmem:[%s1909_s22 + $0x218] sm:$0xff]  ;;  %v165_v20 = vld [vmem:[%s1909_s22 + $0x220] sm:$0xff] }
  0x19   : > { %162 = vst [vmem:[%s1914_s23 + $0x90] sm:$0xff] %v161_v18  ;;  %164 = vst [vmem:[%s1914_s23 + $0x98] sm:$0xff] %v163_v19  ;;  %v167_v21 = vld [vmem:[%s1909_s22 + $0x228] sm:$0xff]  ;;  %v169_v22 = vld [vmem:[%s1909_s22 + $0x230] sm:$0xff] }
  0x1a   : > { %166 = vst [vmem:[%s1914_s23 + $0xa0] sm:$0xff] %v165_v20  ;;  %v171_v23 = vld [vmem:[%s1909_s22 + $0x238] sm:$0xff]  ;;  %168 = vst [vmem:[%s1914_s23 + $0xa8] sm:$0xff] %v167_v21  ;;  %v173_v24 = vld [vmem:[%s1909_s22 + $0x300] sm:$0xff] }
  0x1b   : > { %170 = vst [vmem:[%s1914_s23 + $0xb0] sm:$0xff] %v169_v22  ;;  %172 = vst [vmem:[%s1914_s23 + $0xb8] sm:$0xff] %v171_v23  ;;  %v175_v25 = vld [vmem:[%s1909_s22 + $0x308] sm:$0xff]  ;;  %v177_v26 = vld [vmem:[%s1909_s22 + $0x310] sm:$0xff] }
  0x1c   : > { %174 = vst [vmem:[%s1914_s23 + $0xc0] sm:$0xff] %v173_v24  ;;  %176 = vst [vmem:[%s1914_s23 + $0xc8] sm:$0xff] %v175_v25  ;;  %v179_v27 = vld [vmem:[%s1909_s22 + $0x318] sm:$0xff]  ;;  %v181_v28 = vld [vmem:[%s1909_s22 + $0x320] sm:$0xff] }
  0x1d   : > { %178 = vst [vmem:[%s1914_s23 + $0xd0] sm:$0xff] %v177_v26  ;;  %v183_v29 = vld [vmem:[%s1909_s22 + $0x328] sm:$0xff]  ;;  %180 = vst [vmem:[%s1914_s23 + $0xd8] sm:$0xff] %v179_v27  ;;  %v185_v30 = vld [vmem:[%s1909_s22 + $0x330] sm:$0xff] }
  0x1e   : > { %182 = vst [vmem:[%s1914_s23 + $0xe0] sm:$0xff] %v181_v28  ;;  %184 = vst [vmem:[%s1914_s23 + $0xe8] sm:$0xff] %v183_v29  ;;  %v187_v31 = vld [vmem:[%s1909_s22 + $0x338] sm:$0xff]  ;;  %v189_v32 = vld [vmem:[%s1909_s22 + $0x400] sm:$0xff] }
  0x1f   : > { %186 = vst [vmem:[%s1914_s23 + $0xf0] sm:$0xff] %v185_v30  ;;  %188 = vst [vmem:[%s1914_s23 + $0xf8] sm:$0xff] %v187_v31  ;;  %v191_v33 = vld [vmem:[%s1909_s22 + $0x408] sm:$0xff]  ;;  %v193_v34 = vld [vmem:[%s1909_s22 + $0x410] sm:$0xff] }
  0x20   : > { %190 = vst [vmem:[%s1914_s23 + $0x100] sm:$0xff] %v189_v32  ;;  %v195_v35 = vld [vmem:[%s1909_s22 + $0x418] sm:$0xff]  ;;  %192 = vst [vmem:[%s1914_s23 + $0x108] sm:$0xff] %v191_v33  ;;  %v197_v36 = vld [vmem:[%s1909_s22 + $0x420] sm:$0xff] }
  0x21   : > { %194 = vst [vmem:[%s1914_s23 + $0x110] sm:$0xff] %v193_v34  ;;  %196 = vst [vmem:[%s1914_s23 + $0x118] sm:$0xff] %v195_v35  ;;  %v199_v37 = vld [vmem:[%s1909_s22 + $0x428] sm:$0xff]  ;;  %v201_v38 = vld [vmem:[%s1909_s22 + $0x430] sm:$0xff] }
  0x22   : > { %198 = vst [vmem:[%s1914_s23 + $0x120] sm:$0xff] %v197_v36  ;;  %200 = vst [vmem:[%s1914_s23 + $0x128] sm:$0xff] %v199_v37  ;;  %v203_v39 = vld [vmem:[%s1909_s22 + $0x438] sm:$0xff]  ;;  %v205_v40 = vld [vmem:[%s1909_s22 + $0x500] sm:$0xff] }
  0x23   : > { %202 = vst [vmem:[%s1914_s23 + $0x130] sm:$0xff] %v201_v38  ;;  %v207_v41 = vld [vmem:[%s1909_s22 + $0x508] sm:$0xff]  ;;  %204 = vst [vmem:[%s1914_s23 + $0x138] sm:$0xff] %v203_v39  ;;  %v209_v42 = vld [vmem:[%s1909_s22 + $0x510] sm:$0xff] }
  0x24   : > { %206 = vst [vmem:[%s1914_s23 + $0x140] sm:$0xff] %v205_v40  ;;  %208 = vst [vmem:[%s1914_s23 + $0x148] sm:$0xff] %v207_v41  ;;  %v211_v43 = vld [vmem:[%s1909_s22 + $0x518] sm:$0xff]  ;;  %v213_v44 = vld [vmem:[%s1909_s22 + $0x520] sm:$0xff] }
  0x25   : > { %210 = vst [vmem:[%s1914_s23 + $0x150] sm:$0xff] %v209_v42  ;;  %212 = vst [vmem:[%s1914_s23 + $0x158] sm:$0xff] %v211_v43  ;;  %v215_v45 = vld [vmem:[%s1909_s22 + $0x528] sm:$0xff]  ;;  %v217_v46 = vld [vmem:[%s1909_s22 + $0x530] sm:$0xff] }
  0x26   : > { %214 = vst [vmem:[%s1914_s23 + $0x160] sm:$0xff] %v213_v44  ;;  %v219_v47 = vld [vmem:[%s1909_s22 + $0x538] sm:$0xff]  ;;  %216 = vst [vmem:[%s1914_s23 + $0x168] sm:$0xff] %v215_v45  ;;  %v221_v48 = vld [vmem:[%s1909_s22 + $0x600] sm:$0xff] }
  0x27   : > { %218 = vst [vmem:[%s1914_s23 + $0x170] sm:$0xff] %v217_v46  ;;  %220 = vst [vmem:[%s1914_s23 + $0x178] sm:$0xff] %v219_v47  ;;  %v223_v49 = vld [vmem:[%s1909_s22 + $0x608] sm:$0xff]  ;;  %v225_v50 = vld [vmem:[%s1909_s22 + $0x610] sm:$0xff] }
  0x28   : > { %222 = vst [vmem:[%s1914_s23 + $0x180] sm:$0xff] %v221_v48  ;;  %224 = vst [vmem:[%s1914_s23 + $0x188] sm:$0xff] %v223_v49  ;;  %v227_v51 = vld [vmem:[%s1909_s22 + $0x618] sm:$0xff]  ;;  %v229_v52 = vld [vmem:[%s1909_s22 + $0x620] sm:$0xff] }
  0x29   : > { %226 = vst [vmem:[%s1914_s23 + $0x190] sm:$0xff] %v225_v50  ;;  %v231_v53 = vld [vmem:[%s1909_s22 + $0x628] sm:$0xff]  ;;  %228 = vst [vmem:[%s1914_s23 + $0x198] sm:$0xff] %v227_v51  ;;  %v233_v54 = vld [vmem:[%s1909_s22 + $0x630] sm:$0xff] }
  0x2a   : > { %230 = vst [vmem:[%s1914_s23 + $0x1a0] sm:$0xff] %v229_v52  ;;  %232 = vst [vmem:[%s1914_s23 + $0x1a8] sm:$0xff] %v231_v53  ;;  %v235_v55 = vld [vmem:[%s1909_s22 + $0x638] sm:$0xff]  ;;  %v237_v56 = vld [vmem:[%s1909_s22 + $0x700] sm:$0xff] }
  0x2b   : > { %234 = vst [vmem:[%s1914_s23 + $0x1b0] sm:$0xff] %v233_v54  ;;  %236 = vst [vmem:[%s1914_s23 + $0x1b8] sm:$0xff] %v235_v55  ;;  %v239_v57 = vld [vmem:[%s1909_s22 + $0x708] sm:$0xff]  ;;  %v241_v58 = vld [vmem:[%s1909_s22 + $0x710] sm:$0xff] }
  0x2c   : > { %238 = vst [vmem:[%s1914_s23 + $0x1c0] sm:$0xff] %v237_v56  ;;  %v243_v59 = vld [vmem:[%s1909_s22 + $0x718] sm:$0xff]  ;;  %240 = vst [vmem:[%s1914_s23 + $0x1c8] sm:$0xff] %v239_v57  ;;  %v245_v60 = vld [vmem:[%s1909_s22 + $0x720] sm:$0xff] }
  0x2d   : > { %242 = vst [vmem:[%s1914_s23 + $0x1d0] sm:$0xff] %v241_v58  ;;  %244 = vst [vmem:[%s1914_s23 + $0x1d8] sm:$0xff] %v243_v59  ;;  %v247_v61 = vld [vmem:[%s1909_s22 + $0x728] sm:$0xff]  ;;  %v249_v62 = vld [vmem:[%s1909_s22 + $0x730] sm:$0xff] }
  0x2e   : > { %246 = vst [vmem:[%s1914_s23 + $0x1e0] sm:$0xff] %v245_v60  ;;  %248 = vst [vmem:[%s1914_s23 + $0x1e8] sm:$0xff] %v247_v61  ;;  %v251_v63 = vld [vmem:[%s1909_s22 + $0x738] sm:$0xff]  ;;  %v253_v0 = vld [vmem:[%s1909_s22 + $0x800] sm:$0xff] }
  0x2f   : > { %250 = vst [vmem:[%s1914_s23 + $0x1f0] sm:$0xff] %v249_v62  ;;  %v255_v1 = vld [vmem:[%s1909_s22 + $0x808] sm:$0xff]  ;;  %252 = vst [vmem:[%s1914_s23 + $0x1f8] sm:$0xff] %v251_v63  ;;  %v257_v2 = vld [vmem:[%s1909_s22 + $0x810] sm:$0xff] }
  0x30   : > { %254 = vst [vmem:[%s1914_s23 + $0x200] sm:$0xff] %v253_v0  ;;  %256 = vst [vmem:[%s1914_s23 + $0x208] sm:$0xff] %v255_v1  ;;  %v259_v3 = vld [vmem:[%s1909_s22 + $0x818] sm:$0xff]  ;;  %v261_v4 = vld [vmem:[%s1909_s22 + $0x820] sm:$0xff] }
  0x31   : > { %258 = vst [vmem:[%s1914_s23 + $0x210] sm:$0xff] %v257_v2  ;;  %260 = vst [vmem:[%s1914_s23 + $0x218] sm:$0xff] %v259_v3  ;;  %v263_v5 = vld [vmem:[%s1909_s22 + $0x828] sm:$0xff]  ;;  %v265_v6 = vld [vmem:[%s1909_s22 + $0x830] sm:$0xff] }
  0x32   : > { %262 = vst [vmem:[%s1914_s23 + $0x220] sm:$0xff] %v261_v4  ;;  %v267_v7 = vld [vmem:[%s1909_s22 + $0x838] sm:$0xff]  ;;  %264 = vst [vmem:[%s1914_s23 + $0x228] sm:$0xff] %v263_v5  ;;  %v269_v8 = vld [vmem:[%s1909_s22 + $0x900] sm:$0xff] }
  0x33   : > { %266 = vst [vmem:[%s1914_s23 + $0x230] sm:$0xff] %v265_v6  ;;  %268 = vst [vmem:[%s1914_s23 + $0x238] sm:$0xff] %v267_v7  ;;  %v271_v9 = vld [vmem:[%s1909_s22 + $0x908] sm:$0xff]  ;;  %v273_v10 = vld [vmem:[%s1909_s22 + $0x910] sm:$0xff] }
  0x34   : > { %270 = vst [vmem:[%s1914_s23 + $0x240] sm:$0xff] %v269_v8  ;;  %272 = vst [vmem:[%s1914_s23 + $0x248] sm:$0xff] %v271_v9  ;;  %v275_v11 = vld [vmem:[%s1909_s22 + $0x918] sm:$0xff]  ;;  %v277_v12 = vld [vmem:[%s1909_s22 + $0x920] sm:$0xff] }
  0x35   : > { %274 = vst [vmem:[%s1914_s23 + $0x250] sm:$0xff] %v273_v10  ;;  %v279_v13 = vld [vmem:[%s1909_s22 + $0x928] sm:$0xff]  ;;  %276 = vst [vmem:[%s1914_s23 + $0x258] sm:$0xff] %v275_v11  ;;  %v281_v14 = vld [vmem:[%s1909_s22 + $0x930] sm:$0xff] }
  0x36   : > { %278 = vst [vmem:[%s1914_s23 + $0x260] sm:$0xff] %v277_v12  ;;  %280 = vst [vmem:[%s1914_s23 + $0x268] sm:$0xff] %v279_v13  ;;  %v283_v15 = vld [vmem:[%s1909_s22 + $0x938] sm:$0xff]  ;;  %v285_v16 = vld [vmem:[%s1909_s22 + $0xa00] sm:$0xff] }
  0x37   : > { %282 = vst [vmem:[%s1914_s23 + $0x270] sm:$0xff] %v281_v14  ;;  %284 = vst [vmem:[%s1914_s23 + $0x278] sm:$0xff] %v283_v15  ;;  %v287_v17 = vld [vmem:[%s1909_s22 + $0xa08] sm:$0xff]  ;;  %v289_v18 = vld [vmem:[%s1909_s22 + $0xa10] sm:$0xff] }
  0x38   : > { %286 = vst [vmem:[%s1914_s23 + $0x280] sm:$0xff] %v285_v16  ;;  %v291_v19 = vld [vmem:[%s1909_s22 + $0xa18] sm:$0xff]  ;;  %288 = vst [vmem:[%s1914_s23 + $0x288] sm:$0xff] %v287_v17  ;;  %v293_v20 = vld [vmem:[%s1909_s22 + $0xa20] sm:$0xff] }
  0x39   : > { %290 = vst [vmem:[%s1914_s23 + $0x290] sm:$0xff] %v289_v18  ;;  %292 = vst [vmem:[%s1914_s23 + $0x298] sm:$0xff] %v291_v19  ;;  %v295_v21 = vld [vmem:[%s1909_s22 + $0xa28] sm:$0xff]  ;;  %v297_v22 = vld [vmem:[%s1909_s22 + $0xa30] sm:$0xff] }
  0x3a   : > { %294 = vst [vmem:[%s1914_s23 + $0x2a0] sm:$0xff] %v293_v20  ;;  %296 = vst [vmem:[%s1914_s23 + $0x2a8] sm:$0xff] %v295_v21  ;;  %v299_v23 = vld [vmem:[%s1909_s22 + $0xa38] sm:$0xff]  ;;  %v301_v24 = vld [vmem:[%s1909_s22 + $0xb00] sm:$0xff] }
  0x3b   : > { %298 = vst [vmem:[%s1914_s23 + $0x2b0] sm:$0xff] %v297_v22  ;;  %v303_v25 = vld [vmem:[%s1909_s22 + $0xb08] sm:$0xff]  ;;  %300 = vst [vmem:[%s1914_s23 + $0x2b8] sm:$0xff] %v299_v23  ;;  %v305_v26 = vld [vmem:[%s1909_s22 + $0xb10] sm:$0xff] }
  0x3c   : > { %302 = vst [vmem:[%s1914_s23 + $0x2c0] sm:$0xff] %v301_v24  ;;  %304 = vst [vmem:[%s1914_s23 + $0x2c8] sm:$0xff] %v303_v25  ;;  %v307_v27 = vld [vmem:[%s1909_s22 + $0xb18] sm:$0xff]  ;;  %v309_v28 = vld [vmem:[%s1909_s22 + $0xb20] sm:$0xff] }
  0x3d   : > { %306 = vst [vmem:[%s1914_s23 + $0x2d0] sm:$0xff] %v305_v26  ;;  %308 = vst [vmem:[%s1914_s23 + $0x2d8] sm:$0xff] %v307_v27  ;;  %v311_v29 = vld [vmem:[%s1909_s22 + $0xb28] sm:$0xff]  ;;  %v313_v30 = vld [vmem:[%s1909_s22 + $0xb30] sm:$0xff] }
  0x3e   : > { %310 = vst [vmem:[%s1914_s23 + $0x2e0] sm:$0xff] %v309_v28  ;;  %v315_v31 = vld [vmem:[%s1909_s22 + $0xb38] sm:$0xff]  ;;  %312 = vst [vmem:[%s1914_s23 + $0x2e8] sm:$0xff] %v311_v29  ;;  %v317_v32 = vld [vmem:[%s1909_s22 + $0xc00] sm:$0xff] }
  0x3f   : > { %314 = vst [vmem:[%s1914_s23 + $0x2f0] sm:$0xff] %v313_v30  ;;  %316 = vst [vmem:[%s1914_s23 + $0x2f8] sm:$0xff] %v315_v31  ;;  %v319_v33 = vld [vmem:[%s1909_s22 + $0xc08] sm:$0xff]  ;;  %v321_v34 = vld [vmem:[%s1909_s22 + $0xc10] sm:$0xff] }
  0x40   : > { %318 = vst [vmem:[%s1914_s23 + $0x300] sm:$0xff] %v317_v32  ;;  %320 = vst [vmem:[%s1914_s23 + $0x308] sm:$0xff] %v319_v33  ;;  %v323_v35 = vld [vmem:[%s1909_s22 + $0xc18] sm:$0xff]  ;;  %v325_v36 = vld [vmem:[%s1909_s22 + $0xc20] sm:$0xff] }
  0x41   : > { %322 = vst [vmem:[%s1914_s23 + $0x310] sm:$0xff] %v321_v34  ;;  %v327_v37 = vld [vmem:[%s1909_s22 + $0xc28] sm:$0xff]  ;;  %324 = vst [vmem:[%s1914_s23 + $0x318] sm:$0xff] %v323_v35  ;;  %v329_v38 = vld [vmem:[%s1909_s22 + $0xc30] sm:$0xff] }
  0x42   : > { %326 = vst [vmem:[%s1914_s23 + $0x320] sm:$0xff] %v325_v36  ;;  %328 = vst [vmem:[%s1914_s23 + $0x328] sm:$0xff] %v327_v37  ;;  %v331_v39 = vld [vmem:[%s1909_s22 + $0xc38] sm:$0xff]  ;;  %v333_v40 = vld [vmem:[%s1909_s22 + $0xd00] sm:$0xff] }
  0x43   : > { %330 = vst [vmem:[%s1914_s23 + $0x330] sm:$0xff] %v329_v38  ;;  %332 = vst [vmem:[%s1914_s23 + $0x338] sm:$0xff] %v331_v39  ;;  %v335_v41 = vld [vmem:[%s1909_s22 + $0xd08] sm:$0xff]  ;;  %v337_v42 = vld [vmem:[%s1909_s22 + $0xd10] sm:$0xff] }
  0x44   : > { %334 = vst [vmem:[%s1914_s23 + $0x340] sm:$0xff] %v333_v40  ;;  %v339_v43 = vld [vmem:[%s1909_s22 + $0xd18] sm:$0xff]  ;;  %336 = vst [vmem:[%s1914_s23 + $0x348] sm:$0xff] %v335_v41  ;;  %v341_v44 = vld [vmem:[%s1909_s22 + $0xd20] sm:$0xff] }
  0x45   : > { %338 = vst [vmem:[%s1914_s23 + $0x350] sm:$0xff] %v337_v42  ;;  %340 = vst [vmem:[%s1914_s23 + $0x358] sm:$0xff] %v339_v43  ;;  %v343_v45 = vld [vmem:[%s1909_s22 + $0xd28] sm:$0xff]  ;;  %v345_v46 = vld [vmem:[%s1909_s22 + $0xd30] sm:$0xff] }
  0x46   : > { %342 = vst [vmem:[%s1914_s23 + $0x360] sm:$0xff] %v341_v44  ;;  %344 = vst [vmem:[%s1914_s23 + $0x368] sm:$0xff] %v343_v45  ;;  %v347_v47 = vld [vmem:[%s1909_s22 + $0xd38] sm:$0xff]  ;;  %v349_v48 = vld [vmem:[%s1909_s22 + $0xe00] sm:$0xff] }
  0x47   : > { %346 = vst [vmem:[%s1914_s23 + $0x370] sm:$0xff] %v345_v46  ;;  %v351_v49 = vld [vmem:[%s1909_s22 + $0xe08] sm:$0xff]  ;;  %348 = vst [vmem:[%s1914_s23 + $0x378] sm:$0xff] %v347_v47  ;;  %v353_v50 = vld [vmem:[%s1909_s22 + $0xe10] sm:$0xff] }
  0x48   : > { %350 = vst [vmem:[%s1914_s23 + $0x380] sm:$0xff] %v349_v48  ;;  %352 = vst [vmem:[%s1914_s23 + $0x388] sm:$0xff] %v351_v49  ;;  %v355_v51 = vld [vmem:[%s1909_s22 + $0xe18] sm:$0xff]  ;;  %v357_v52 = vld [vmem:[%s1909_s22 + $0xe20] sm:$0xff] }
  0x49   : > { %354 = vst [vmem:[%s1914_s23 + $0x390] sm:$0xff] %v353_v50  ;;  %356 = vst [vmem:[%s1914_s23 + $0x398] sm:$0xff] %v355_v51  ;;  %v359_v53 = vld [vmem:[%s1909_s22 + $0xe28] sm:$0xff]  ;;  %v361_v54 = vld [vmem:[%s1909_s22 + $0xe30] sm:$0xff] }
  0x4a   : > { %358 = vst [vmem:[%s1914_s23 + $0x3a0] sm:$0xff] %v357_v52  ;;  %v363_v55 = vld [vmem:[%s1909_s22 + $0xe38] sm:$0xff]  ;;  %360 = vst [vmem:[%s1914_s23 + $0x3a8] sm:$0xff] %v359_v53  ;;  %v365_v56 = vld [vmem:[%s1909_s22 + $0xf00] sm:$0xff] }
  0x4b   : > { %362 = vst [vmem:[%s1914_s23 + $0x3b0] sm:$0xff] %v361_v54  ;;  %364 = vst [vmem:[%s1914_s23 + $0x3b8] sm:$0xff] %v363_v55  ;;  %v367_v57 = vld [vmem:[%s1909_s22 + $0xf08] sm:$0xff]  ;;  %v369_v58 = vld [vmem:[%s1909_s22 + $0xf10] sm:$0xff] }
  0x4c   : > { %366 = vst [vmem:[%s1914_s23 + $0x3c0] sm:$0xff] %v365_v56  ;;  %368 = vst [vmem:[%s1914_s23 + $0x3c8] sm:$0xff] %v367_v57  ;;  %v371_v59 = vld [vmem:[%s1909_s22 + $0xf18] sm:$0xff]  ;;  %v373_v60 = vld [vmem:[%s1909_s22 + $0xf20] sm:$0xff] }
  0x4d   : > { %370 = vst [vmem:[%s1914_s23 + $0x3d0] sm:$0xff] %v369_v58  ;;  %v375_v61 = vld [vmem:[%s1909_s22 + $0xf28] sm:$0xff]  ;;  %372 = vst [vmem:[%s1914_s23 + $0x3d8] sm:$0xff] %v371_v59  ;;  %v377_v62 = vld [vmem:[%s1909_s22 + $0xf30] sm:$0xff] }
  0x4e   : > { %374 = vst [vmem:[%s1914_s23 + $0x3e0] sm:$0xff] %v373_v60  ;;  %376 = vst [vmem:[%s1914_s23 + $0x3e8] sm:$0xff] %v375_v61  ;;  %v379_v63 = vld [vmem:[%s1909_s22 + $0xf38] sm:$0xff] }
  0x4f   : > { %378 = vst [vmem:[%s1914_s23 + $0x3f0] sm:$0xff] %v377_v62  ;;  %380 = vst [vmem:[%s1914_s23 + $0x3f8] sm:$0xff] %v379_v63 }
  0x50 PF: > { %p1643_p5 = scmp.ge.s32.totalorder %s1857_s11, 1  ;;  %p385_p6 = scmp.lt.s32.totalorder %s1857_s11, 5 }
  0x52   : > { %p386_p7 = pnand %p1643_p5, %p385_p6 }
  0x53   : > { %s392_s24 = sand.u32 (!%p386_p7), 1, %s1849_s9   ;;  %s1645_s29 = sshll.u32 (!%p386_p7), %s1636_s12, 4 }
  0x54   : > { %389 = sbr.rel (%p386_p7) target bundleno = 434 (0x1b2), region = 47  ;;  %s1644_s25 = sshll.u32 (!%p386_p7), %s392_s24, 10 }
  0x55   : > { %s2174_s26 = scalar_lea.vmem (!%p386_p7), [#allocation2], %s1644_s25  ;;  %p415_p8 = scmp.lt.s32.totalorder (!%p386_p7), %s1645_s29, 63 }
  0x59   : > { %v1859_v0 = vmov 0   ;;  %v534_v1 = vld [vmem:[%s2174_s26 + $0x380] sm:$0xff]  ;;  %v535_v3 = vld [vmem:[%s2174_s26 + $0x388] sm:$0xff]  ;;  %v536_v63 = vld [vmem:[%s2174_s26 + $0x390] sm:$0xff]  ;;  %s2355_s29 = smov (!%p415_p8, %s1645_s29), 63 }
  0x5a   : > { %1222 = vmatprep.mubr.bf16.mxu0 %v1859_v0  ;;  %1263 = vmatprep.mubr.bf16.mxu1 %v1859_v0  ;;  %v542_v2 = vld [vmem:[%s2174_s26 + $0x3c0] sm:$0xff]  ;;  %v543_v5 = vld [vmem:[%s2174_s26 + $0x3c8] sm:$0xff]  ;;  %s1646_s30 = sshll.u32 %s2355_s29, 2 }
  0x5b   : > { %v1760_v4 = vcombine.high %v534_v1, %v542_v2  ;;  %v1759_v6 = vcombine.low %v534_v1, %v542_v2  ;;  %v518_v7 = vld [vmem:[%s2174_s26 + $0x300] sm:$0xff]  ;;  %v1762_v9 = vcombine.high %v535_v3, %v543_v5  ;;  %v1761_v10 = vcombine.low %v535_v3, %v543_v5  ;;  %v519_v12 = vld [vmem:[%s2174_s26 + $0x308] sm:$0xff]  ;;  %v544_v1 = vld [vmem:[%s2174_s26 + $0x3d0] sm:$0xff]  ;;  %s2328_s5 = scalar_lea.vmem %s2350_s2, %s1646_s30 }
  0x5c   : > { %v526_v8 = vld [vmem:[%s2174_s26 + $0x340] sm:$0xff]  ;;  %v527_v13 = vld [vmem:[%s2174_s26 + $0x348] sm:$0xff]  ;;  %v537_v2 = vld [vmem:[%s2174_s26 + $0x398] sm:$0xff] }
  0x5d   : > { %v1744_v11 = vcombine.high %v518_v7, %v526_v8  ;;  %v502_v14 = vld [vmem:[%s2174_s26 + $0x280] sm:$0xff]  ;;  %1190 = vmatprep.subr.bf16.mxu0 %v1760_v4  ;;  %v1746_v15 = vcombine.high %v519_v12, %v527_v13  ;;  %v503_v17 = vld [vmem:[%s2174_s26 + $0x288] sm:$0xff]  ;;  %1231 = vmatprep.subr.bf16.mxu1 %v1762_v9  ;;  %v1743_v19 = vcombine.low %v518_v7, %v526_v8  ;;  %v545_v3 = vld [vmem:[%s2174_s26 + $0x3d8] sm:$0xff] }
  0x5e   : > { %v510_v16 = vld [vmem:[%s2174_s26 + $0x2c0] sm:$0xff]  ;;  %v511_v18 = vld [vmem:[%s2174_s26 + $0x2c8] sm:$0xff]  ;;  %1191 = vmatpush1.bf16.msra.mxu0 %v1759_v6  ;;  %1232 = vmatpush1.bf16.msra.mxu1 %v1761_v10  ;;  %v1745_v20 = vcombine.low %v519_v12, %v527_v13  ;;  %v1764_v6 = vcombine.high %v536_v63, %v544_v1  ;;  %v1766_v7 = vcombine.high %v537_v2, %v545_v3  ;;  %v520_v8 = vld [vmem:[%s2174_s26 + $0x310] sm:$0xff] }
  0x5f   : > { %1192 = vmatprep.subr.bf16.mxu0 %v1744_v11  ;;  %v1728_v21 = vcombine.high %v502_v14, %v510_v16  ;;  %1233 = vmatprep.subr.bf16.mxu1 %v1746_v15  ;;  %v1730_v22 = vcombine.high %v503_v17, %v511_v18  ;;  %v486_v23 = vld [vmem:[%s2174_s26 + $0x200] sm:$0xff]  ;;  %v487_v25 = vld [vmem:[%s2174_s26 + $0x208] sm:$0xff]  ;;  %v1727_v27 = vcombine.low %v502_v14, %v510_v16  ;;  %v528_v9 = vld [vmem:[%s2174_s26 + $0x350] sm:$0xff] }
  0x60   : > { %v494_v24 = vld [vmem:[%s2174_s26 + $0x240] sm:$0xff]  ;;  %v495_v26 = vld [vmem:[%s2174_s26 + $0x248] sm:$0xff]  ;;  %v1729_v28 = vcombine.low %v503_v17, %v511_v18  ;;  %v521_v10 = vld [vmem:[%s2174_s26 + $0x318] sm:$0xff]  ;;  %v1763_v13 = vcombine.low %v536_v63, %v544_v1  ;;  %v1765_v14 = vcombine.low %v537_v2, %v545_v3  ;;  %v1748_v15 = vcombine.high %v520_v8, %v528_v9 }
  0x61   : > { %v1712_v29 = vcombine.high %v486_v23, %v494_v24  ;;  %v1714_v30 = vcombine.high %v487_v25, %v495_v26  ;;  %v470_v31 = vld [vmem:[%s2174_s26 + $0x180] sm:$0xff]  ;;  %v471_v33 = vld [vmem:[%s2174_s26 + $0x188] sm:$0xff]  ;;  %v1711_v35 = vcombine.low %v486_v23, %v494_v24  ;;  %v1713_v36 = vcombine.low %v487_v25, %v495_v26  ;;  %v529_v11 = vld [vmem:[%s2174_s26 + $0x358] sm:$0xff] }
  0x62   : > { %1193 = vmatpush1.bf16.msra.mxu0 %v1743_v19  ;;  %1234 = vmatpush1.bf16.msra.mxu1 %v1745_v20  ;;  %v478_v32 = vld [vmem:[%s2174_s26 + $0x1c0] sm:$0xff]  ;;  %v479_v34 = vld [vmem:[%s2174_s26 + $0x1c8] sm:$0xff]  ;;  %v1750_v16 = vcombine.high %v521_v10, %v529_v11  ;;  %v504_v17 = vld [vmem:[%s2174_s26 + $0x290] sm:$0xff] }
  0x63   : > { %1194 = vmatprep.subr.bf16.mxu0 %v1728_v21  ;;  %1235 = vmatprep.subr.bf16.mxu1 %v1730_v22  ;;  %v1696_v37 = vcombine.high %v470_v31, %v478_v32  ;;  %v1698_v38 = vcombine.high %v471_v33, %v479_v34  ;;  %v454_v39 = vld [vmem:[%s2174_s26 + $0x100] sm:$0xff]  ;;  %v455_v41 = vld [vmem:[%s2174_s26 + $0x108] sm:$0xff]  ;;  %v1695_v43 = vcombine.low %v470_v31, %v478_v32  ;;  %v512_v18 = vld [vmem:[%s2174_s26 + $0x2d0] sm:$0xff] }
  0x64   : > { %v462_v40 = vld [vmem:[%s2174_s26 + $0x140] sm:$0xff]  ;;  %v463_v42 = vld [vmem:[%s2174_s26 + $0x148] sm:$0xff]  ;;  %v1697_v44 = vcombine.low %v471_v33, %v479_v34  ;;  %v505_v19 = vld [vmem:[%s2174_s26 + $0x298] sm:$0xff]  ;;  %v1747_v21 = vcombine.low %v520_v8, %v528_v9  ;;  %v1749_v22 = vcombine.low %v521_v10, %v529_v11  ;;  %v1732_v23 = vcombine.high %v504_v17, %v512_v18 }
  0x65   : > { %v1680_v45 = vcombine.high %v454_v39, %v462_v40  ;;  %v1682_v46 = vcombine.high %v455_v41, %v463_v42  ;;  %v438_v47 = vld [vmem:[%s2174_s26 + $0x80] sm:$0xff]  ;;  %v439_v49 = vld [vmem:[%s2174_s26 + $0x88] sm:$0xff]  ;;  %v1679_v51 = vcombine.low %v454_v39, %v462_v40  ;;  %v1681_v52 = vcombine.low %v455_v41, %v463_v42  ;;  %v513_v20 = vld [vmem:[%s2174_s26 + $0x2d8] sm:$0xff] }
  0x66   : > { %1195 = vmatpush1.bf16.msra.mxu0 %v1727_v27  ;;  %1236 = vmatpush1.bf16.msra.mxu1 %v1729_v28  ;;  %v446_v48 = vld [vmem:[%s2174_s26 + $0xc0] sm:$0xff]  ;;  %v447_v50 = vld [vmem:[%s2174_s26 + $0xc8] sm:$0xff]  ;;  %v1734_v24 = vcombine.high %v505_v19, %v513_v20  ;;  %v488_v25 = vld [vmem:[%s2174_s26 + $0x210] sm:$0xff] }
  0x67   : > { %1196 = vmatprep.subr.bf16.mxu0 %v1712_v29  ;;  %1237 = vmatprep.subr.bf16.mxu1 %v1714_v30  ;;  %v1664_v53 = vcombine.high %v438_v47, %v446_v48  ;;  %v1666_v54 = vcombine.high %v439_v49, %v447_v50  ;;  %v422_v55 = vld [vmem:[%s2174_s26] sm:$0xff]  ;;  %v423_v57 = vld [vmem:[%s2174_s26 + $0x8] sm:$0xff]  ;;  %v1663_v59 = vcombine.low %v438_v47, %v446_v48  ;;  %v496_v26 = vld [vmem:[%s2174_s26 + $0x250] sm:$0xff] }
  0x68   : > { %v430_v56 = vld [vmem:[%s2174_s26 + $0x40] sm:$0xff]  ;;  %v431_v58 = vld [vmem:[%s2174_s26 + $0x48] sm:$0xff]  ;;  %v1665_v60 = vcombine.low %v439_v49, %v447_v50  ;;  %v489_v27 = vld [vmem:[%s2174_s26 + $0x218] sm:$0xff]  ;;  %v1731_v29 = vcombine.low %v504_v17, %v512_v18  ;;  %v1733_v30 = vcombine.low %v505_v19, %v513_v20  ;;  %v1716_v31 = vcombine.high %v488_v25, %v496_v26 }
  0x69   : > { %v1648_v61 = vcombine.high %v422_v55, %v430_v56  ;;  %v1650_v62 = vcombine.high %v423_v57, %v431_v58  ;;  %v1647_v4 = vcombine.low %v422_v55, %v430_v56  ;;  %v1649_v5 = vcombine.low %v423_v57, %v431_v58  ;;  %v2219_v12 = vld [vmem:[%s2348_s0] sm:$0x3]  ;;  %v497_v28 = vld [vmem:[%s2174_s26 + $0x258] sm:$0xff]  ;;  %v472_v33 = vld [vmem:[%s2174_s26 + $0x190] sm:$0xff] }
  0x6a   : > { %1197 = vmatpush1.bf16.msra.mxu0 %v1711_v35  ;;  %1238 = vmatpush1.bf16.msra.mxu1 %v1713_v36  ;;  %v1718_v32 = vcombine.high %v489_v27, %v497_v28  ;;  %v480_v34 = vld [vmem:[%s2174_s26 + $0x1d0] sm:$0xff]  ;;  %v473_v35 = vld [vmem:[%s2174_s26 + $0x198] sm:$0xff]  ;;  %v538_v2 = vld [vmem:[%s2174_s26 + $0x3a0] sm:$0xff] }
  0x6b   : > { %1198 = vmatprep.subr.bf16.mxu0 %v1696_v37  ;;  %1239 = vmatprep.subr.bf16.mxu1 %v1698_v38  ;;  %v481_v36 = vld [vmem:[%s2174_s26 + $0x1d8] sm:$0xff]  ;;  %v1715_v37 = vcombine.low %v488_v25, %v496_v26  ;;  %v1717_v38 = vcombine.low %v489_v27, %v497_v28  ;;  %v1700_v39 = vcombine.high %v472_v33, %v480_v34  ;;  %v456_v41 = vld [vmem:[%s2174_s26 + $0x110] sm:$0xff]  ;;  %v546_v3 = vld [vmem:[%s2174_s26 + $0x3e0] sm:$0xff] }
  0x6c   : > { %v1702_v40 = vcombine.high %v473_v35, %v481_v36  ;;  %v464_v42 = vld [vmem:[%s2174_s26 + $0x150] sm:$0xff]  ;;  %v1768_v8 = vcombine.high %v538_v2, %v546_v3  ;;  %v522_v10 = vld [vmem:[%s2174_s26 + $0x320] sm:$0xff] }
  0x6d   : > { %v1684_v47 = vcombine.high %v456_v41, %v464_v42  ;;  %v440_v49 = vld [vmem:[%s2174_s26 + $0x90] sm:$0xff]  ;;  %v530_v11 = vld [vmem:[%s2174_s26 + $0x360] sm:$0xff] }
  0x6e   : > { %1199 = vmatpush1.bf16.msra.mxu0 %v1695_v43  ;;  %1240 = vmatpush1.bf16.msra.mxu1 %v1697_v44  ;;  %v457_v43 = vld [vmem:[%s2174_s26 + $0x118] sm:$0xff]  ;;  %v448_v50 = vld [vmem:[%s2174_s26 + $0xd0] sm:$0xff]  ;;  %v1752_v17 = vcombine.high %v522_v10, %v530_v11  ;;  %v506_v19 = vld [vmem:[%s2174_s26 + $0x2a0] sm:$0xff] }
  0x6f   : > { %1200 = vmatprep.subr.bf16.mxu0 %v1680_v45  ;;  %1241 = vmatprep.subr.bf16.mxu1 %v1682_v46  ;;  %v465_v44 = vld [vmem:[%s2174_s26 + $0x158] sm:$0xff]  ;;  %v1699_v45 = vcombine.low %v472_v33, %v480_v34  ;;  %v1701_v46 = vcombine.low %v473_v35, %v481_v36  ;;  %v1668_v55 = vcombine.high %v440_v49, %v448_v50  ;;  %v424_v57 = vld [vmem:[%s2174_s26 + $0x10] sm:$0xff]  ;;  %v514_v20 = vld [vmem:[%s2174_s26 + $0x2e0] sm:$0xff] }
  0x70   : > { %v1686_v48 = vcombine.high %v457_v43, %v465_v44  ;;  %v432_v58 = vld [vmem:[%s2174_s26 + $0x50] sm:$0xff]  ;;  %v1736_v25 = vcombine.high %v506_v19, %v514_v20  ;;  %v490_v27 = vld [vmem:[%s2174_s26 + $0x220] sm:$0xff] }
  0x71   : > { %v1652_v63 = vcombine.high %v424_v57, %v432_v58  ;;  %v498_v28 = vld [vmem:[%s2174_s26 + $0x260] sm:$0xff] }
  0x72   : > { %1201 = vmatpush1.bf16.msra.mxu0 %v1679_v51  ;;  %1242 = vmatpush1.bf16.msra.mxu1 %v1681_v52  ;;  %v441_v51 = vld [vmem:[%s2174_s26 + $0x98] sm:$0xff]  ;;  %v1720_v33 = vcombine.high %v490_v27, %v498_v28  ;;  %v474_v35 = vld [vmem:[%s2174_s26 + $0x1a0] sm:$0xff] }
  0x73   : > { %1202 = vmatprep.subr.bf16.mxu0 %v1664_v53  ;;  %1243 = vmatprep.subr.bf16.mxu1 %v1666_v54  ;;  %v449_v52 = vld [vmem:[%s2174_s26 + $0xd8] sm:$0xff]  ;;  %v1683_v53 = vcombine.low %v456_v41, %v464_v42  ;;  %v1685_v54 = vcombine.low %v457_v43, %v465_v44  ;;  %v482_v36 = vld [vmem:[%s2174_s26 + $0x1e0] sm:$0xff] }
  0x74   : > { %v1670_v56 = vcombine.high %v441_v51, %v449_v52  ;;  %v1704_v41 = vcombine.high %v474_v35, %v482_v36  ;;  %v458_v43 = vld [vmem:[%s2174_s26 + $0x120] sm:$0xff] }
  0x75   : > { %v466_v44 = vld [vmem:[%s2174_s26 + $0x160] sm:$0xff] }
  0x76   : > { %1203 = vmatpush1.bf16.msra.mxu0 %v1663_v59  ;;  %1244 = vmatpush1.bf16.msra.mxu1 %v1665_v60  ;;  %v425_v59 = vld [vmem:[%s2174_s26 + $0x18] sm:$0xff] }
  0x77   : > { %1204 = vmatprep.subr.bf16.mxu0 %v1648_v61  ;;  %1245 = vmatprep.subr.bf16.mxu1 %v1650_v62  ;;  %v433_v60 = vld [vmem:[%s2174_s26 + $0x58] sm:$0xff]  ;;  %v1667_v61 = vcombine.low %v440_v49, %v448_v50  ;;  %v1669_v62 = vcombine.low %v441_v51, %v449_v52  ;;  %v1688_v49 = vcombine.high %v458_v43, %v466_v44  ;;  %v442_v51 = vld [vmem:[%s2174_s26 + $0xa0] sm:$0xff] }
  0x78   : > { %v1654_v1 = vcombine.high %v425_v59, %v433_v60  ;;  %v450_v52 = vld [vmem:[%s2174_s26 + $0xe0] sm:$0xff] }
  0x7a   : > { %1205 = vmatpush1.bf16.msra.mxu0 %v1647_v4  ;;  %1246 = vmatpush1.bf16.msra.mxu1 %v1649_v5  ;;  %v539_v4 = vld [vmem:[%s2174_s26 + $0x3a8] sm:$0xff] }
  0x7b   : > { %1272 = vmatprep.subr.bf16.mxu0 %v1764_v6  ;;  %1313 = vmatprep.subr.bf16.mxu1 %v1766_v7  ;;  %v547_v5 = vld [vmem:[%s2174_s26 + $0x3e8] sm:$0xff]  ;;  %v1651_v6 = vcombine.low %v424_v57, %v432_v58  ;;  %v1653_v7 = vcombine.low %v425_v59, %v433_v60  ;;  %v1672_v57 = vcombine.high %v442_v51, %v450_v52  ;;  %v426_v59 = vld [vmem:[%s2174_s26 + $0x20] sm:$0xff] }
  0x7c   : > { %v1770_v9 = vcombine.high %v539_v4, %v547_v5  ;;  %v434_v60 = vld [vmem:[%s2174_s26 + $0x60] sm:$0xff] }
  0x7d   : > { %1223 = vmatmul.mubr.bf16.vlgmr.msra.gmra.mxu0 %v2219_v12  ;;  %1264 = vmatmul.mubr.bf16.vlgmr.msra.gmra.mxu1 %v2219_v12 }
  0x7e   : > { %1273 = vmatpush1.bf16.msra.mxu0 %v1763_v13  ;;  %1314 = vmatpush1.bf16.msra.mxu1 %v1765_v14  ;;  %v523_v13 = vld [vmem:[%s2174_s26 + $0x328] sm:$0xff] }
  0x7f   : > { %1274 = vmatprep.subr.bf16.mxu0 %v1748_v15  ;;  %1315 = vmatprep.subr.bf16.mxu1 %v1750_v16  ;;  %v531_v14 = vld [vmem:[%s2174_s26 + $0x368] sm:$0xff]  ;;  %v1767_v15 = vcombine.low %v538_v2, %v546_v3  ;;  %v1769_v16 = vcombine.low %v539_v4, %v547_v5  ;;  %v1656_v2 = vcombine.high %v426_v59, %v434_v60  ;;  %v540_v4 = vld [vmem:[%s2174_s26 + $0x3b0] sm:$0xff] }
  0x80   : > { %1304 = vmatprep.mubr.bf16.mxu0 %v1859_v0  ;;  %1345 = vmatprep.mubr.bf16.mxu1 %v1859_v0  ;;  %v1754_v18 = vcombine.high %v523_v13, %v531_v14  ;;  %v548_v5 = vld [vmem:[%s2174_s26 + $0x3f0] sm:$0xff] }
  0x82   : > { %1275 = vmatpush1.bf16.msra.mxu0 %v1747_v21  ;;  %1316 = vmatpush1.bf16.msra.mxu1 %v1749_v22  ;;  %v507_v21 = vld [vmem:[%s2174_s26 + $0x2a8] sm:$0xff] }
  0x83   : > { %1276 = vmatprep.subr.bf16.mxu0 %v1732_v23  ;;  %1317 = vmatprep.subr.bf16.mxu1 %v1734_v24  ;;  %v515_v22 = vld [vmem:[%s2174_s26 + $0x2e8] sm:$0xff]  ;;  %v1751_v23 = vcombine.low %v522_v10, %v530_v11  ;;  %v1753_v24 = vcombine.low %v523_v13, %v531_v14  ;;  %v1772_v10 = vcombine.high %v540_v4, %v548_v5  ;;  %v524_v13 = vld [vmem:[%s2174_s26 + $0x330] sm:$0xff] }
  0x84   : > { %v1738_v26 = vcombine.high %v507_v21, %v515_v22  ;;  %v532_v14 = vld [vmem:[%s2174_s26 + $0x370] sm:$0xff] }
  0x86   : > { %1277 = vmatpush1.bf16.msra.mxu0 %v1731_v29  ;;  %1318 = vmatpush1.bf16.msra.mxu1 %v1733_v30  ;;  %v491_v29 = vld [vmem:[%s2174_s26 + $0x228] sm:$0xff] }
  0x87   : > { %1278 = vmatprep.subr.bf16.mxu0 %v1716_v31  ;;  %1319 = vmatprep.subr.bf16.mxu1 %v1718_v32  ;;  %v499_v30 = vld [vmem:[%s2174_s26 + $0x268] sm:$0xff]  ;;  %v1735_v31 = vcombine.low %v506_v19, %v514_v20  ;;  %v1737_v32 = vcombine.low %v507_v21, %v515_v22  ;;  %v1756_v19 = vcombine.high %v524_v13, %v532_v14  ;;  %v508_v21 = vld [vmem:[%s2174_s26 + $0x2b0] sm:$0xff] }
  0x88   : > { %v1722_v34 = vcombine.high %v491_v29, %v499_v30  ;;  %v516_v22 = vld [vmem:[%s2174_s26 + $0x2f0] sm:$0xff] }
  0x8a   : > { %1279 = vmatpush1.bf16.msra.mxu0 %v1715_v37  ;;  %1320 = vmatpush1.bf16.msra.mxu1 %v1717_v38  ;;  %v475_v37 = vld [vmem:[%s2174_s26 + $0x1a8] sm:$0xff] }
  0x8b   : > { %1280 = vmatprep.subr.bf16.mxu0 %v1700_v39  ;;  %1321 = vmatprep.subr.bf16.mxu1 %v1702_v40  ;;  %v483_v38 = vld [vmem:[%s2174_s26 + $0x1e8] sm:$0xff]  ;;  %v1719_v39 = vcombine.low %v490_v27, %v498_v28  ;;  %v1721_v40 = vcombine.low %v491_v29, %v499_v30  ;;  %v1740_v27 = vcombine.high %v508_v21, %v516_v22  ;;  %v492_v29 = vld [vmem:[%s2174_s26 + $0x230] sm:$0xff] }
  0x8c   : > { %v1706_v42 = vcombine.high %v475_v37, %v483_v38  ;;  %v500_v30 = vld [vmem:[%s2174_s26 + $0x270] sm:$0xff] }
  0x8e   : > { %1281 = vmatpush1.bf16.msra.mxu0 %v1699_v45  ;;  %1322 = vmatpush1.bf16.msra.mxu1 %v1701_v46  ;;  %v459_v45 = vld [vmem:[%s2174_s26 + $0x128] sm:$0xff] }
  0x8f   : > { %1282 = vmatprep.subr.bf16.mxu0 %v1684_v47  ;;  %1323 = vmatprep.subr.bf16.mxu1 %v1686_v48  ;;  %v467_v46 = vld [vmem:[%s2174_s26 + $0x168] sm:$0xff]  ;;  %v1703_v47 = vcombine.low %v474_v35, %v482_v36  ;;  %v1705_v48 = vcombine.low %v475_v37, %v483_v38  ;;  %v1724_v35 = vcombine.high %v492_v29, %v500_v30  ;;  %v476_v37 = vld [vmem:[%s2174_s26 + $0x1b0] sm:$0xff] }
  0x90   : > { %v1690_v50 = vcombine.high %v459_v45, %v467_v46  ;;  %v484_v38 = vld [vmem:[%s2174_s26 + $0x1f0] sm:$0xff] }
  0x92   : > { %1283 = vmatpush1.bf16.msra.mxu0 %v1683_v53  ;;  %1324 = vmatpush1.bf16.msra.mxu1 %v1685_v54  ;;  %v443_v53 = vld [vmem:[%s2174_s26 + $0xa8] sm:$0xff] }
  0x93   : > { %1284 = vmatprep.subr.bf16.mxu0 %v1668_v55  ;;  %1325 = vmatprep.subr.bf16.mxu1 %v1670_v56  ;;  %v451_v54 = vld [vmem:[%s2174_s26 + $0xe8] sm:$0xff]  ;;  %v1687_v55 = vcombine.low %v458_v43, %v466_v44  ;;  %v1689_v56 = vcombine.low %v459_v45, %v467_v46  ;;  %v460_v44 = vld [vmem:[%s2174_s26 + $0x130] sm:$0xff]  ;;  %v461_v46 = vld [vmem:[%s2174_s26 + $0x138] sm:$0xff] }
  0x94   : > { %v1674_v58 = vcombine.high %v443_v53, %v451_v54  ;;  %v468_v45 = vld [vmem:[%s2174_s26 + $0x170] sm:$0xff] }
  0x96   : > { %1285 = vmatpush1.bf16.msra.mxu0 %v1667_v61  ;;  %1326 = vmatpush1.bf16.msra.mxu1 %v1669_v62  ;;  %v427_v61 = vld [vmem:[%s2174_s26 + $0x28] sm:$0xff] }
  0x97   : > { %1286 = vmatprep.subr.bf16.mxu0 %v1652_v63  ;;  %1327 = vmatprep.subr.bf16.mxu1 %v1654_v1  ;;  %v435_v62 = vld [vmem:[%s2174_s26 + $0x68] sm:$0xff]  ;;  %v1671_v63 = vcombine.low %v442_v51, %v450_v52  ;;  %v1673_v1 = vcombine.low %v443_v53, %v451_v54  ;;  %v444_v52 = vld [vmem:[%s2174_s26 + $0xb0] sm:$0xff]  ;;  %v445_v54 = vld [vmem:[%s2174_s26 + $0xb8] sm:$0xff] }
  0x98   : > { %v1658_v3 = vcombine.high %v427_v61, %v435_v62  ;;  %v452_v53 = vld [vmem:[%s2174_s26 + $0xf0] sm:$0xff] }
  0x9a   : > { %1287 = vmatpush1.bf16.msra.mxu0 %v1651_v6  ;;  %1328 = vmatpush1.bf16.msra.mxu1 %v1653_v7  ;;  %v541_v6 = vld [vmem:[%s2174_s26 + $0x3b8] sm:$0xff] }
  0x9b   : > { %1354 = vmatprep.subr.bf16.mxu0 %v1768_v8  ;;  %1395 = vmatprep.subr.bf16.mxu1 %v1770_v9  ;;  %v549_v7 = vld [vmem:[%s2174_s26 + $0x3f8] sm:$0xff]  ;;  %v1655_v8 = vcombine.low %v426_v59, %v434_v60  ;;  %v1657_v9 = vcombine.low %v427_v61, %v435_v62  ;;  %v428_v60 = vld [vmem:[%s2174_s26 + $0x30] sm:$0xff] }
  0x9c   : > { %v1774_v11 = vcombine.high %v541_v6, %v549_v7  ;;  %v436_v61 = vld [vmem:[%s2174_s26 + $0x70] sm:$0xff]  ;;  %v429_v62 = vld [vmem:[%s2174_s26 + $0x38] sm:$0xff] }
  0x9d   : > { %1305 = vmatmul.mubr.bf16.vlgmr.msra.gmra.mxu0 %v2219_v12  ;;  %1346 = vmatmul.mubr.bf16.vlgmr.msra.gmra.mxu1 %v2219_v12 }
  0x9e   : > { %1355 = vmatpush1.bf16.msra.mxu0 %v1767_v15  ;;  %1396 = vmatpush1.bf16.msra.mxu1 %v1769_v16  ;;  %v525_v15 = vld [vmem:[%s2174_s26 + $0x338] sm:$0xff] }
  0x9f   : > { %1356 = vmatprep.subr.bf16.mxu0 %v1752_v17  ;;  %1397 = vmatprep.subr.bf16.mxu1 %v1754_v18  ;;  %v533_v16 = vld [vmem:[%s2174_s26 + $0x378] sm:$0xff]  ;;  %v1771_v17 = vcombine.low %v540_v4, %v548_v5  ;;  %v1773_v18 = vcombine.low %v541_v6, %v549_v7  ;;  %v1659_v5 = vcombine.low %v428_v60, %v436_v61 }
  0xa0   : > { %1386 = vmatprep.mubr.bf16.mxu0 %v1859_v0  ;;  %1427 = vmatprep.mubr.bf16.mxu1 %v1859_v0  ;;  %v1758_v20 = vcombine.high %v525_v15, %v533_v16 }
  0xa2   : > { %1357 = vmatpush1.bf16.msra.mxu0 %v1751_v23  ;;  %1398 = vmatpush1.bf16.msra.mxu1 %v1753_v24  ;;  %v509_v23 = vld [vmem:[%s2174_s26 + $0x2b8] sm:$0xff] }
  0xa3   : > { %1358 = vmatprep.subr.bf16.mxu0 %v1736_v25  ;;  %1399 = vmatprep.subr.bf16.mxu1 %v1738_v26  ;;  %v517_v24 = vld [vmem:[%s2174_s26 + $0x2f8] sm:$0xff]  ;;  %v1755_v25 = vcombine.low %v524_v13, %v532_v14  ;;  %v1757_v26 = vcombine.low %v525_v15, %v533_v16 }
  0xa4   : > { %v1742_v28 = vcombine.high %v509_v23, %v517_v24 }
  0xa6   : > { %1359 = vmatpush1.bf16.msra.mxu0 %v1735_v31  ;;  %1400 = vmatpush1.bf16.msra.mxu1 %v1737_v32  ;;  %v493_v31 = vld [vmem:[%s2174_s26 + $0x238] sm:$0xff] }
  0xa7   : > { %1360 = vmatprep.subr.bf16.mxu0 %v1720_v33  ;;  %1401 = vmatprep.subr.bf16.mxu1 %v1722_v34  ;;  %v501_v32 = vld [vmem:[%s2174_s26 + $0x278] sm:$0xff]  ;;  %v1739_v33 = vcombine.low %v508_v21, %v516_v22  ;;  %v1741_v34 = vcombine.low %v509_v23, %v517_v24 }
  0xa8   : > { %v1726_v36 = vcombine.high %v493_v31, %v501_v32 }
  0xaa   : > { %1361 = vmatpush1.bf16.msra.mxu0 %v1719_v39  ;;  %1402 = vmatpush1.bf16.msra.mxu1 %v1721_v40  ;;  %v477_v39 = vld [vmem:[%s2174_s26 + $0x1b8] sm:$0xff] }
  0xab   : > { %1362 = vmatprep.subr.bf16.mxu0 %v1704_v41  ;;  %1403 = vmatprep.subr.bf16.mxu1 %v1706_v42  ;;  %v485_v40 = vld [vmem:[%s2174_s26 + $0x1f8] sm:$0xff]  ;;  %v1723_v41 = vcombine.low %v492_v29, %v500_v30  ;;  %v1708_v42 = vcombine.high %v476_v37, %v484_v38 }
  0xac   : > { %v1710_v43 = vcombine.high %v477_v39, %v485_v40 }
  0xae   : > { %1363 = vmatpush1.bf16.msra.mxu0 %v1703_v47  ;;  %1404 = vmatpush1.bf16.msra.mxu1 %v1705_v48  ;;  %v469_v47 = vld [vmem:[%s2174_s26 + $0x178] sm:$0xff]  ;;  %v1707_v48 = vcombine.low %v476_v37, %v484_v38 }
  0xaf   : > { %1364 = vmatprep.subr.bf16.mxu0 %v1688_v49  ;;  %1405 = vmatprep.subr.bf16.mxu1 %v1690_v50  ;;  %v1709_v49 = vcombine.low %v477_v39, %v485_v40  ;;  %v1692_v50 = vcombine.high %v460_v44, %v468_v45  ;;  %v1694_v51 = vcombine.high %v461_v46, %v469_v47 }
  0xb2   : > { %1365 = vmatpush1.bf16.msra.mxu0 %v1687_v55  ;;  %1406 = vmatpush1.bf16.msra.mxu1 %v1689_v56  ;;  %v453_v55 = vld [vmem:[%s2174_s26 + $0xf8] sm:$0xff]  ;;  %v1691_v56 = vcombine.low %v460_v44, %v468_v45 }
  0xb3   : > { %1366 = vmatprep.subr.bf16.mxu0 %v1672_v57  ;;  %1407 = vmatprep.subr.bf16.mxu1 %v1674_v58  ;;  %v1693_v57 = vcombine.low %v461_v46, %v469_v47  ;;  %v1676_v58 = vcombine.high %v444_v52, %v452_v53  ;;  %v1678_v59 = vcombine.high %v445_v54, %v453_v55 }
  0xb6   : > { %1367 = vmatpush1.bf16.msra.mxu0 %v1671_v63  ;;  %1408 = vmatpush1.bf16.msra.mxu1 %v1673_v1  ;;  %v437_v63 = vld [vmem:[%s2174_s26 + $0x78] sm:$0xff]  ;;  %v1675_v1 = vcombine.low %v444_v52, %v452_v53 }
  0xb7   : > { %1368 = vmatprep.subr.bf16.mxu0 %v1656_v2  ;;  %1409 = vmatprep.subr.bf16.mxu1 %v1658_v3  ;;  %v1677_v2 = vcombine.low %v445_v54, %v453_v55  ;;  %v1660_v3 = vcombine.high %v428_v60, %v436_v61  ;;  %v1662_v4 = vcombine.high %v429_v62, %v437_v63 }
  0xb8   : > { %v1661_v6 = vcombine.low %v429_v62, %v437_v63 }
  0xba   : > { %1369 = vmatpush1.bf16.msra.mxu0 %v1655_v8  ;;  %1410 = vmatpush1.bf16.msra.mxu1 %v1657_v9 }
  0xbb   : > { %1436 = vmatprep.subr.bf16.mxu0 %v1772_v10  ;;  %1477 = vmatprep.subr.bf16.mxu1 %v1774_v11 }
  0xbd   : > { %1387 = vmatmul.mubr.bf16.vlgmr.msra.gmra.mxu0 %v2219_v12  ;;  %1428 = vmatmul.mubr.bf16.vlgmr.msra.gmra.mxu1 %v2219_v12 }
  0xbe   : > { %1437 = vmatpush1.bf16.msra.mxu0 %v1771_v17  ;;  %1478 = vmatpush1.bf16.msra.mxu1 %v1773_v18 }
  0xbf   : > { %1438 = vmatprep.subr.bf16.mxu0 %v1756_v19  ;;  %1479 = vmatprep.subr.bf16.mxu1 %v1758_v20 }
  0xc0   : > { %1468 = vmatprep.mubr.bf16.mxu0 %v1859_v0  ;;  %1509 = vmatprep.mubr.bf16.mxu1 %v1859_v0  ;;  %v1725_v0 = vcombine.low %v493_v31, %v501_v32 }
  0xc2   : > { %1439 = vmatpush1.bf16.msra.mxu0 %v1755_v25  ;;  %1480 = vmatpush1.bf16.msra.mxu1 %v1757_v26 }
  0xc3   : > { %1440 = vmatprep.subr.bf16.mxu0 %v1740_v27  ;;  %1481 = vmatprep.subr.bf16.mxu1 %v1742_v28 }
  0xc6   : > { %1441 = vmatpush1.bf16.msra.mxu0 %v1739_v33  ;;  %1482 = vmatpush1.bf16.msra.mxu1 %v1741_v34 }
  0xc7   : > { %1442 = vmatprep.subr.bf16.mxu0 %v1724_v35  ;;  %1483 = vmatprep.subr.bf16.mxu1 %v1726_v36 }
  0xca   : > { %1443 = vmatpush1.bf16.msra.mxu0 %v1723_v41  ;;  %1484 = vmatpush1.bf16.msra.mxu1 %v1725_v0 }
  0xcb   : > { %1444 = vmatprep.subr.bf16.mxu0 %v1708_v42  ;;  %1485 = vmatprep.subr.bf16.mxu1 %v1710_v43 }
  0xce   : > { %1445 = vmatpush1.bf16.msra.mxu0 %v1707_v48  ;;  %1486 = vmatpush1.bf16.msra.mxu1 %v1709_v49 }
  0xcf   : > { %1446 = vmatprep.subr.bf16.mxu0 %v1692_v50  ;;  %1487 = vmatprep.subr.bf16.mxu1 %v1694_v51 }
  0xd2   : > { %1447 = vmatpush1.bf16.msra.mxu0 %v1691_v56  ;;  %1488 = vmatpush1.bf16.msra.mxu1 %v1693_v57 }
  0xd3   : > { %1448 = vmatprep.subr.bf16.mxu0 %v1676_v58  ;;  %1489 = vmatprep.subr.bf16.mxu1 %v1678_v59 }
  0xd6   : > { %1449 = vmatpush1.bf16.msra.mxu0 %v1675_v1  ;;  %1490 = vmatpush1.bf16.msra.mxu1 %v1677_v2 }
  0xd7   : > { %1450 = vmatprep.subr.bf16.mxu0 %v1660_v3  ;;  %1491 = vmatprep.subr.bf16.mxu1 %v1662_v4 }
  0xda   : > { %1451 = vmatpush1.bf16.msra.mxu0 %v1659_v5  ;;  %1492 = vmatpush1.bf16.msra.mxu1 %v1661_v6 }
  0xdd   : > { %1469 = vmatmul.mubr.bf16.vlgmr.msra.gmra.mxu0 %v2219_v12  ;;  %1510 = vmatmul.mubr.bf16.vlgmr.msra.gmra.mxu1 %v2219_v12 }
 0x13d   : > { %v1224_v7 = vpop.f32.mrf.mxu0  ;;  %v1265_v8 = vpop.f32.mrf.mxu1 }
 0x13e   : > { %1803 = vtanh.f32 %v1224_v7 }
 0x13f   : > { %1805 = vtanh.f32 %v1265_v8  ;;  %v1226_v9 = vpop.f32.mrf.mxu0  ;;  %v1267_v10 = vpop.f32.mrf.mxu1 }
 0x140   : > { %1807 = vtanh.f32 %v1226_v9 }
 0x141   : > { %1809 = vtanh.f32 %v1267_v10  ;;  %v1228_v11 = vpop.f32.mrf.mxu0  ;;  %v1269_v13 = vpop.f32.mrf.mxu1 }
 0x143   : > { %v1229_v14 = vpop.f32.mrf.mxu0  ;;  %v1270_v15 = vpop.f32.mrf.mxu1 }
 0x14b   : > { %v1804_v16 = vpop.eup %1803 }
 0x14c   : > { %v1806_v17 = vpop.eup %1805 }
 0x14d   : > { %v1808_v12 = vpop.eup %1807 }
 0x14e   : > { %v1810_v18 = vpop.eup %1809  ;;  %v1550_v19 = vcombine.low %v1804_v16, %v1808_v12 }
 0x14f   : > { %v1551_v20 = vcombine.low %v1806_v17, %v1810_v18 }
 0x150   : > { %1566 = vst [vmem:[%s2328_s5] sm:$0x77] %v1550_v19 }
 0x151   : > { %1567 = vst [vmem:[%s2328_s5 + $0x8] sm:$0x77] %v1551_v20 }
 0x15d   : > { %v1306_v21 = vpop.f32.mrf.mxu0  ;;  %v1347_v22 = vpop.f32.mrf.mxu1 }
 0x15e   : > { %1811 = vtanh.f32 %v1306_v21 }
 0x15f   : > { %1813 = vtanh.f32 %v1347_v22  ;;  %v1308_v23 = vpop.f32.mrf.mxu0  ;;  %v1349_v24 = vpop.f32.mrf.mxu1 }
 0x160   : > { %1815 = vtanh.f32 %v1308_v23 }
 0x161   : > { %1817 = vtanh.f32 %v1349_v24  ;;  %v1310_v25 = vpop.f32.mrf.mxu0  ;;  %v1351_v26 = vpop.f32.mrf.mxu1 }
 0x163   : > { %v1311_v27 = vpop.f32.mrf.mxu0  ;;  %v1352_v28 = vpop.f32.mrf.mxu1 }
 0x16b   : > { %v1812_v29 = vpop.eup %1811 }
 0x16c   : > { %v1814_v30 = vpop.eup %1813 }
 0x16d   : > { %v1816_v31 = vpop.eup %1815 }
 0x16e   : > { %v1818_v32 = vpop.eup %1817  ;;  %v1552_v33 = vcombine.low %v1812_v29, %v1816_v31 }
 0x16f   : > { %v1553_v34 = vcombine.low %v1814_v30, %v1818_v32 }
 0x170   : > { %1568 = vst [vmem:[%s2328_s5 + $0x10] sm:$0x77] %v1552_v33 }
 0x171   : > { %1569 = vst [vmem:[%s2328_s5 + $0x18] sm:$0x77] %v1553_v34 }
 0x17d   : > { %v1388_v35 = vpop.f32.mrf.mxu0  ;;  %v1429_v36 = vpop.f32.mrf.mxu1 }
 0x17e   : > { %1819 = vtanh.f32 %v1388_v35 }
 0x17f   : > { %1821 = vtanh.f32 %v1429_v36  ;;  %v1390_v37 = vpop.f32.mrf.mxu0  ;;  %v1431_v38 = vpop.f32.mrf.mxu1 }
 0x180   : > { %1823 = vtanh.f32 %v1390_v37 }
 0x181   : > { %1825 = vtanh.f32 %v1431_v38  ;;  %v1392_v39 = vpop.f32.mrf.mxu0  ;;  %v1433_v40 = vpop.f32.mrf.mxu1 }
 0x183   : > { %v1393_v41 = vpop.f32.mrf.mxu0  ;;  %v1434_v0 = vpop.f32.mrf.mxu1 }
 0x18b   : > { %v1820_v42 = vpop.eup %1819 }
 0x18c   : > { %v1822_v43 = vpop.eup %1821 }
 0x18d   : > { %v1824_v44 = vpop.eup %1823 }
 0x18e   : > { %v1826_v45 = vpop.eup %1825  ;;  %v1554_v46 = vcombine.low %v1820_v42, %v1824_v44 }
 0x18f   : > { %v1555_v47 = vcombine.low %v1822_v43, %v1826_v45 }
 0x190   : > { %1570 = vst [vmem:[%s2328_s5 + $0x20] sm:$0x77] %v1554_v46 }
 0x191   : > { %1571 = vst [vmem:[%s2328_s5 + $0x28] sm:$0x77] %v1555_v47 }
 0x19d   : > { %v1470_v48 = vpop.f32.mrf.mxu0  ;;  %v1511_v49 = vpop.f32.mrf.mxu1 }
 0x19e   : > { %1827 = vtanh.f32 %v1470_v48 }
 0x19f   : > { %1829 = vtanh.f32 %v1511_v49  ;;  %v1472_v50 = vpop.f32.mrf.mxu0  ;;  %v1513_v51 = vpop.f32.mrf.mxu1 }
 0x1a0   : > { %1831 = vtanh.f32 %v1472_v50 }
 0x1a1   : > { %1833 = vtanh.f32 %v1513_v51  ;;  %v1474_v52 = vpop.f32.mrf.mxu0  ;;  %v1515_v53 = vpop.f32.mrf.mxu1 }
 0x1a3   : > { %v1475_v54 = vpop.f32.mrf.mxu0  ;;  %v1516_v55 = vpop.f32.mrf.mxu1 }
 0x1ab   : > { %v1828_v56 = vpop.eup %1827 }
 0x1ac   : > { %v1830_v57 = vpop.eup %1829 }
 0x1ad   : > { %v1832_v58 = vpop.eup %1831 }
 0x1ae   : > { %v1834_v59 = vpop.eup %1833  ;;  %v1556_v60 = vcombine.low %v1828_v56, %v1832_v58 }
 0x1af   : > { %v1557_v61 = vcombine.low %v1830_v57, %v1834_v59 }
 0x1b0   : > { %1572 = vst [vmem:[%s2328_s5 + $0x30] sm:$0x77] %v1556_v60 }
 0x1b1   : > { %1573 = vst [vmem:[%s2328_s5 + $0x38] sm:$0x77] %v1557_v61 }
 0x1b2 PF: > { %p9_p9 = scmp.ge.s32.totalorder %s1892_s13, 6   ;;  %s2351_s9 = smov %s1853_s10 }
 0x1b3   : > { %s2352_s10 = smov %s1901_s16  ;;  %s2353_s11 = smov %s1892_s13 }
 0x1b4   :  { %11 = sbr.rel (!%p9_p9) target bundleno = 2 (0x2), region = 86 }

</bundles_post_ra>
